<compile_context>
chip_gen: v7x
topology: tpu7x:2x2x1
jax: 0.10.0
libtpu: 0.0.40
codegen_flags: <defaults>
</compile_context>

<pallas_src>
import functools
import numpy as np
import jax
import jax.numpy as jnp
from jax import lax
from jax.experimental import pallas as pl
from jax.experimental.pallas import tpu as pltpu


# --------------------------- shared recurrence body ---------------------------
def _project_inputs(x_ref, wih_ref, bi_ref, gir_scr, giz_scr, gin_scr, H):
    """Hoisted input projection for ALL timesteps: one big bf16 MXU matmul."""
    T, B, I = x_ref.shape
    x2d = x_ref[...].reshape(T * B, I).astype(jnp.bfloat16)
    gi = jnp.dot(x2d, wih_ref[...], preferred_element_type=jnp.float32) + bi_ref[...]
    gi = gi.reshape(T, B, 3 * H)
    # Split ONCE into per-gate lane-aligned slabs (kept resident in VMEM scratch)
    gir_scr[...] = gi[:, :, 0:H]
    giz_scr[...] = gi[:, :, H:2 * H]
    gin_scr[...] = gi[:, :, 2 * H:3 * H]


def _make_step(whh_r, whh_z, whh_n, bhn, gir_scr, giz_scr, gin_scr):
    """Per-timestep recurrence. h carried in f32; matmuls in bf16."""
    def step(t, h):
        hb = h.astype(jnp.bfloat16)
        gh_r = jnp.dot(hb, whh_r, preferred_element_type=jnp.float32)
        gh_z = jnp.dot(hb, whh_z, preferred_element_type=jnp.float32)
        gh_n = jnp.dot(hb, whh_n, preferred_element_type=jnp.float32) + bhn
        r = jax.nn.sigmoid(gir_scr[t] + gh_r)
        z = jax.nn.sigmoid(giz_scr[t] + gh_z)
        n = jnp.tanh(gin_scr[t] + r * gh_n)
        return (1.0 - z) * n + z * h
    return step


# ----------------------- intermediate layer (full output) ---------------------
def _gru_layer_kernel(x_ref, wih_ref, bi_ref, whh_r_ref, whh_z_ref, whh_n_ref,
                      bhn_ref, out_ref, gir_scr, giz_scr, gin_scr, *, unroll):
    T, B, _ = x_ref.shape
    H = whh_r_ref.shape[0]
    _project_inputs(x_ref, wih_ref, bi_ref, gir_scr, giz_scr, gin_scr, H)

    # Hoist resident weights/bias out of the sequential loop.
    wr, wz, wn, bhn = whh_r_ref[...], whh_z_ref[...], whh_n_ref[...], bhn_ref[...]
    base_step = _make_step(wr, wz, wn, bhn, gir_scr, giz_scr, gin_scr)

    def step(t, h):
        h_new = base_step(t, h)
        out_ref[t] = h_new.astype(out_ref.dtype)
        return h_new

    lax.fori_loop(0, T, step, jnp.zeros((B, H), jnp.float32), unroll=unroll)


def gru_layer_full(x_tbi, p):
    T, B, _ = x_tbi.shape
    H = p["whh_r_t"].shape[0]
    unroll = int(min(T, 8))
    return pl.pallas_call(
        functools.partial(_gru_layer_kernel, unroll=unroll),
        out_shape=jax.ShapeDtypeStruct((T, B, H), jnp.float32),
        scratch_shapes=[pltpu.VMEM((T, B, H), jnp.float32)] * 3,
    )(x_tbi, p["wih_t"], p["bi"], p["whh_r_t"], p["whh_z_t"], p["whh_n_t"], p["bhn"])


# --------------- last layer: final state only, fused BN + Linear --------------
def _gru_last_layer_head_kernel(x_ref, wih_ref, bi_ref, whh_r_ref, whh_z_ref,
                                whh_n_ref, bhn_ref, gamma_ref, beta_ref,
                                wfc_ref, bfc_ref, out_ref,
                                gir_scr, giz_scr, gin_scr, *, unroll):
    T, B, _ = x_ref.shape
    H = whh_r_ref.shape[0]
    _project_inputs(x_ref, wih_ref, bi_ref, gir_scr, giz_scr, gin_scr, H)

    wr, wz, wn, bhn = whh_r_ref[...], whh_z_ref[...], whh_n_ref[...], bhn_ref[...]
    step = _make_step(wr, wz, wn, bhn, gir_scr, giz_scr, gin_scr)
    # Only h_T is consumed downstream -> don't materialize the (T, B, H) output.
    h_T = lax.fori_loop(0, T, step, jnp.zeros((B, H), jnp.float32), unroll=unroll)

    # BatchNorm1d (training mode): batch statistics, biased variance, eps=1e-5.
    mean = jnp.mean(h_T, axis=0, keepdims=True)
    var = jnp.mean((h_T - mean) ** 2, axis=0, keepdims=True)
    hn = (h_T - mean) * lax.rsqrt(var + 1e-5)
    y = hn * gamma_ref[...] + beta_ref[...]
    out_ref[...] = (jnp.dot(y, wfc_ref[...], preferred_element_type=jnp.float32)
                    + bfc_ref[...])


def gru_last_layer_head(x_tbi, p, bn_gamma, bn_beta, fc_w_t, fc_b):
    T, B, _ = x_tbi.shape
    H = p["whh_r_t"].shape[0]
    unroll = int(min(T, 8))
    return pl.pallas_call(
        functools.partial(_gru_last_layer_head_kernel, unroll=unroll),
        out_shape=jax.ShapeDtypeStruct((B, 1), jnp.float32),
        scratch_shapes=[pltpu.VMEM((T, B, H), jnp.float32)] * 3,
    )(x_tbi, p["wih_t"], p["bi"], p["whh_r_t"], p["whh_z_t"], p["whh_n_t"],
      p["bhn"], bn_gamma, bn_beta, fc_w_t, fc_b)


# -------------------------------- full forward --------------------------------
@functools.partial(jax.jit, static_argnames=("num_layers",))
def gru_forward(x_bti, params, num_layers):
    # batch-first (B, T, I) -> time-major (T, B, I)
    x = jnp.transpose(x_bti, (1, 0, 2))
    for l in range(num_layers - 1):
        x = gru_layer_full(x, params["layers"][l])
        # TODO(synk): inter-layer dropout skipped (dropout=0.0 in the example).
    return gru_last_layer_head(x, params["layers"][num_layers - 1],
                               params["bn_gamma"], params["bn_beta"],
                               params["fc_w_t"], params["fc_b"])


# ------------------------------ parameter init ---------------------------------
def init_params(key, input_size, hidden_size, num_layers):
    H = hidden_size
    k = 1.0 / np.sqrt(H)
    layers = []
    for l in range(num_layers):
        in_dim = input_size if l == 0 else H
        key, k1, k2, k3, k4 = jax.random.split(key, 5)
        w_ih = jax.random.uniform(k1, (3 * H, in_dim), jnp.float32, -k, k)
        w_hh = jax.random.uniform(k2, (3 * H, H), jnp.float32, -k, k)
        b_ih = jax.random.uniform(k3, (3 * H,), jnp.float32, -k, k)
        b_hh = jax.random.uniform(k4, (3 * H,), jnp.float32, -k, k)
        # Fold biases: (b_ih + b_hh) for r/z gates, b_ih only for n gate.
        bi = jnp.concatenate([b_ih[:2 * H] + b_hh[:2 * H], b_ih[2 * H:]])
        layers.append(dict(
            wih_t=w_ih.T.astype(jnp.bfloat16),              # (in_dim, 3H) bf16
            bi=bi.reshape(1, 3 * H).astype(jnp.float32),    # folded biases (f32)
            whh_r_t=w_hh[0:H].T.astype(jnp.bfloat16),       # (H, H) per gate
            whh_z_t=w_hh[H:2 * H].T.astype(jnp.bfloat16),
            whh_n_t=w_hh[2 * H:3 * H].T.astype(jnp.bfloat16),
            bhn=b_hh[2 * H:3 * H].reshape(1, H).astype(jnp.float32),
        ))
    key, kf1, kf2 = jax.random.split(key, 3)
    kl = 1.0 / np.sqrt(H)
    fc_w = jax.random.uniform(kf1, (1, H), jnp.float32, -kl, kl)
    fc_b = jax.random.uniform(kf2, (1,), jnp.float32, -kl, kl)
    return dict(
        layers=layers,
        bn_gamma=jnp.ones((1, H), jnp.float32),
        bn_beta=jnp.zeros((1, H), jnp.float32),
        fc_w_t=fc_w.T,                                      # (H, 1)
        fc_b=fc_b.reshape(1, 1),
    )


if __name__ == "__main__":
    B, T, I, H, L = 2, 8, 4, 32, 2        # batch, seq, input_size, hidden, layers
    key = jax.random.PRNGKey(0)
    key, kx, kp = jax.random.split(key, 3)
    x = jax.random.normal(kx, (B, T, I), jnp.float32)
    params = init_params(kp, I, H, L)

    out = gru_forward(x, params, num_layers=L)
    jax.block_until_ready(out)
    assert out.shape == (B, 1) and out.dtype == jnp.float32
    print("KERNEL_OK")
</pallas_src>

<mosaic_0001>
module attributes {stable_mosaic.version = 11 : i64} {
  func.func @_gru_layer_kernel(%arg0: memref<8x2x4xf32, #tpu.memory_space<vmem>>, %arg1: memref<4x96xbf16, #tpu.memory_space<vmem>>, %arg2: memref<1x96xf32, #tpu.memory_space<vmem>>, %arg3: memref<32x32xbf16, #tpu.memory_space<vmem>>, %arg4: memref<32x32xbf16, #tpu.memory_space<vmem>>, %arg5: memref<32x32xbf16, #tpu.memory_space<vmem>>, %arg6: memref<1x32xf32, #tpu.memory_space<vmem>>, %arg7: memref<8x2x32xf32, #tpu.memory_space<vmem>>, %arg8: memref<8x2x32xf32, #tpu.memory_space<vmem>>, %arg9: memref<8x2x32xf32, #tpu.memory_space<vmem>>, %arg10: memref<8x2x32xf32, #tpu.memory_space<vmem>>) attributes {dimension_semantics = [], scalar_prefetch = 0 : i64, scratch_operands = 3 : i64, tpu.core_type = #tpu.core_type<tc>} {
    %c0 = arith.constant 0 : index
    %c0_0 = arith.constant 0 : index
    %c0_1 = arith.constant 0 : index
    %0 = vector.load %arg0[%c0, %c0_0, %c0_1] : memref<8x2x4xf32, #tpu.memory_space<vmem>>, vector<8x2x4xf32>
    %1 = vector.shape_cast %0 : vector<8x2x4xf32> to vector<16x4xf32>
    %2 = arith.truncf %1 : vector<16x4xf32> to vector<16x4xbf16>
    %c0_2 = arith.constant 0 : index
    %c0_3 = arith.constant 0 : index
    %3 = vector.load %arg1[%c0_2, %c0_3] : memref<4x96xbf16, #tpu.memory_space<vmem>>, vector<4x96xbf16>
    %cst = arith.constant dense<0.000000e+00> : vector<16x96xf32>
    %4 = tpu.matmul %2, %3, %cst {dimension_numbers = #tpu.dot_dimension_numbers<[1], [0], [0], [1], [0, 0, 1, 1], [], []>} : vector<16x4xbf16>, vector<4x96xbf16>, vector<16x96xf32> -> vector<16x96xf32>
    %c0_4 = arith.constant 0 : index
    %c0_5 = arith.constant 0 : index
    %5 = vector.load %arg2[%c0_4, %c0_5] : memref<1x96xf32, #tpu.memory_space<vmem>>, vector<1x96xf32>
    %6 = vector.broadcast %5 : vector<1x96xf32> to vector<16x96xf32>
    %7 = arith.addf %4, %6 : vector<16x96xf32>
    %8 = vector.shape_cast %7 : vector<16x96xf32> to vector<8x2x96xf32>
    %9 = vector.extract_strided_slice %8 {offsets = [0, 0, 0], sizes = [8, 2, 32], strides = [1, 1, 1]} : vector<8x2x96xf32> to vector<8x2x32xf32>
    %c0_6 = arith.constant 0 : index
    %c0_7 = arith.constant 0 : index
    %c0_8 = arith.constant 0 : index
    %10 = vector.load %arg8[%c0_6, %c0_7, %c0_8] : memref<8x2x32xf32, #tpu.memory_space<vmem>>, vector<8x2x32xf32>
    tpu.vector_store %arg8[%c0_6, %c0_7, %c0_8], %9 {strides = array<i32>} : memref<8x2x32xf32, #tpu.memory_space<vmem>>, vector<8x2x32xf32>,
    %11 = vector.extract_strided_slice %8 {offsets = [0, 0, 32], sizes = [8, 2, 32], strides = [1, 1, 1]} : vector<8x2x96xf32> to vector<8x2x32xf32>
    %c0_9 = arith.constant 0 : index
    %c0_10 = arith.constant 0 : index
    %c0_11 = arith.constant 0 : index
    %12 = vector.load %arg9[%c0_9, %c0_10, %c0_11] : memref<8x2x32xf32, #tpu.memory_space<vmem>>, vector<8x2x32xf32>
    tpu.vector_store %arg9[%c0_9, %c0_10, %c0_11], %11 {strides = array<i32>} : memref<8x2x32xf32, #tpu.memory_space<vmem>>, vector<8x2x32xf32>,
    %13 = vector.extract_strided_slice %8 {offsets = [0, 0, 64], sizes = [8, 2, 32], strides = [1, 1, 1]} : vector<8x2x96xf32> to vector<8x2x32xf32>
    %c0_12 = arith.constant 0 : index
    %c0_13 = arith.constant 0 : index
    %c0_14 = arith.constant 0 : index
    %14 = vector.load %arg10[%c0_12, %c0_13, %c0_14] : memref<8x2x32xf32, #tpu.memory_space<vmem>>, vector<8x2x32xf32>
    tpu.vector_store %arg10[%c0_12, %c0_13, %c0_14], %13 {strides = array<i32>} : memref<8x2x32xf32, #tpu.memory_space<vmem>>, vector<8x2x32xf32>,
    %c0_15 = arith.constant 0 : index
    %c0_16 = arith.constant 0 : index
    %15 = vector.load %arg3[%c0_15, %c0_16] : memref<32x32xbf16, #tpu.memory_space<vmem>>, vector<32x32xbf16>
    %c0_17 = arith.constant 0 : index
    %c0_18 = arith.constant 0 : index
    %16 = vector.load %arg4[%c0_17, %c0_18] : memref<32x32xbf16, #tpu.memory_space<vmem>>, vector<32x32xbf16>
    %c0_19 = arith.constant 0 : index
    %c0_20 = arith.constant 0 : index
    %17 = vector.load %arg5[%c0_19, %c0_20] : memref<32x32xbf16, #tpu.memory_space<vmem>>, vector<32x32xbf16>
    %c0_21 = arith.constant 0 : index
    %c0_22 = arith.constant 0 : index
    %18 = vector.load %arg6[%c0_21, %c0_22] : memref<1x32xf32, #tpu.memory_space<vmem>>, vector<1x32xf32>
    %cst_23 = arith.constant 0.000000e+00 : f32
    %19 = vector.broadcast %cst_23 : f32 to vector<2x32xf32>
    %c0_i32 = arith.constant 0 : i32
    %20 = arith.truncf %19 : vector<2x32xf32> to vector<2x32xbf16>
    %cst_24 = arith.constant dense<0.000000e+00> : vector<2x32xf32>
    %21 = tpu.matmul %20, %15, %cst_24 {dimension_numbers = #tpu.dot_dimension_numbers<[1], [0], [0], [1], [0, 0, 1, 1], [], []>} : vector<2x32xbf16>, vector<32x32xbf16>, vector<2x32xf32> -> vector<2x32xf32>
    %cst_25 = arith.constant dense<0.000000e+00> : vector<2x32xf32>
    %22 = tpu.matmul %20, %16, %cst_25 {dimension_numbers = #tpu.dot_dimension_numbers<[1], [0], [0], [1], [0, 0, 1, 1], [], []>} : vector<2x32xbf16>, vector<32x32xbf16>, vector<2x32xf32> -> vector<2x32xf32>
    %cst_26 = arith.constant dense<0.000000e+00> : vector<2x32xf32>
    %23 = tpu.matmul %20, %17, %cst_26 {dimension_numbers = #tpu.dot_dimension_numbers<[1], [0], [0], [1], [0, 0, 1, 1], [], []>} : vector<2x32xbf16>, vector<32x32xbf16>, vector<2x32xf32> -> vector<2x32xf32>
    %24 = vector.broadcast %18 : vector<1x32xf32> to vector<2x32xf32>
    %25 = arith.addf %23, %24 : vector<2x32xf32>
    %26 = arith.index_cast %c0_i32 : i32 to index
    %c0_27 = arith.constant 0 : index
    %c0_28 = arith.constant 0 : index
    %27 = vector.load %arg8[%26, %c0_27, %c0_28] : memref<8x2x32xf32, #tpu.memory_space<vmem>>, vector<1x2x32xf32>
    %28 = vector.shape_cast %27 : vector<1x2x32xf32> to vector<2x32xf32>
    %29 = arith.addf %28, %21 : vector<2x32xf32>
    %30 = arith.negf %29 : vector<2x32xf32>
    %31 = math.exp %30 : vector<2x32xf32>
    %cst_29 = arith.constant 1.000000e+00 : f32
    %32 = vector.broadcast %cst_29 : f32 to vector<2x32xf32>
    %33 = arith.addf %32, %31 : vector<2x32xf32>
    %34 = arith.divf %32, %33 : vector<2x32xf32>
    %35 = arith.index_cast %c0_i32 : i32 to index
    %c0_30 = arith.constant 0 : index
    %c0_31 = arith.constant 0 : index
    %36 = vector.load %arg9[%35, %c0_30, %c0_31] : memref<8x2x32xf32, #tpu.memory_space<vmem>>, vector<1x2x32xf32>
    %37 = vector.shape_cast %36 : vector<1x2x32xf32> to vector<2x32xf32>
    %38 = arith.addf %37, %22 : vector<2x32xf32>
    %39 = arith.negf %38 : vector<2x32xf32>
    %40 = math.exp %39 : vector<2x32xf32>
    %cst_32 = arith.constant 1.000000e+00 : f32
    %41 = vector.broadcast %cst_32 : f32 to vector<2x32xf32>
    %42 = arith.addf %41, %40 : vector<2x32xf32>
    %43 = arith.divf %41, %42 : vector<2x32xf32>
    %44 = arith.index_cast %c0_i32 : i32 to index
    %c0_33 = arith.constant 0 : index
    %c0_34 = arith.constant 0 : index
    %45 = vector.load %arg10[%44, %c0_33, %c0_34] : memref<8x2x32xf32, #tpu.memory_space<vmem>>, vector<1x2x32xf32>
    %46 = vector.shape_cast %45 : vector<1x2x32xf32> to vector<2x32xf32>
    %47 = arith.mulf %34, %25 : vector<2x32xf32>
    %48 = arith.addf %46, %47 : vector<2x32xf32>
    %49 = math.tanh %48 : vector<2x32xf32>
    %cst_35 = arith.constant 1.000000e+00 : f32
    %50 = vector.broadcast %cst_35 : f32 to vector<2x32xf32>
    %51 = arith.subf %50, %43 : vector<2x32xf32>
    %52 = arith.mulf %51, %49 : vector<2x32xf32>
    %53 = arith.mulf %43, %19 : vector<2x32xf32>
    %54 = arith.addf %52, %53 : vector<2x32xf32>
    %55 = arith.index_cast %c0_i32 : i32 to index
    %c0_36 = arith.constant 0 : index
    %c0_37 = arith.constant 0 : index
    %56 = vector.load %arg7[%55, %c0_36, %c0_37] : memref<8x2x32xf32, #tpu.memory_space<vmem>>, vector<1x2x32xf32>
    %57 = vector.shape_cast %56 : vector<1x2x32xf32> to vector<2x32xf32>
    %58 = vector.shape_cast %54 : vector<2x32xf32> to vector<1x2x32xf32>
    tpu.vector_store %arg7[%55, %c0_36, %c0_37], %58 {strides = array<i32>} : memref<8x2x32xf32, #tpu.memory_space<vmem>>, vector<1x2x32xf32>,
    %c1_i32 = arith.constant 1 : i32
    %59 = arith.truncf %54 : vector<2x32xf32> to vector<2x32xbf16>
    %cst_38 = arith.constant dense<0.000000e+00> : vector<2x32xf32>
    %60 = tpu.matmul %59, %15, %cst_38 {dimension_numbers = #tpu.dot_dimension_numbers<[1], [0], [0], [1], [0, 0, 1, 1], [], []>} : vector<2x32xbf16>, vector<32x32xbf16>, vector<2x32xf32> -> vector<2x32xf32>
    %cst_39 = arith.constant dense<0.000000e+00> : vector<2x32xf32>
    %61 = tpu.matmul %59, %16, %cst_39 {dimension_numbers = #tpu.dot_dimension_numbers<[1], [0], [0], [1], [0, 0, 1, 1], [], []>} : vector<2x32xbf16>, vector<32x32xbf16>, vector<2x32xf32> -> vector<2x32xf32>
    %cst_40 = arith.constant dense<0.000000e+00> : vector<2x32xf32>
    %62 = tpu.matmul %59, %17, %cst_40 {dimension_numbers = #tpu.dot_dimension_numbers<[1], [0], [0], [1], [0, 0, 1, 1], [], []>} : vector<2x32xbf16>, vector<32x32xbf16>, vector<2x32xf32> -> vector<2x32xf32>
    %63 = vector.broadcast %18 : vector<1x32xf32> to vector<2x32xf32>
    %64 = arith.addf %62, %63 : vector<2x32xf32>
    %65 = arith.index_cast %c1_i32 : i32 to index
    %c0_41 = arith.constant 0 : index
    %c0_42 = arith.constant 0 : index
    %66 = vector.load %arg8[%65, %c0_41, %c0_42] : memref<8x2x32xf32, #tpu.memory_space<vmem>>, vector<1x2x32xf32>
    %67 = vector.shape_cast %66 : vector<1x2x32xf32> to vector<2x32xf32>
    %68 = arith.addf %67, %60 : vector<2x32xf32>
    %69 = arith.negf %68 : vector<2x32xf32>
    %70 = math.exp %69 : vector<2x32xf32>
    %cst_43 = arith.constant 1.000000e+00 : f32
    %71 = vector.broadcast %cst_43 : f32 to vector<2x32xf32>
    %72 = arith.addf %71, %70 : vector<2x32xf32>
    %73 = arith.divf %71, %72 : vector<2x32xf32>
    %74 = arith.index_cast %c1_i32 : i32 to index
    %c0_44 = arith.constant 0 : index
    %c0_45 = arith.constant 0 : index
    %75 = vector.load %arg9[%74, %c0_44, %c0_45] : memref<8x2x32xf32, #tpu.memory_space<vmem>>, vector<1x2x32xf32>
    %76 = vector.shape_cast %75 : vector<1x2x32xf32> to vector<2x32xf32>
    %77 = arith.addf %76, %61 : vector<2x32xf32>
    %78 = arith.negf %77 : vector<2x32xf32>
    %79 = math.exp %78 : vector<2x32xf32>
    %cst_46 = arith.constant 1.000000e+00 : f32
    %80 = vector.broadcast %cst_46 : f32 to vector<2x32xf32>
    %81 = arith.addf %80, %79 : vector<2x32xf32>
    %82 = arith.divf %80, %81 : vector<2x32xf32>
    %83 = arith.index_cast %c1_i32 : i32 to index
    %c0_47 = arith.constant 0 : index
    %c0_48 = arith.constant 0 : index
    %84 = vector.load %arg10[%83, %c0_47, %c0_48] : memref<8x2x32xf32, #tpu.memory_space<vmem>>, vector<1x2x32xf32>
    %85 = vector.shape_cast %84 : vector<1x2x32xf32> to vector<2x32xf32>
    %86 = arith.mulf %73, %64 : vector<2x32xf32>
    %87 = arith.addf %85, %86 : vector<2x32xf32>
    %88 = math.tanh %87 : vector<2x32xf32>
    %cst_49 = arith.constant 1.000000e+00 : f32
    %89 = vector.broadcast %cst_49 : f32 to vector<2x32xf32>
    %90 = arith.subf %89, %82 : vector<2x32xf32>
    %91 = arith.mulf %90, %88 : vector<2x32xf32>
    %92 = arith.mulf %82, %54 : vector<2x32xf32>
    %93 = arith.addf %91, %92 : vector<2x32xf32>
    %94 = arith.index_cast %c1_i32 : i32 to index
    %c0_50 = arith.constant 0 : index
    %c0_51 = arith.constant 0 : index
    %95 = vector.load %arg7[%94, %c0_50, %c0_51] : memref<8x2x32xf32, #tpu.memory_space<vmem>>, vector<1x2x32xf32>
    %96 = vector.shape_cast %95 : vector<1x2x32xf32> to vector<2x32xf32>
    %97 = vector.shape_cast %93 : vector<2x32xf32> to vector<1x2x32xf32>
    tpu.vector_store %arg7[%94, %c0_50, %c0_51], %97 {strides = array<i32>} : memref<8x2x32xf32, #tpu.memory_space<vmem>>, vector<1x2x32xf32>,
    %c2_i32 = arith.constant 2 : i32
    %98 = arith.truncf %93 : vector<2x32xf32> to vector<2x32xbf16>
    %cst_52 = arith.constant dense<0.000000e+00> : vector<2x32xf32>
    %99 = tpu.matmul %98, %15, %cst_52 {dimension_numbers = #tpu.dot_dimension_numbers<[1], [0], [0], [1], [0, 0, 1, 1], [], []>} : vector<2x32xbf16>, vector<32x32xbf16>, vector<2x32xf32> -> vector<2x32xf32>
    %cst_53 = arith.constant dense<0.000000e+00> : vector<2x32xf32>
    %100 = tpu.matmul %98, %16, %cst_53 {dimension_numbers = #tpu.dot_dimension_numbers<[1], [0], [0], [1], [0, 0, 1, 1], [], []>} : vector<2x32xbf16>, vector<32x32xbf16>, vector<2x32xf32> -> vector<2x32xf32>
    %cst_54 = arith.constant dense<0.000000e+00> : vector<2x32xf32>
    %101 = tpu.matmul %98, %17, %cst_54 {dimension_numbers = #tpu.dot_dimension_numbers<[1], [0], [0], [1], [0, 0, 1, 1], [], []>} : vector<2x32xbf16>, vector<32x32xbf16>, vector<2x32xf32> -> vector<2x32xf32>
    %102 = vector.broadcast %18 : vector<1x32xf32> to vector<2x32xf32>
    %103 = arith.addf %101, %102 : vector<2x32xf32>
    %104 = arith.index_cast %c2_i32 : i32 to index
    %c0_55 = arith.constant 0 : index
    %c0_56 = arith.constant 0 : index
    %105 = vector.load %arg8[%104, %c0_55, %c0_56] : memref<8x2x32xf32, #tpu.memory_space<vmem>>, vector<1x2x32xf32>
    %106 = vector.shape_cast %105 : vector<1x2x32xf32> to vector<2x32xf32>
    %107 = arith.addf %106, %99 : vector<2x32xf32>
    %108 = arith.negf %107 : vector<2x32xf32>
    %109 = math.exp %108 : vector<2x32xf32>
    %cst_57 = arith.constant 1.000000e+00 : f32
    %110 = vector.broadcast %cst_57 : f32 to vector<2x32xf32>
    %111 = arith.addf %110, %109 : vector<2x32xf32>
    %112 = arith.divf %110, %111 : vector<2x32xf32>
    %113 = arith.index_cast %c2_i32 : i32 to index
    %c0_58 = arith.constant 0 : index
    %c0_59 = arith.constant 0 : index
    %114 = vector.load %arg9[%113, %c0_58, %c0_59] : memref<8x2x32xf32, #tpu.memory_space<vmem>>, vector<1x2x32xf32>
    %115 = vector.shape_cast %114 : vector<1x2x32xf32> to vector<2x32xf32>
    %116 = arith.addf %115, %100 : vector<2x32xf32>
    %117 = arith.negf %116 : vector<2x32xf32>
    %118 = math.exp %117 : vector<2x32xf32>
    %cst_60 = arith.constant 1.000000e+00 : f32
    %119 = vector.broadcast %cst_60 : f32 to vector<2x32xf32>
    %120 = arith.addf %119, %118 : vector<2x32xf32>
    %121 = arith.divf %119, %120 : vector<2x32xf32>
    %122 = arith.index_cast %c2_i32 : i32 to index
    %c0_61 = arith.constant 0 : index
    %c0_62 = arith.constant 0 : index
    %123 = vector.load %arg10[%122, %c0_61, %c0_62] : memref<8x2x32xf32, #tpu.memory_space<vmem>>, vector<1x2x32xf32>
    %124 = vector.shape_cast %123 : vector<1x2x32xf32> to vector<2x32xf32>
    %125 = arith.mulf %112, %103 : vector<2x32xf32>
    %126 = arith.addf %124, %125 : vector<2x32xf32>
    %127 = math.tanh %126 : vector<2x32xf32>
    %cst_63 = arith.constant 1.000000e+00 : f32
    %128 = vector.broadcast %cst_63 : f32 to vector<2x32xf32>
    %129 = arith.subf %128, %121 : vector<2x32xf32>
    %130 = arith.mulf %129, %127 : vector<2x32xf32>
    %131 = arith.mulf %121, %93 : vector<2x32xf32>
    %132 = arith.addf %130, %131 : vector<2x32xf32>
    %133 = arith.index_cast %c2_i32 : i32 to index
    %c0_64 = arith.constant 0 : index
    %c0_65 = arith.constant 0 : index
    %134 = vector.load %arg7[%133, %c0_64, %c0_65] : memref<8x2x32xf32, #tpu.memory_space<vmem>>, vector<1x2x32xf32>
    %135 = vector.shape_cast %134 : vector<1x2x32xf32> to vector<2x32xf32>
    %136 = vector.shape_cast %132 : vector<2x32xf32> to vector<1x2x32xf32>
    tpu.vector_store %arg7[%133, %c0_64, %c0_65], %136 {strides = array<i32>} : memref<8x2x32xf32, #tpu.memory_space<vmem>>, vector<1x2x32xf32>,
    %c3_i32 = arith.constant 3 : i32
    %137 = arith.truncf %132 : vector<2x32xf32> to vector<2x32xbf16>
    %cst_66 = arith.constant dense<0.000000e+00> : vector<2x32xf32>
    %138 = tpu.matmul %137, %15, %cst_66 {dimension_numbers = #tpu.dot_dimension_numbers<[1], [0], [0], [1], [0, 0, 1, 1], [], []>} : vector<2x32xbf16>, vector<32x32xbf16>, vector<2x32xf32> -> vector<2x32xf32>
    %cst_67 = arith.constant dense<0.000000e+00> : vector<2x32xf32>
    %139 = tpu.matmul %137, %16, %cst_67 {dimension_numbers = #tpu.dot_dimension_numbers<[1], [0], [0], [1], [0, 0, 1, 1], [], []>} : vector<2x32xbf16>, vector<32x32xbf16>, vector<2x32xf32> -> vector<2x32xf32>
    %cst_68 = arith.constant dense<0.000000e+00> : vector<2x32xf32>
    %140 = tpu.matmul %137, %17, %cst_68 {dimension_numbers = #tpu.dot_dimension_numbers<[1], [0], [0], [1], [0, 0, 1, 1], [], []>} : vector<2x32xbf16>, vector<32x32xbf16>, vector<2x32xf32> -> vector<2x32xf32>
    %141 = vector.broadcast %18 : vector<1x32xf32> to vector<2x32xf32>
    %142 = arith.addf %140, %141 : vector<2x32xf32>
    %143 = arith.index_cast %c3_i32 : i32 to index
    %c0_69 = arith.constant 0 : index
    %c0_70 = arith.constant 0 : index
    %144 = vector.load %arg8[%143, %c0_69, %c0_70] : memref<8x2x32xf32, #tpu.memory_space<vmem>>, vector<1x2x32xf32>
    %145 = vector.shape_cast %144 : vector<1x2x32xf32> to vector<2x32xf32>
    %146 = arith.addf %145, %138 : vector<2x32xf32>
    %147 = arith.negf %146 : vector<2x32xf32>
    %148 = math.exp %147 : vector<2x32xf32>
    %cst_71 = arith.constant 1.000000e+00 : f32
    %149 = vector.broadcast %cst_71 : f32 to vector<2x32xf32>
    %150 = arith.addf %149, %148 : vector<2x32xf32>
    %151 = arith.divf %149, %150 : vector<2x32xf32>
    %152 = arith.index_cast %c3_i32 : i32 to index
    %c0_72 = arith.constant 0 : index
    %c0_73 = arith.constant 0 : index
    %153 = vector.load %arg9[%152, %c0_72, %c0_73] : memref<8x2x32xf32, #tpu.memory_space<vmem>>, vector<1x2x32xf32>
    %154 = vector.shape_cast %153 : vector<1x2x32xf32> to vector<2x32xf32>
    %155 = arith.addf %154, %139 : vector<2x32xf32>
    %156 = arith.negf %155 : vector<2x32xf32>
    %157 = math.exp %156 : vector<2x32xf32>
    %cst_74 = arith.constant 1.000000e+00 : f32
    %158 = vector.broadcast %cst_74 : f32 to vector<2x32xf32>
    %159 = arith.addf %158, %157 : vector<2x32xf32>
    %160 = arith.divf %158, %159 : vector<2x32xf32>
    %161 = arith.index_cast %c3_i32 : i32 to index
    %c0_75 = arith.constant 0 : index
    %c0_76 = arith.constant 0 : index
    %162 = vector.load %arg10[%161, %c0_75, %c0_76] : memref<8x2x32xf32, #tpu.memory_space<vmem>>, vector<1x2x32xf32>
    %163 = vector.shape_cast %162 : vector<1x2x32xf32> to vector<2x32xf32>
    %164 = arith.mulf %151, %142 : vector<2x32xf32>
    %165 = arith.addf %163, %164 : vector<2x32xf32>
    %166 = math.tanh %165 : vector<2x32xf32>
    %cst_77 = arith.constant 1.000000e+00 : f32
    %167 = vector.broadcast %cst_77 : f32 to vector<2x32xf32>
    %168 = arith.subf %167, %160 : vector<2x32xf32>
    %169 = arith.mulf %168, %166 : vector<2x32xf32>
    %170 = arith.mulf %160, %132 : vector<2x32xf32>
    %171 = arith.addf %169, %170 : vector<2x32xf32>
    %172 = arith.index_cast %c3_i32 : i32 to index
    %c0_78 = arith.constant 0 : index
    %c0_79 = arith.constant 0 : index
    %173 = vector.load %arg7[%172, %c0_78, %c0_79] : memref<8x2x32xf32, #tpu.memory_space<vmem>>, vector<1x2x32xf32>
    %174 = vector.shape_cast %173 : vector<1x2x32xf32> to vector<2x32xf32>
    %175 = vector.shape_cast %171 : vector<2x32xf32> to vector<1x2x32xf32>
    tpu.vector_store %arg7[%172, %c0_78, %c0_79], %175 {strides = array<i32>} : memref<8x2x32xf32, #tpu.memory_space<vmem>>, vector<1x2x32xf32>,
    %c4_i32 = arith.constant 4 : i32
    %176 = arith.truncf %171 : vector<2x32xf32> to vector<2x32xbf16>
    %cst_80 = arith.constant dense<0.000000e+00> : vector<2x32xf32>
    %177 = tpu.matmul %176, %15, %cst_80 {dimension_numbers = #tpu.dot_dimension_numbers<[1], [0], [0], [1], [0, 0, 1, 1], [], []>} : vector<2x32xbf16>, vector<32x32xbf16>, vector<2x32xf32> -> vector<2x32xf32>
    %cst_81 = arith.constant dense<0.000000e+00> : vector<2x32xf32>
    %178 = tpu.matmul %176, %16, %cst_81 {dimension_numbers = #tpu.dot_dimension_numbers<[1], [0], [0], [1], [0, 0, 1, 1], [], []>} : vector<2x32xbf16>, vector<32x32xbf16>, vector<2x32xf32> -> vector<2x32xf32>
    %cst_82 = arith.constant dense<0.000000e+00> : vector<2x32xf32>
    %179 = tpu.matmul %176, %17, %cst_82 {dimension_numbers = #tpu.dot_dimension_numbers<[1], [0], [0], [1], [0, 0, 1, 1], [], []>} : vector<2x32xbf16>, vector<32x32xbf16>, vector<2x32xf32> -> vector<2x32xf32>
    %180 = vector.broadcast %18 : vector<1x32xf32> to vector<2x32xf32>
    %181 = arith.addf %179, %180 : vector<2x32xf32>
    %182 = arith.index_cast %c4_i32 : i32 to index
    %c0_83 = arith.constant 0 : index
    %c0_84 = arith.constant 0 : index
    %183 = vector.load %arg8[%182, %c0_83, %c0_84] : memref<8x2x32xf32, #tpu.memory_space<vmem>>, vector<1x2x32xf32>
    %184 = vector.shape_cast %183 : vector<1x2x32xf32> to vector<2x32xf32>
    %185 = arith.addf %184, %177 : vector<2x32xf32>
    %186 = arith.negf %185 : vector<2x32xf32>
    %187 = math.exp %186 : vector<2x32xf32>
    %cst_85 = arith.constant 1.000000e+00 : f32
    %188 = vector.broadcast %cst_85 : f32 to vector<2x32xf32>
    %189 = arith.addf %188, %187 : vector<2x32xf32>
    %190 = arith.divf %188, %189 : vector<2x32xf32>
    %191 = arith.index_cast %c4_i32 : i32 to index
    %c0_86 = arith.constant 0 : index
    %c0_87 = arith.constant 0 : index
    %192 = vector.load %arg9[%191, %c0_86, %c0_87] : memref<8x2x32xf32, #tpu.memory_space<vmem>>, vector<1x2x32xf32>
    %193 = vector.shape_cast %192 : vector<1x2x32xf32> to vector<2x32xf32>
    %194 = arith.addf %193, %178 : vector<2x32xf32>
    %195 = arith.negf %194 : vector<2x32xf32>
    %196 = math.exp %195 : vector<2x32xf32>
    %cst_88 = arith.constant 1.000000e+00 : f32
    %197 = vector.broadcast %cst_88 : f32 to vector<2x32xf32>
    %198 = arith.addf %197, %196 : vector<2x32xf32>
    %199 = arith.divf %197, %198 : vector<2x32xf32>
    %200 = arith.index_cast %c4_i32 : i32 to index
    %c0_89 = arith.constant 0 : index
    %c0_90 = arith.constant 0 : index
    %201 = vector.load %arg10[%200, %c0_89, %c0_90] : memref<8x2x32xf32, #tpu.memory_space<vmem>>, vector<1x2x32xf32>
    %202 = vector.shape_cast %201 : vector<1x2x32xf32> to vector<2x32xf32>
    %203 = arith.mulf %190, %181 : vector<2x32xf32>
    %204 = arith.addf %202, %203 : vector<2x32xf32>
    %205 = math.tanh %204 : vector<2x32xf32>
    %cst_91 = arith.constant 1.000000e+00 : f32
    %206 = vector.broadcast %cst_91 : f32 to vector<2x32xf32>
    %207 = arith.subf %206, %199 : vector<2x32xf32>
    %208 = arith.mulf %207, %205 : vector<2x32xf32>
    %209 = arith.mulf %199, %171 : vector<2x32xf32>
    %210 = arith.addf %208, %209 : vector<2x32xf32>
    %211 = arith.index_cast %c4_i32 : i32 to index
    %c0_92 = arith.constant 0 : index
    %c0_93 = arith.constant 0 : index
    %212 = vector.load %arg7[%211, %c0_92, %c0_93] : memref<8x2x32xf32, #tpu.memory_space<vmem>>, vector<1x2x32xf32>
    %213 = vector.shape_cast %212 : vector<1x2x32xf32> to vector<2x32xf32>
    %214 = vector.shape_cast %210 : vector<2x32xf32> to vector<1x2x32xf32>
    tpu.vector_store %arg7[%211, %c0_92, %c0_93], %214 {strides = array<i32>} : memref<8x2x32xf32, #tpu.memory_space<vmem>>, vector<1x2x32xf32>,
    %c5_i32 = arith.constant 5 : i32
    %215 = arith.truncf %210 : vector<2x32xf32> to vector<2x32xbf16>
    %cst_94 = arith.constant dense<0.000000e+00> : vector<2x32xf32>
    %216 = tpu.matmul %215, %15, %cst_94 {dimension_numbers = #tpu.dot_dimension_numbers<[1], [0], [0], [1], [0, 0, 1, 1], [], []>} : vector<2x32xbf16>, vector<32x32xbf16>, vector<2x32xf32> -> vector<2x32xf32>
    %cst_95 = arith.constant dense<0.000000e+00> : vector<2x32xf32>
    %217 = tpu.matmul %215, %16, %cst_95 {dimension_numbers = #tpu.dot_dimension_numbers<[1], [0], [0], [1], [0, 0, 1, 1], [], []>} : vector<2x32xbf16>, vector<32x32xbf16>, vector<2x32xf32> -> vector<2x32xf32>
    %cst_96 = arith.constant dense<0.000000e+00> : vector<2x32xf32>
    %218 = tpu.matmul %215, %17, %cst_96 {dimension_numbers = #tpu.dot_dimension_numbers<[1], [0], [0], [1], [0, 0, 1, 1], [], []>} : vector<2x32xbf16>, vector<32x32xbf16>, vector<2x32xf32> -> vector<2x32xf32>
    %219 = vector.broadcast %18 : vector<1x32xf32> to vector<2x32xf32>
    %220 = arith.addf %218, %219 : vector<2x32xf32>
    %221 = arith.index_cast %c5_i32 : i32 to index
    %c0_97 = arith.constant 0 : index
    %c0_98 = arith.constant 0 : index
    %222 = vector.load %arg8[%221, %c0_97, %c0_98] : memref<8x2x32xf32, #tpu.memory_space<vmem>>, vector<1x2x32xf32>
    %223 = vector.shape_cast %222 : vector<1x2x32xf32> to vector<2x32xf32>
    %224 = arith.addf %223, %216 : vector<2x32xf32>
    %225 = arith.negf %224 : vector<2x32xf32>
    %226 = math.exp %225 : vector<2x32xf32>
    %cst_99 = arith.constant 1.000000e+00 : f32
    %227 = vector.broadcast %cst_99 : f32 to vector<2x32xf32>
    %228 = arith.addf %227, %226 : vector<2x32xf32>
    %229 = arith.divf %227, %228 : vector<2x32xf32>
    %230 = arith.index_cast %c5_i32 : i32 to index
    %c0_100 = arith.constant 0 : index
    %c0_101 = arith.constant 0 : index
    %231 = vector.load %arg9[%230, %c0_100, %c0_101] : memref<8x2x32xf32, #tpu.memory_space<vmem>>, vector<1x2x32xf32>
    %232 = vector.shape_cast %231 : vector<1x2x32xf32> to vector<2x32xf32>
    %233 = arith.addf %232, %217 : vector<2x32xf32>
    %234 = arith.negf %233 : vector<2x32xf32>
    %235 = math.exp %234 : vector<2x32xf32>
    %cst_102 = arith.constant 1.000000e+00 : f32
    %236 = vector.broadcast %cst_102 : f32 to vector<2x32xf32>
    %237 = arith.addf %236, %235 : vector<2x32xf32>
    %238 = arith.divf %236, %237 : vector<2x32xf32>
    %239 = arith.index_cast %c5_i32 : i32 to index
    %c0_103 = arith.constant 0 : index
    %c0_104 = arith.constant 0 : index
    %240 = vector.load %arg10[%239, %c0_103, %c0_104] : memref<8x2x32xf32, #tpu.memory_space<vmem>>, vector<1x2x32xf32>
    %241 = vector.shape_cast %240 : vector<1x2x32xf32> to vector<2x32xf32>
    %242 = arith.mulf %229, %220 : vector<2x32xf32>
    %243 = arith.addf %241, %242 : vector<2x32xf32>
    %244 = math.tanh %243 : vector<2x32xf32>
    %cst_105 = arith.constant 1.000000e+00 : f32
    %245 = vector.broadcast %cst_105 : f32 to vector<2x32xf32>
    %246 = arith.subf %245, %238 : vector<2x32xf32>
    %247 = arith.mulf %246, %244 : vector<2x32xf32>
    %248 = arith.mulf %238, %210 : vector<2x32xf32>
    %249 = arith.addf %247, %248 : vector<2x32xf32>
    %250 = arith.index_cast %c5_i32 : i32 to index
    %c0_106 = arith.constant 0 : index
    %c0_107 = arith.constant 0 : index
    %251 = vector.load %arg7[%250, %c0_106, %c0_107] : memref<8x2x32xf32, #tpu.memory_space<vmem>>, vector<1x2x32xf32>
    %252 = vector.shape_cast %251 : vector<1x2x32xf32> to vector<2x32xf32>
    %253 = vector.shape_cast %249 : vector<2x32xf32> to vector<1x2x32xf32>
    tpu.vector_store %arg7[%250, %c0_106, %c0_107], %253 {strides = array<i32>} : memref<8x2x32xf32, #tpu.memory_space<vmem>>, vector<1x2x32xf32>,
    %c6_i32 = arith.constant 6 : i32
    %254 = arith.truncf %249 : vector<2x32xf32> to vector<2x32xbf16>
    %cst_108 = arith.constant dense<0.000000e+00> : vector<2x32xf32>
    %255 = tpu.matmul %254, %15, %cst_108 {dimension_numbers = #tpu.dot_dimension_numbers<[1], [0], [0], [1], [0, 0, 1, 1], [], []>} : vector<2x32xbf16>, vector<32x32xbf16>, vector<2x32xf32> -> vector<2x32xf32>
    %cst_109 = arith.constant dense<0.000000e+00> : vector<2x32xf32>
    %256 = tpu.matmul %254, %16, %cst_109 {dimension_numbers = #tpu.dot_dimension_numbers<[1], [0], [0], [1], [0, 0, 1, 1], [], []>} : vector<2x32xbf16>, vector<32x32xbf16>, vector<2x32xf32> -> vector<2x32xf32>
    %cst_110 = arith.constant dense<0.000000e+00> : vector<2x32xf32>
    %257 = tpu.matmul %254, %17, %cst_110 {dimension_numbers = #tpu.dot_dimension_numbers<[1], [0], [0], [1], [0, 0, 1, 1], [], []>} : vector<2x32xbf16>, vector<32x32xbf16>, vector<2x32xf32> -> vector<2x32xf32>
    %258 = vector.broadcast %18 : vector<1x32xf32> to vector<2x32xf32>
    %259 = arith.addf %257, %258 : vector<2x32xf32>
    %260 = arith.index_cast %c6_i32 : i32 to index
    %c0_111 = arith.constant 0 : index
    %c0_112 = arith.constant 0 : index
    %261 = vector.load %arg8[%260, %c0_111, %c0_112] : memref<8x2x32xf32, #tpu.memory_space<vmem>>, vector<1x2x32xf32>
    %262 = vector.shape_cast %261 : vector<1x2x32xf32> to vector<2x32xf32>
    %263 = arith.addf %262, %255 : vector<2x32xf32>
    %264 = arith.negf %263 : vector<2x32xf32>
    %265 = math.exp %264 : vector<2x32xf32>
    %cst_113 = arith.constant 1.000000e+00 : f32
    %266 = vector.broadcast %cst_113 : f32 to vector<2x32xf32>
    %267 = arith.addf %266, %265 : vector<2x32xf32>
    %268 = arith.divf %266, %267 : vector<2x32xf32>
    %269 = arith.index_cast %c6_i32 : i32 to index
    %c0_114 = arith.constant 0 : index
    %c0_115 = arith.constant 0 : index
    %270 = vector.load %arg9[%269, %c0_114, %c0_115] : memref<8x2x32xf32, #tpu.memory_space<vmem>>, vector<1x2x32xf32>
    %271 = vector.shape_cast %270 : vector<1x2x32xf32> to vector<2x32xf32>
    %272 = arith.addf %271, %256 : vector<2x32xf32>
    %273 = arith.negf %272 : vector<2x32xf32>
    %274 = math.exp %273 : vector<2x32xf32>
    %cst_116 = arith.constant 1.000000e+00 : f32
    %275 = vector.broadcast %cst_116 : f32 to vector<2x32xf32>
    %276 = arith.addf %275, %274 : vector<2x32xf32>
    %277 = arith.divf %275, %276 : vector<2x32xf32>
    %278 = arith.index_cast %c6_i32 : i32 to index
    %c0_117 = arith.constant 0 : index
    %c0_118 = arith.constant 0 : index
    %279 = vector.load %arg10[%278, %c0_117, %c0_118] : memref<8x2x32xf32, #tpu.memory_space<vmem>>, vector<1x2x32xf32>
    %280 = vector.shape_cast %279 : vector<1x2x32xf32> to vector<2x32xf32>
    %281 = arith.mulf %268, %259 : vector<2x32xf32>
    %282 = arith.addf %280, %281 : vector<2x32xf32>
    %283 = math.tanh %282 : vector<2x32xf32>
    %cst_119 = arith.constant 1.000000e+00 : f32
    %284 = vector.broadcast %cst_119 : f32 to vector<2x32xf32>
    %285 = arith.subf %284, %277 : vector<2x32xf32>
    %286 = arith.mulf %285, %283 : vector<2x32xf32>
    %287 = arith.mulf %277, %249 : vector<2x32xf32>
    %288 = arith.addf %286, %287 : vector<2x32xf32>
    %289 = arith.index_cast %c6_i32 : i32 to index
    %c0_120 = arith.constant 0 : index
    %c0_121 = arith.constant 0 : index
    %290 = vector.load %arg7[%289, %c0_120, %c0_121] : memref<8x2x32xf32, #tpu.memory_space<vmem>>, vector<1x2x32xf32>
    %291 = vector.shape_cast %290 : vector<1x2x32xf32> to vector<2x32xf32>
    %292 = vector.shape_cast %288 : vector<2x32xf32> to vector<1x2x32xf32>
    tpu.vector_store %arg7[%289, %c0_120, %c0_121], %292 {strides = array<i32>} : memref<8x2x32xf32, #tpu.memory_space<vmem>>, vector<1x2x32xf32>,
    %c7_i32 = arith.constant 7 : i32
    %293 = arith.truncf %288 : vector<2x32xf32> to vector<2x32xbf16>
    %cst_122 = arith.constant dense<0.000000e+00> : vector<2x32xf32>
    %294 = tpu.matmul %293, %15, %cst_122 {dimension_numbers = #tpu.dot_dimension_numbers<[1], [0], [0], [1], [0, 0, 1, 1], [], []>} : vector<2x32xbf16>, vector<32x32xbf16>, vector<2x32xf32> -> vector<2x32xf32>
    %cst_123 = arith.constant dense<0.000000e+00> : vector<2x32xf32>
    %295 = tpu.matmul %293, %16, %cst_123 {dimension_numbers = #tpu.dot_dimension_numbers<[1], [0], [0], [1], [0, 0, 1, 1], [], []>} : vector<2x32xbf16>, vector<32x32xbf16>, vector<2x32xf32> -> vector<2x32xf32>
    %cst_124 = arith.constant dense<0.000000e+00> : vector<2x32xf32>
    %296 = tpu.matmul %293, %17, %cst_124 {dimension_numbers = #tpu.dot_dimension_numbers<[1], [0], [0], [1], [0, 0, 1, 1], [], []>} : vector<2x32xbf16>, vector<32x32xbf16>, vector<2x32xf32> -> vector<2x32xf32>
    %297 = vector.broadcast %18 : vector<1x32xf32> to vector<2x32xf32>
    %298 = arith.addf %296, %297 : vector<2x32xf32>
    %299 = arith.index_cast %c7_i32 : i32 to index
    %c0_125 = arith.constant 0 : index
    %c0_126 = arith.constant 0 : index
    %300 = vector.load %arg8[%299, %c0_125, %c0_126] : memref<8x2x32xf32, #tpu.memory_space<vmem>>, vector<1x2x32xf32>
    %301 = vector.shape_cast %300 : vector<1x2x32xf32> to vector<2x32xf32>
    %302 = arith.addf %301, %294 : vector<2x32xf32>
    %303 = arith.negf %302 : vector<2x32xf32>
    %304 = math.exp %303 : vector<2x32xf32>
    %cst_127 = arith.constant 1.000000e+00 : f32
    %305 = vector.broadcast %cst_127 : f32 to vector<2x32xf32>
    %306 = arith.addf %305, %304 : vector<2x32xf32>
    %307 = arith.divf %305, %306 : vector<2x32xf32>
    %308 = arith.index_cast %c7_i32 : i32 to index
    %c0_128 = arith.constant 0 : index
    %c0_129 = arith.constant 0 : index
    %309 = vector.load %arg9[%308, %c0_128, %c0_129] : memref<8x2x32xf32, #tpu.memory_space<vmem>>, vector<1x2x32xf32>
    %310 = vector.shape_cast %309 : vector<1x2x32xf32> to vector<2x32xf32>
    %311 = arith.addf %310, %295 : vector<2x32xf32>
    %312 = arith.negf %311 : vector<2x32xf32>
    %313 = math.exp %312 : vector<2x32xf32>
    %cst_130 = arith.constant 1.000000e+00 : f32
    %314 = vector.broadcast %cst_130 : f32 to vector<2x32xf32>
    %315 = arith.addf %314, %313 : vector<2x32xf32>
    %316 = arith.divf %314, %315 : vector<2x32xf32>
    %317 = arith.index_cast %c7_i32 : i32 to index
    %c0_131 = arith.constant 0 : index
    %c0_132 = arith.constant 0 : index
    %318 = vector.load %arg10[%317, %c0_131, %c0_132] : memref<8x2x32xf32, #tpu.memory_space<vmem>>, vector<1x2x32xf32>
    %319 = vector.shape_cast %318 : vector<1x2x32xf32> to vector<2x32xf32>
    %320 = arith.mulf %307, %298 : vector<2x32xf32>
    %321 = arith.addf %319, %320 : vector<2x32xf32>
    %322 = math.tanh %321 : vector<2x32xf32>
    %cst_133 = arith.constant 1.000000e+00 : f32
    %323 = vector.broadcast %cst_133 : f32 to vector<2x32xf32>
    %324 = arith.subf %323, %316 : vector<2x32xf32>
    %325 = arith.mulf %324, %322 : vector<2x32xf32>
    %326 = arith.mulf %316, %288 : vector<2x32xf32>
    %327 = arith.addf %325, %326 : vector<2x32xf32>
    %328 = arith.index_cast %c7_i32 : i32 to index
    %c0_134 = arith.constant 0 : index
    %c0_135 = arith.constant 0 : index
    %329 = vector.load %arg7[%328, %c0_134, %c0_135] : memref<8x2x32xf32, #tpu.memory_space<vmem>>, vector<1x2x32xf32>
    %330 = vector.shape_cast %329 : vector<1x2x32xf32> to vector<2x32xf32>
    %331 = vector.shape_cast %327 : vector<2x32xf32> to vector<1x2x32xf32>
    tpu.vector_store %arg7[%328, %c0_134, %c0_135], %331 {strides = array<i32>} : memref<8x2x32xf32, #tpu.memory_space<vmem>>, vector<1x2x32xf32>,
    %c8_i32 = arith.constant 8 : i32
    return
  }
}

module attributes {stable_mosaic.version = 11 : i64} {
  func.func @_gru_last_layer_head_kernel(%arg0: memref<8x2x32xf32, #tpu.memory_space<vmem>>, %arg1: memref<32x96xbf16, #tpu.memory_space<vmem>>, %arg2: memref<1x96xf32, #tpu.memory_space<vmem>>, %arg3: memref<32x32xbf16, #tpu.memory_space<vmem>>, %arg4: memref<32x32xbf16, #tpu.memory_space<vmem>>, %arg5: memref<32x32xbf16, #tpu.memory_space<vmem>>, %arg6: memref<1x32xf32, #tpu.memory_space<vmem>>, %arg7: memref<1x32xf32, #tpu.memory_space<vmem>>, %arg8: memref<1x32xf32, #tpu.memory_space<vmem>>, %arg9: memref<32x1xf32, #tpu.memory_space<vmem>>, %arg10: memref<1x1xf32, #tpu.memory_space<vmem>>, %arg11: memref<2x1xf32, #tpu.memory_space<vmem>>, %arg12: memref<8x2x32xf32, #tpu.memory_space<vmem>>, %arg13: memref<8x2x32xf32, #tpu.memory_space<vmem>>, %arg14: memref<8x2x32xf32, #tpu.memory_space<vmem>>) attributes {dimension_semantics = [], scalar_prefetch = 0 : i64, scratch_operands = 3 : i64, tpu.core_type = #tpu.core_type<tc>} {
    %c0 = arith.constant 0 : index
    %c0_0 = arith.constant 0 : index
    %c0_1 = arith.constant 0 : index
    %0 = vector.load %arg0[%c0, %c0_0, %c0_1] : memref<8x2x32xf32, #tpu.memory_space<vmem>>, vector<8x2x32xf32>
    %1 = vector.shape_cast %0 : vector<8x2x32xf32> to vector<16x32xf32>
    %2 = arith.truncf %1 : vector<16x32xf32> to vector<16x32xbf16>
    %c0_2 = arith.constant 0 : index
    %c0_3 = arith.constant 0 : index
    %3 = vector.load %arg1[%c0_2, %c0_3] : memref<32x96xbf16, #tpu.memory_space<vmem>>, vector<32x96xbf16>
    %cst = arith.constant dense<0.000000e+00> : vector<16x96xf32>
    %4 = tpu.matmul %2, %3, %cst {dimension_numbers = #tpu.dot_dimension_numbers<[1], [0], [0], [1], [0, 0, 1, 1], [], []>} : vector<16x32xbf16>, vector<32x96xbf16>, vector<16x96xf32> -> vector<16x96xf32>
    %c0_4 = arith.constant 0 : index
    %c0_5 = arith.constant 0 : index
    %5 = vector.load %arg2[%c0_4, %c0_5] : memref<1x96xf32, #tpu.memory_space<vmem>>, vector<1x96xf32>
    %6 = vector.broadcast %5 : vector<1x96xf32> to vector<16x96xf32>
    %7 = arith.addf %4, %6 : vector<16x96xf32>
    %8 = vector.shape_cast %7 : vector<16x96xf32> to vector<8x2x96xf32>
    %9 = vector.extract_strided_slice %8 {offsets = [0, 0, 0], sizes = [8, 2, 32], strides = [1, 1, 1]} : vector<8x2x96xf32> to vector<8x2x32xf32>
    %c0_6 = arith.constant 0 : index
    %c0_7 = arith.constant 0 : index
    %c0_8 = arith.constant 0 : index
    %10 = vector.load %arg12[%c0_6, %c0_7, %c0_8] : memref<8x2x32xf32, #tpu.memory_space<vmem>>, vector<8x2x32xf32>
    tpu.vector_store %arg12[%c0_6, %c0_7, %c0_8], %9 {strides = array<i32>} : memref<8x2x32xf32, #tpu.memory_space<vmem>>, vector<8x2x32xf32>,
    %11 = vector.extract_strided_slice %8 {offsets = [0, 0, 32], sizes = [8, 2, 32], strides = [1, 1, 1]} : vector<8x2x96xf32> to vector<8x2x32xf32>
    %c0_9 = arith.constant 0 : index
    %c0_10 = arith.constant 0 : index
    %c0_11 = arith.constant 0 : index
    %12 = vector.load %arg13[%c0_9, %c0_10, %c0_11] : memref<8x2x32xf32, #tpu.memory_space<vmem>>, vector<8x2x32xf32>
    tpu.vector_store %arg13[%c0_9, %c0_10, %c0_11], %11 {strides = array<i32>} : memref<8x2x32xf32, #tpu.memory_space<vmem>>, vector<8x2x32xf32>,
    %13 = vector.extract_strided_slice %8 {offsets = [0, 0, 64], sizes = [8, 2, 32], strides = [1, 1, 1]} : vector<8x2x96xf32> to vector<8x2x32xf32>
    %c0_12 = arith.constant 0 : index
    %c0_13 = arith.constant 0 : index
    %c0_14 = arith.constant 0 : index
    %14 = vector.load %arg14[%c0_12, %c0_13, %c0_14] : memref<8x2x32xf32, #tpu.memory_space<vmem>>, vector<8x2x32xf32>
    tpu.vector_store %arg14[%c0_12, %c0_13, %c0_14], %13 {strides = array<i32>} : memref<8x2x32xf32, #tpu.memory_space<vmem>>, vector<8x2x32xf32>,
    %c0_15 = arith.constant 0 : index
    %c0_16 = arith.constant 0 : index
    %15 = vector.load %arg3[%c0_15, %c0_16] : memref<32x32xbf16, #tpu.memory_space<vmem>>, vector<32x32xbf16>
    %c0_17 = arith.constant 0 : index
    %c0_18 = arith.constant 0 : index
    %16 = vector.load %arg4[%c0_17, %c0_18] : memref<32x32xbf16, #tpu.memory_space<vmem>>, vector<32x32xbf16>
    %c0_19 = arith.constant 0 : index
    %c0_20 = arith.constant 0 : index
    %17 = vector.load %arg5[%c0_19, %c0_20] : memref<32x32xbf16, #tpu.memory_space<vmem>>, vector<32x32xbf16>
    %c0_21 = arith.constant 0 : index
    %c0_22 = arith.constant 0 : index
    %18 = vector.load %arg6[%c0_21, %c0_22] : memref<1x32xf32, #tpu.memory_space<vmem>>, vector<1x32xf32>
    %cst_23 = arith.constant 0.000000e+00 : f32
    %19 = vector.broadcast %cst_23 : f32 to vector<2x32xf32>
    %c0_i32 = arith.constant 0 : i32
    %20 = arith.truncf %19 : vector<2x32xf32> to vector<2x32xbf16>
    %cst_24 = arith.constant dense<0.000000e+00> : vector<2x32xf32>
    %21 = tpu.matmul %20, %15, %cst_24 {dimension_numbers = #tpu.dot_dimension_numbers<[1], [0], [0], [1], [0, 0, 1, 1], [], []>} : vector<2x32xbf16>, vector<32x32xbf16>, vector<2x32xf32> -> vector<2x32xf32>
    %cst_25 = arith.constant dense<0.000000e+00> : vector<2x32xf32>
    %22 = tpu.matmul %20, %16, %cst_25 {dimension_numbers = #tpu.dot_dimension_numbers<[1], [0], [0], [1], [0, 0, 1, 1], [], []>} : vector<2x32xbf16>, vector<32x32xbf16>, vector<2x32xf32> -> vector<2x32xf32>
    %cst_26 = arith.constant dense<0.000000e+00> : vector<2x32xf32>
    %23 = tpu.matmul %20, %17, %cst_26 {dimension_numbers = #tpu.dot_dimension_numbers<[1], [0], [0], [1], [0, 0, 1, 1], [], []>} : vector<2x32xbf16>, vector<32x32xbf16>, vector<2x32xf32> -> vector<2x32xf32>
    %24 = vector.broadcast %18 : vector<1x32xf32> to vector<2x32xf32>
    %25 = arith.addf %23, %24 : vector<2x32xf32>
    %26 = arith.index_cast %c0_i32 : i32 to index
    %c0_27 = arith.constant 0 : index
    %c0_28 = arith.constant 0 : index
    %27 = vector.load %arg12[%26, %c0_27, %c0_28] : memref<8x2x32xf32, #tpu.memory_space<vmem>>, vector<1x2x32xf32>
    %28 = vector.shape_cast %27 : vector<1x2x32xf32> to vector<2x32xf32>
    %29 = arith.addf %28, %21 : vector<2x32xf32>
    %30 = arith.negf %29 : vector<2x32xf32>
    %31 = math.exp %30 : vector<2x32xf32>
    %cst_29 = arith.constant 1.000000e+00 : f32
    %32 = vector.broadcast %cst_29 : f32 to vector<2x32xf32>
    %33 = arith.addf %32, %31 : vector<2x32xf32>
    %34 = arith.divf %32, %33 : vector<2x32xf32>
    %35 = arith.index_cast %c0_i32 : i32 to index
    %c0_30 = arith.constant 0 : index
    %c0_31 = arith.constant 0 : index
    %36 = vector.load %arg13[%35, %c0_30, %c0_31] : memref<8x2x32xf32, #tpu.memory_space<vmem>>, vector<1x2x32xf32>
    %37 = vector.shape_cast %36 : vector<1x2x32xf32> to vector<2x32xf32>
    %38 = arith.addf %37, %22 : vector<2x32xf32>
    %39 = arith.negf %38 : vector<2x32xf32>
    %40 = math.exp %39 : vector<2x32xf32>
    %cst_32 = arith.constant 1.000000e+00 : f32
    %41 = vector.broadcast %cst_32 : f32 to vector<2x32xf32>
    %42 = arith.addf %41, %40 : vector<2x32xf32>
    %43 = arith.divf %41, %42 : vector<2x32xf32>
    %44 = arith.index_cast %c0_i32 : i32 to index
    %c0_33 = arith.constant 0 : index
    %c0_34 = arith.constant 0 : index
    %45 = vector.load %arg14[%44, %c0_33, %c0_34] : memref<8x2x32xf32, #tpu.memory_space<vmem>>, vector<1x2x32xf32>
    %46 = vector.shape_cast %45 : vector<1x2x32xf32> to vector<2x32xf32>
    %47 = arith.mulf %34, %25 : vector<2x32xf32>
    %48 = arith.addf %46, %47 : vector<2x32xf32>
    %49 = math.tanh %48 : vector<2x32xf32>
    %cst_35 = arith.constant 1.000000e+00 : f32
    %50 = vector.broadcast %cst_35 : f32 to vector<2x32xf32>
    %51 = arith.subf %50, %43 : vector<2x32xf32>
    %52 = arith.mulf %51, %49 : vector<2x32xf32>
    %53 = arith.mulf %43, %19 : vector<2x32xf32>
    %54 = arith.addf %52, %53 : vector<2x32xf32>
    %c1_i32 = arith.constant 1 : i32
    %55 = arith.truncf %54 : vector<2x32xf32> to vector<2x32xbf16>
    %cst_36 = arith.constant dense<0.000000e+00> : vector<2x32xf32>
    %56 = tpu.matmul %55, %15, %cst_36 {dimension_numbers = #tpu.dot_dimension_numbers<[1], [0], [0], [1], [0, 0, 1, 1], [], []>} : vector<2x32xbf16>, vector<32x32xbf16>, vector<2x32xf32> -> vector<2x32xf32>
    %cst_37 = arith.constant dense<0.000000e+00> : vector<2x32xf32>
    %57 = tpu.matmul %55, %16, %cst_37 {dimension_numbers = #tpu.dot_dimension_numbers<[1], [0], [0], [1], [0, 0, 1, 1], [], []>} : vector<2x32xbf16>, vector<32x32xbf16>, vector<2x32xf32> -> vector<2x32xf32>
    %cst_38 = arith.constant dense<0.000000e+00> : vector<2x32xf32>
    %58 = tpu.matmul %55, %17, %cst_38 {dimension_numbers = #tpu.dot_dimension_numbers<[1], [0], [0], [1], [0, 0, 1, 1], [], []>} : vector<2x32xbf16>, vector<32x32xbf16>, vector<2x32xf32> -> vector<2x32xf32>
    %59 = vector.broadcast %18 : vector<1x32xf32> to vector<2x32xf32>
    %60 = arith.addf %58, %59 : vector<2x32xf32>
    %61 = arith.index_cast %c1_i32 : i32 to index
    %c0_39 = arith.constant 0 : index
    %c0_40 = arith.constant 0 : index
    %62 = vector.load %arg12[%61, %c0_39, %c0_40] : memref<8x2x32xf32, #tpu.memory_space<vmem>>, vector<1x2x32xf32>
    %63 = vector.shape_cast %62 : vector<1x2x32xf32> to vector<2x32xf32>
    %64 = arith.addf %63, %56 : vector<2x32xf32>
    %65 = arith.negf %64 : vector<2x32xf32>
    %66 = math.exp %65 : vector<2x32xf32>
    %cst_41 = arith.constant 1.000000e+00 : f32
    %67 = vector.broadcast %cst_41 : f32 to vector<2x32xf32>
    %68 = arith.addf %67, %66 : vector<2x32xf32>
    %69 = arith.divf %67, %68 : vector<2x32xf32>
    %70 = arith.index_cast %c1_i32 : i32 to index
    %c0_42 = arith.constant 0 : index
    %c0_43 = arith.constant 0 : index
    %71 = vector.load %arg13[%70, %c0_42, %c0_43] : memref<8x2x32xf32, #tpu.memory_space<vmem>>, vector<1x2x32xf32>
    %72 = vector.shape_cast %71 : vector<1x2x32xf32> to vector<2x32xf32>
    %73 = arith.addf %72, %57 : vector<2x32xf32>
    %74 = arith.negf %73 : vector<2x32xf32>
    %75 = math.exp %74 : vector<2x32xf32>
    %cst_44 = arith.constant 1.000000e+00 : f32
    %76 = vector.broadcast %cst_44 : f32 to vector<2x32xf32>
    %77 = arith.addf %76, %75 : vector<2x32xf32>
    %78 = arith.divf %76, %77 : vector<2x32xf32>
    %79 = arith.index_cast %c1_i32 : i32 to index
    %c0_45 = arith.constant 0 : index
    %c0_46 = arith.constant 0 : index
    %80 = vector.load %arg14[%79, %c0_45, %c0_46] : memref<8x2x32xf32, #tpu.memory_space<vmem>>, vector<1x2x32xf32>
    %81 = vector.shape_cast %80 : vector<1x2x32xf32> to vector<2x32xf32>
    %82 = arith.mulf %69, %60 : vector<2x32xf32>
    %83 = arith.addf %81, %82 : vector<2x32xf32>
    %84 = math.tanh %83 : vector<2x32xf32>
    %cst_47 = arith.constant 1.000000e+00 : f32
    %85 = vector.broadcast %cst_47 : f32 to vector<2x32xf32>
    %86 = arith.subf %85, %78 : vector<2x32xf32>
    %87 = arith.mulf %86, %84 : vector<2x32xf32>
    %88 = arith.mulf %78, %54 : vector<2x32xf32>
    %89 = arith.addf %87, %88 : vector<2x32xf32>
    %c2_i32 = arith.constant 2 : i32
    %90 = arith.truncf %89 : vector<2x32xf32> to vector<2x32xbf16>
    %cst_48 = arith.constant dense<0.000000e+00> : vector<2x32xf32>
    %91 = tpu.matmul %90, %15, %cst_48 {dimension_numbers = #tpu.dot_dimension_numbers<[1], [0], [0], [1], [0, 0, 1, 1], [], []>} : vector<2x32xbf16>, vector<32x32xbf16>, vector<2x32xf32> -> vector<2x32xf32>
    %cst_49 = arith.constant dense<0.000000e+00> : vector<2x32xf32>
    %92 = tpu.matmul %90, %16, %cst_49 {dimension_numbers = #tpu.dot_dimension_numbers<[1], [0], [0], [1], [0, 0, 1, 1], [], []>} : vector<2x32xbf16>, vector<32x32xbf16>, vector<2x32xf32> -> vector<2x32xf32>
    %cst_50 = arith.constant dense<0.000000e+00> : vector<2x32xf32>
    %93 = tpu.matmul %90, %17, %cst_50 {dimension_numbers = #tpu.dot_dimension_numbers<[1], [0], [0], [1], [0, 0, 1, 1], [], []>} : vector<2x32xbf16>, vector<32x32xbf16>, vector<2x32xf32> -> vector<2x32xf32>
    %94 = vector.broadcast %18 : vector<1x32xf32> to vector<2x32xf32>
    %95 = arith.addf %93, %94 : vector<2x32xf32>
    %96 = arith.index_cast %c2_i32 : i32 to index
    %c0_51 = arith.constant 0 : index
    %c0_52 = arith.constant 0 : index
    %97 = vector.load %arg12[%96, %c0_51, %c0_52] : memref<8x2x32xf32, #tpu.memory_space<vmem>>, vector<1x2x32xf32>
    %98 = vector.shape_cast %97 : vector<1x2x32xf32> to vector<2x32xf32>
    %99 = arith.addf %98, %91 : vector<2x32xf32>
    %100 = arith.negf %99 : vector<2x32xf32>
    %101 = math.exp %100 : vector<2x32xf32>
    %cst_53 = arith.constant 1.000000e+00 : f32
    %102 = vector.broadcast %cst_53 : f32 to vector<2x32xf32>
    %103 = arith.addf %102, %101 : vector<2x32xf32>
    %104 = arith.divf %102, %103 : vector<2x32xf32>
    %105 = arith.index_cast %c2_i32 : i32 to index
    %c0_54 = arith.constant 0 : index
    %c0_55 = arith.constant 0 : index
    %106 = vector.load %arg13[%105, %c0_54, %c0_55] : memref<8x2x32xf32, #tpu.memory_space<vmem>>, vector<1x2x32xf32>
    %107 = vector.shape_cast %106 : vector<1x2x32xf32> to vector<2x32xf32>
    %108 = arith.addf %107, %92 : vector<2x32xf32>
    %109 = arith.negf %108 : vector<2x32xf32>
    %110 = math.exp %109 : vector<2x32xf32>
    %cst_56 = arith.constant 1.000000e+00 : f32
    %111 = vector.broadcast %cst_56 : f32 to vector<2x32xf32>
    %112 = arith.addf %111, %110 : vector<2x32xf32>
    %113 = arith.divf %111, %112 : vector<2x32xf32>
    %114 = arith.index_cast %c2_i32 : i32 to index
    %c0_57 = arith.constant 0 : index
    %c0_58 = arith.constant 0 : index
    %115 = vector.load %arg14[%114, %c0_57, %c0_58] : memref<8x2x32xf32, #tpu.memory_space<vmem>>, vector<1x2x32xf32>
    %116 = vector.shape_cast %115 : vector<1x2x32xf32> to vector<2x32xf32>
    %117 = arith.mulf %104, %95 : vector<2x32xf32>
    %118 = arith.addf %116, %117 : vector<2x32xf32>
    %119 = math.tanh %118 : vector<2x32xf32>
    %cst_59 = arith.constant 1.000000e+00 : f32
    %120 = vector.broadcast %cst_59 : f32 to vector<2x32xf32>
    %121 = arith.subf %120, %113 : vector<2x32xf32>
    %122 = arith.mulf %121, %119 : vector<2x32xf32>
    %123 = arith.mulf %113, %89 : vector<2x32xf32>
    %124 = arith.addf %122, %123 : vector<2x32xf32>
    %c3_i32 = arith.constant 3 : i32
    %125 = arith.truncf %124 : vector<2x32xf32> to vector<2x32xbf16>
    %cst_60 = arith.constant dense<0.000000e+00> : vector<2x32xf32>
    %126 = tpu.matmul %125, %15, %cst_60 {dimension_numbers = #tpu.dot_dimension_numbers<[1], [0], [0], [1], [0, 0, 1, 1], [], []>} : vector<2x32xbf16>, vector<32x32xbf16>, vector<2x32xf32> -> vector<2x32xf32>
    %cst_61 = arith.constant dense<0.000000e+00> : vector<2x32xf32>
    %127 = tpu.matmul %125, %16, %cst_61 {dimension_numbers = #tpu.dot_dimension_numbers<[1], [0], [0], [1], [0, 0, 1, 1], [], []>} : vector<2x32xbf16>, vector<32x32xbf16>, vector<2x32xf32> -> vector<2x32xf32>
    %cst_62 = arith.constant dense<0.000000e+00> : vector<2x32xf32>
    %128 = tpu.matmul %125, %17, %cst_62 {dimension_numbers = #tpu.dot_dimension_numbers<[1], [0], [0], [1], [0, 0, 1, 1], [], []>} : vector<2x32xbf16>, vector<32x32xbf16>, vector<2x32xf32> -> vector<2x32xf32>
    %129 = vector.broadcast %18 : vector<1x32xf32> to vector<2x32xf32>
    %130 = arith.addf %128, %129 : vector<2x32xf32>
    %131 = arith.index_cast %c3_i32 : i32 to index
    %c0_63 = arith.constant 0 : index
    %c0_64 = arith.constant 0 : index
    %132 = vector.load %arg12[%131, %c0_63, %c0_64] : memref<8x2x32xf32, #tpu.memory_space<vmem>>, vector<1x2x32xf32>
    %133 = vector.shape_cast %132 : vector<1x2x32xf32> to vector<2x32xf32>
    %134 = arith.addf %133, %126 : vector<2x32xf32>
    %135 = arith.negf %134 : vector<2x32xf32>
    %136 = math.exp %135 : vector<2x32xf32>
    %cst_65 = arith.constant 1.000000e+00 : f32
    %137 = vector.broadcast %cst_65 : f32 to vector<2x32xf32>
    %138 = arith.addf %137, %136 : vector<2x32xf32>
    %139 = arith.divf %137, %138 : vector<2x32xf32>
    %140 = arith.index_cast %c3_i32 : i32 to index
    %c0_66 = arith.constant 0 : index
    %c0_67 = arith.constant 0 : index
    %141 = vector.load %arg13[%140, %c0_66, %c0_67] : memref<8x2x32xf32, #tpu.memory_space<vmem>>, vector<1x2x32xf32>
    %142 = vector.shape_cast %141 : vector<1x2x32xf32> to vector<2x32xf32>
    %143 = arith.addf %142, %127 : vector<2x32xf32>
    %144 = arith.negf %143 : vector<2x32xf32>
    %145 = math.exp %144 : vector<2x32xf32>
    %cst_68 = arith.constant 1.000000e+00 : f32
    %146 = vector.broadcast %cst_68 : f32 to vector<2x32xf32>
    %147 = arith.addf %146, %145 : vector<2x32xf32>
    %148 = arith.divf %146, %147 : vector<2x32xf32>
    %149 = arith.index_cast %c3_i32 : i32 to index
    %c0_69 = arith.constant 0 : index
    %c0_70 = arith.constant 0 : index
    %150 = vector.load %arg14[%149, %c0_69, %c0_70] : memref<8x2x32xf32, #tpu.memory_space<vmem>>, vector<1x2x32xf32>
    %151 = vector.shape_cast %150 : vector<1x2x32xf32> to vector<2x32xf32>
    %152 = arith.mulf %139, %130 : vector<2x32xf32>
    %153 = arith.addf %151, %152 : vector<2x32xf32>
    %154 = math.tanh %153 : vector<2x32xf32>
    %cst_71 = arith.constant 1.000000e+00 : f32
    %155 = vector.broadcast %cst_71 : f32 to vector<2x32xf32>
    %156 = arith.subf %155, %148 : vector<2x32xf32>
    %157 = arith.mulf %156, %154 : vector<2x32xf32>
    %158 = arith.mulf %148, %124 : vector<2x32xf32>
    %159 = arith.addf %157, %158 : vector<2x32xf32>
    %c4_i32 = arith.constant 4 : i32
    %160 = arith.truncf %159 : vector<2x32xf32> to vector<2x32xbf16>
    %cst_72 = arith.constant dense<0.000000e+00> : vector<2x32xf32>
    %161 = tpu.matmul %160, %15, %cst_72 {dimension_numbers = #tpu.dot_dimension_numbers<[1], [0], [0], [1], [0, 0, 1, 1], [], []>} : vector<2x32xbf16>, vector<32x32xbf16>, vector<2x32xf32> -> vector<2x32xf32>
    %cst_73 = arith.constant dense<0.000000e+00> : vector<2x32xf32>
    %162 = tpu.matmul %160, %16, %cst_73 {dimension_numbers = #tpu.dot_dimension_numbers<[1], [0], [0], [1], [0, 0, 1, 1], [], []>} : vector<2x32xbf16>, vector<32x32xbf16>, vector<2x32xf32> -> vector<2x32xf32>
    %cst_74 = arith.constant dense<0.000000e+00> : vector<2x32xf32>
    %163 = tpu.matmul %160, %17, %cst_74 {dimension_numbers = #tpu.dot_dimension_numbers<[1], [0], [0], [1], [0, 0, 1, 1], [], []>} : vector<2x32xbf16>, vector<32x32xbf16>, vector<2x32xf32> -> vector<2x32xf32>
    %164 = vector.broadcast %18 : vector<1x32xf32> to vector<2x32xf32>
    %165 = arith.addf %163, %164 : vector<2x32xf32>
    %166 = arith.index_cast %c4_i32 : i32 to index
    %c0_75 = arith.constant 0 : index
    %c0_76 = arith.constant 0 : index
    %167 = vector.load %arg12[%166, %c0_75, %c0_76] : memref<8x2x32xf32, #tpu.memory_space<vmem>>, vector<1x2x32xf32>
    %168 = vector.shape_cast %167 : vector<1x2x32xf32> to vector<2x32xf32>
    %169 = arith.addf %168, %161 : vector<2x32xf32>
    %170 = arith.negf %169 : vector<2x32xf32>
    %171 = math.exp %170 : vector<2x32xf32>
    %cst_77 = arith.constant 1.000000e+00 : f32
    %172 = vector.broadcast %cst_77 : f32 to vector<2x32xf32>
    %173 = arith.addf %172, %171 : vector<2x32xf32>
    %174 = arith.divf %172, %173 : vector<2x32xf32>
    %175 = arith.index_cast %c4_i32 : i32 to index
    %c0_78 = arith.constant 0 : index
    %c0_79 = arith.constant 0 : index
    %176 = vector.load %arg13[%175, %c0_78, %c0_79] : memref<8x2x32xf32, #tpu.memory_space<vmem>>, vector<1x2x32xf32>
    %177 = vector.shape_cast %176 : vector<1x2x32xf32> to vector<2x32xf32>
    %178 = arith.addf %177, %162 : vector<2x32xf32>
    %179 = arith.negf %178 : vector<2x32xf32>
    %180 = math.exp %179 : vector<2x32xf32>
    %cst_80 = arith.constant 1.000000e+00 : f32
    %181 = vector.broadcast %cst_80 : f32 to vector<2x32xf32>
    %182 = arith.addf %181, %180 : vector<2x32xf32>
    %183 = arith.divf %181, %182 : vector<2x32xf32>
    %184 = arith.index_cast %c4_i32 : i32 to index
    %c0_81 = arith.constant 0 : index
    %c0_82 = arith.constant 0 : index
    %185 = vector.load %arg14[%184, %c0_81, %c0_82] : memref<8x2x32xf32, #tpu.memory_space<vmem>>, vector<1x2x32xf32>
    %186 = vector.shape_cast %185 : vector<1x2x32xf32> to vector<2x32xf32>
    %187 = arith.mulf %174, %165 : vector<2x32xf32>
    %188 = arith.addf %186, %187 : vector<2x32xf32>
    %189 = math.tanh %188 : vector<2x32xf32>
    %cst_83 = arith.constant 1.000000e+00 : f32
    %190 = vector.broadcast %cst_83 : f32 to vector<2x32xf32>
    %191 = arith.subf %190, %183 : vector<2x32xf32>
    %192 = arith.mulf %191, %189 : vector<2x32xf32>
    %193 = arith.mulf %183, %159 : vector<2x32xf32>
    %194 = arith.addf %192, %193 : vector<2x32xf32>
    %c5_i32 = arith.constant 5 : i32
    %195 = arith.truncf %194 : vector<2x32xf32> to vector<2x32xbf16>
    %cst_84 = arith.constant dense<0.000000e+00> : vector<2x32xf32>
    %196 = tpu.matmul %195, %15, %cst_84 {dimension_numbers = #tpu.dot_dimension_numbers<[1], [0], [0], [1], [0, 0, 1, 1], [], []>} : vector<2x32xbf16>, vector<32x32xbf16>, vector<2x32xf32> -> vector<2x32xf32>
    %cst_85 = arith.constant dense<0.000000e+00> : vector<2x32xf32>
    %197 = tpu.matmul %195, %16, %cst_85 {dimension_numbers = #tpu.dot_dimension_numbers<[1], [0], [0], [1], [0, 0, 1, 1], [], []>} : vector<2x32xbf16>, vector<32x32xbf16>, vector<2x32xf32> -> vector<2x32xf32>
    %cst_86 = arith.constant dense<0.000000e+00> : vector<2x32xf32>
    %198 = tpu.matmul %195, %17, %cst_86 {dimension_numbers = #tpu.dot_dimension_numbers<[1], [0], [0], [1], [0, 0, 1, 1], [], []>} : vector<2x32xbf16>, vector<32x32xbf16>, vector<2x32xf32> -> vector<2x32xf32>
    %199 = vector.broadcast %18 : vector<1x32xf32> to vector<2x32xf32>
    %200 = arith.addf %198, %199 : vector<2x32xf32>
    %201 = arith.index_cast %c5_i32 : i32 to index
    %c0_87 = arith.constant 0 : index
    %c0_88 = arith.constant 0 : index
    %202 = vector.load %arg12[%201, %c0_87, %c0_88] : memref<8x2x32xf32, #tpu.memory_space<vmem>>, vector<1x2x32xf32>
    %203 = vector.shape_cast %202 : vector<1x2x32xf32> to vector<2x32xf32>
    %204 = arith.addf %203, %196 : vector<2x32xf32>
    %205 = arith.negf %204 : vector<2x32xf32>
    %206 = math.exp %205 : vector<2x32xf32>
    %cst_89 = arith.constant 1.000000e+00 : f32
    %207 = vector.broadcast %cst_89 : f32 to vector<2x32xf32>
    %208 = arith.addf %207, %206 : vector<2x32xf32>
    %209 = arith.divf %207, %208 : vector<2x32xf32>
    %210 = arith.index_cast %c5_i32 : i32 to index
    %c0_90 = arith.constant 0 : index
    %c0_91 = arith.constant 0 : index
    %211 = vector.load %arg13[%210, %c0_90, %c0_91] : memref<8x2x32xf32, #tpu.memory_space<vmem>>, vector<1x2x32xf32>
    %212 = vector.shape_cast %211 : vector<1x2x32xf32> to vector<2x32xf32>
    %213 = arith.addf %212, %197 : vector<2x32xf32>
    %214 = arith.negf %213 : vector<2x32xf32>
    %215 = math.exp %214 : vector<2x32xf32>
    %cst_92 = arith.constant 1.000000e+00 : f32
    %216 = vector.broadcast %cst_92 : f32 to vector<2x32xf32>
    %217 = arith.addf %216, %215 : vector<2x32xf32>
    %218 = arith.divf %216, %217 : vector<2x32xf32>
    %219 = arith.index_cast %c5_i32 : i32 to index
    %c0_93 = arith.constant 0 : index
    %c0_94 = arith.constant 0 : index
    %220 = vector.load %arg14[%219, %c0_93, %c0_94] : memref<8x2x32xf32, #tpu.memory_space<vmem>>, vector<1x2x32xf32>
    %221 = vector.shape_cast %220 : vector<1x2x32xf32> to vector<2x32xf32>
    %222 = arith.mulf %209, %200 : vector<2x32xf32>
    %223 = arith.addf %221, %222 : vector<2x32xf32>
    %224 = math.tanh %223 : vector<2x32xf32>
    %cst_95 = arith.constant 1.000000e+00 : f32
    %225 = vector.broadcast %cst_95 : f32 to vector<2x32xf32>
    %226 = arith.subf %225, %218 : vector<2x32xf32>
    %227 = arith.mulf %226, %224 : vector<2x32xf32>
    %228 = arith.mulf %218, %194 : vector<2x32xf32>
    %229 = arith.addf %227, %228 : vector<2x32xf32>
    %c6_i32 = arith.constant 6 : i32
    %230 = arith.truncf %229 : vector<2x32xf32> to vector<2x32xbf16>
    %cst_96 = arith.constant dense<0.000000e+00> : vector<2x32xf32>
    %231 = tpu.matmul %230, %15, %cst_96 {dimension_numbers = #tpu.dot_dimension_numbers<[1], [0], [0], [1], [0, 0, 1, 1], [], []>} : vector<2x32xbf16>, vector<32x32xbf16>, vector<2x32xf32> -> vector<2x32xf32>
    %cst_97 = arith.constant dense<0.000000e+00> : vector<2x32xf32>
    %232 = tpu.matmul %230, %16, %cst_97 {dimension_numbers = #tpu.dot_dimension_numbers<[1], [0], [0], [1], [0, 0, 1, 1], [], []>} : vector<2x32xbf16>, vector<32x32xbf16>, vector<2x32xf32> -> vector<2x32xf32>
    %cst_98 = arith.constant dense<0.000000e+00> : vector<2x32xf32>
    %233 = tpu.matmul %230, %17, %cst_98 {dimension_numbers = #tpu.dot_dimension_numbers<[1], [0], [0], [1], [0, 0, 1, 1], [], []>} : vector<2x32xbf16>, vector<32x32xbf16>, vector<2x32xf32> -> vector<2x32xf32>
    %234 = vector.broadcast %18 : vector<1x32xf32> to vector<2x32xf32>
    %235 = arith.addf %233, %234 : vector<2x32xf32>
    %236 = arith.index_cast %c6_i32 : i32 to index
    %c0_99 = arith.constant 0 : index
    %c0_100 = arith.constant 0 : index
    %237 = vector.load %arg12[%236, %c0_99, %c0_100] : memref<8x2x32xf32, #tpu.memory_space<vmem>>, vector<1x2x32xf32>
    %238 = vector.shape_cast %237 : vector<1x2x32xf32> to vector<2x32xf32>
    %239 = arith.addf %238, %231 : vector<2x32xf32>
    %240 = arith.negf %239 : vector<2x32xf32>
    %241 = math.exp %240 : vector<2x32xf32>
    %cst_101 = arith.constant 1.000000e+00 : f32
    %242 = vector.broadcast %cst_101 : f32 to vector<2x32xf32>
    %243 = arith.addf %242, %241 : vector<2x32xf32>
    %244 = arith.divf %242, %243 : vector<2x32xf32>
    %245 = arith.index_cast %c6_i32 : i32 to index
    %c0_102 = arith.constant 0 : index
    %c0_103 = arith.constant 0 : index
    %246 = vector.load %arg13[%245, %c0_102, %c0_103] : memref<8x2x32xf32, #tpu.memory_space<vmem>>, vector<1x2x32xf32>
    %247 = vector.shape_cast %246 : vector<1x2x32xf32> to vector<2x32xf32>
    %248 = arith.addf %247, %232 : vector<2x32xf32>
    %249 = arith.negf %248 : vector<2x32xf32>
    %250 = math.exp %249 : vector<2x32xf32>
    %cst_104 = arith.constant 1.000000e+00 : f32
    %251 = vector.broadcast %cst_104 : f32 to vector<2x32xf32>
    %252 = arith.addf %251, %250 : vector<2x32xf32>
    %253 = arith.divf %251, %252 : vector<2x32xf32>
    %254 = arith.index_cast %c6_i32 : i32 to index
    %c0_105 = arith.constant 0 : index
    %c0_106 = arith.constant 0 : index
    %255 = vector.load %arg14[%254, %c0_105, %c0_106] : memref<8x2x32xf32, #tpu.memory_space<vmem>>, vector<1x2x32xf32>
    %256 = vector.shape_cast %255 : vector<1x2x32xf32> to vector<2x32xf32>
    %257 = arith.mulf %244, %235 : vector<2x32xf32>
    %258 = arith.addf %256, %257 : vector<2x32xf32>
    %259 = math.tanh %258 : vector<2x32xf32>
    %cst_107 = arith.constant 1.000000e+00 : f32
    %260 = vector.broadcast %cst_107 : f32 to vector<2x32xf32>
    %261 = arith.subf %260, %253 : vector<2x32xf32>
    %262 = arith.mulf %261, %259 : vector<2x32xf32>
    %263 = arith.mulf %253, %229 : vector<2x32xf32>
    %264 = arith.addf %262, %263 : vector<2x32xf32>
    %c7_i32 = arith.constant 7 : i32
    %265 = arith.truncf %264 : vector<2x32xf32> to vector<2x32xbf16>
    %cst_108 = arith.constant dense<0.000000e+00> : vector<2x32xf32>
    %266 = tpu.matmul %265, %15, %cst_108 {dimension_numbers = #tpu.dot_dimension_numbers<[1], [0], [0], [1], [0, 0, 1, 1], [], []>} : vector<2x32xbf16>, vector<32x32xbf16>, vector<2x32xf32> -> vector<2x32xf32>
    %cst_109 = arith.constant dense<0.000000e+00> : vector<2x32xf32>
    %267 = tpu.matmul %265, %16, %cst_109 {dimension_numbers = #tpu.dot_dimension_numbers<[1], [0], [0], [1], [0, 0, 1, 1], [], []>} : vector<2x32xbf16>, vector<32x32xbf16>, vector<2x32xf32> -> vector<2x32xf32>
    %cst_110 = arith.constant dense<0.000000e+00> : vector<2x32xf32>
    %268 = tpu.matmul %265, %17, %cst_110 {dimension_numbers = #tpu.dot_dimension_numbers<[1], [0], [0], [1], [0, 0, 1, 1], [], []>} : vector<2x32xbf16>, vector<32x32xbf16>, vector<2x32xf32> -> vector<2x32xf32>
    %269 = vector.broadcast %18 : vector<1x32xf32> to vector<2x32xf32>
    %270 = arith.addf %268, %269 : vector<2x32xf32>
    %271 = arith.index_cast %c7_i32 : i32 to index
    %c0_111 = arith.constant 0 : index
    %c0_112 = arith.constant 0 : index
    %272 = vector.load %arg12[%271, %c0_111, %c0_112] : memref<8x2x32xf32, #tpu.memory_space<vmem>>, vector<1x2x32xf32>
    %273 = vector.shape_cast %272 : vector<1x2x32xf32> to vector<2x32xf32>
    %274 = arith.addf %273, %266 : vector<2x32xf32>
    %275 = arith.negf %274 : vector<2x32xf32>
    %276 = math.exp %275 : vector<2x32xf32>
    %cst_113 = arith.constant 1.000000e+00 : f32
    %277 = vector.broadcast %cst_113 : f32 to vector<2x32xf32>
    %278 = arith.addf %277, %276 : vector<2x32xf32>
    %279 = arith.divf %277, %278 : vector<2x32xf32>
    %280 = arith.index_cast %c7_i32 : i32 to index
    %c0_114 = arith.constant 0 : index
    %c0_115 = arith.constant 0 : index
    %281 = vector.load %arg13[%280, %c0_114, %c0_115] : memref<8x2x32xf32, #tpu.memory_space<vmem>>, vector<1x2x32xf32>
    %282 = vector.shape_cast %281 : vector<1x2x32xf32> to vector<2x32xf32>
    %283 = arith.addf %282, %267 : vector<2x32xf32>
    %284 = arith.negf %283 : vector<2x32xf32>
    %285 = math.exp %284 : vector<2x32xf32>
    %cst_116 = arith.constant 1.000000e+00 : f32
    %286 = vector.broadcast %cst_116 : f32 to vector<2x32xf32>
    %287 = arith.addf %286, %285 : vector<2x32xf32>
    %288 = arith.divf %286, %287 : vector<2x32xf32>
    %289 = arith.index_cast %c7_i32 : i32 to index
    %c0_117 = arith.constant 0 : index
    %c0_118 = arith.constant 0 : index
    %290 = vector.load %arg14[%289, %c0_117, %c0_118] : memref<8x2x32xf32, #tpu.memory_space<vmem>>, vector<1x2x32xf32>
    %291 = vector.shape_cast %290 : vector<1x2x32xf32> to vector<2x32xf32>
    %292 = arith.mulf %279, %270 : vector<2x32xf32>
    %293 = arith.addf %291, %292 : vector<2x32xf32>
    %294 = math.tanh %293 : vector<2x32xf32>
    %cst_119 = arith.constant 1.000000e+00 : f32
    %295 = vector.broadcast %cst_119 : f32 to vector<2x32xf32>
    %296 = arith.subf %295, %288 : vector<2x32xf32>
    %297 = arith.mulf %296, %294 : vector<2x32xf32>
    %298 = arith.mulf %288, %264 : vector<2x32xf32>
    %299 = arith.addf %297, %298 : vector<2x32xf32>
    %c8_i32 = arith.constant 8 : i32
    %cst_120 = arith.constant dense<0.000000e+00> : vector<32xf32>
    %300 = vector.multi_reduction <add>, %299, %cst_120 [0] : vector<2x32xf32> to vector<32xf32>
    %301 = vector.shape_cast %300 : vector<32xf32> to vector<1x32xf32>
    %cst_121 = arith.constant 2.000000e+00 : f32
    %302 = vector.broadcast %cst_121 : f32 to vector<1x32xf32>
    %303 = arith.divf %301, %302 : vector<1x32xf32>
    %304 = vector.broadcast %303 : vector<1x32xf32> to vector<2x32xf32>
    %305 = arith.subf %299, %304 : vector<2x32xf32>
    %306 = arith.mulf %305, %305 : vector<2x32xf32>
    %cst_122 = arith.constant dense<0.000000e+00> : vector<32xf32>
    %307 = vector.multi_reduction <add>, %306, %cst_122 [0] : vector<2x32xf32> to vector<32xf32>
    %308 = vector.shape_cast %307 : vector<32xf32> to vector<1x32xf32>
    %cst_123 = arith.constant 2.000000e+00 : f32
    %309 = vector.broadcast %cst_123 : f32 to vector<1x32xf32>
    %310 = arith.divf %308, %309 : vector<1x32xf32>
    %311 = vector.broadcast %303 : vector<1x32xf32> to vector<2x32xf32>
    %312 = arith.subf %299, %311 : vector<2x32xf32>
    %cst_124 = arith.constant 9.99999974E-6 : f32
    %313 = vector.broadcast %cst_124 : f32 to vector<1x32xf32>
    %314 = arith.addf %310, %313 : vector<1x32xf32>
    %315 = math.rsqrt %314 : vector<1x32xf32>
    %316 = vector.broadcast %315 : vector<1x32xf32> to vector<2x32xf32>
    %317 = arith.mulf %312, %316 : vector<2x32xf32>
    %c0_125 = arith.constant 0 : index
    %c0_126 = arith.constant 0 : index
    %318 = vector.load %arg7[%c0_125, %c0_126] : memref<1x32xf32, #tpu.memory_space<vmem>>, vector<1x32xf32>
    %319 = vector.broadcast %318 : vector<1x32xf32> to vector<2x32xf32>
    %320 = arith.mulf %317, %319 : vector<2x32xf32>
    %c0_127 = arith.constant 0 : index
    %c0_128 = arith.constant 0 : index
    %321 = vector.load %arg8[%c0_127, %c0_128] : memref<1x32xf32, #tpu.memory_space<vmem>>, vector<1x32xf32>
    %322 = vector.broadcast %321 : vector<1x32xf32> to vector<2x32xf32>
    %323 = arith.addf %320, %322 : vector<2x32xf32>
    %c0_129 = arith.constant 0 : index
    %c0_130 = arith.constant 0 : index
    %324 = vector.load %arg9[%c0_129, %c0_130] : memref<32x1xf32, #tpu.memory_space<vmem>>, vector<32x1xf32>
    %cst_131 = arith.constant dense<0.000000e+00> : vector<2x1xf32>
    %325 = tpu.matmul %323, %324, %cst_131 {dimension_numbers = #tpu.dot_dimension_numbers<[1], [0], [0], [1], [0, 0, 1, 1], [], []>} : vector<2x32xf32>, vector<32x1xf32>, vector<2x1xf32> -> vector<2x1xf32>
    %c0_132 = arith.constant 0 : index
    %c0_133 = arith.constant 0 : index
    %326 = vector.load %arg10[%c0_132, %c0_133] : memref<1x1xf32, #tpu.memory_space<vmem>>, vector<1x1xf32>
    %327 = vector.broadcast %326 : vector<1x1xf32> to vector<2x1xf32>
    %328 = arith.addf %325, %327 : vector<2x1xf32>
    %c0_134 = arith.constant 0 : index
    %c0_135 = arith.constant 0 : index
    %329 = vector.load %arg11[%c0_134, %c0_135] : memref<2x1xf32, #tpu.memory_space<vmem>>, vector<2x1xf32>
    tpu.vector_store %arg11[%c0_134, %c0_135], %328 {strides = array<i32>} : memref<2x1xf32, #tpu.memory_space<vmem>>, vector<2x1xf32>,
    return
  }
}

</mosaic_0001>

<bundles_post_ra>
// kernel: gru_forward.2
= control target key start
LH: loop header
LB: loop body
LE: loop exit
PB: predicated region body
PF: predicated region fallthrough
CT: control target
= control target key end

     0   :  { %12 = vsyncpa [#allocation6], 0  ;;  %s2479_s0 = inlined_call_operand.vmem [shape: f32[8,2,4], index: 0, kind: input, shape index: {}]   ;;  %s2480_s1 = inlined_call_operand.vmem [shape: bf16[4,96], index: 1, kind: input, shape index: {}]   ;;  %s2481_s2 = inlined_call_operand.hbm [shape: f32[1,96], index: 2, kind: input, shape index: {}]   ;;  %s2482_s3 = inlined_call_operand.vmem [shape: bf16[32,32], index: 3, kind: input, shape index: {}]   ;;  %s2483_s4 = inlined_call_operand.vmem [shape: bf16[32,32], index: 4, kind: input, shape index: {}]   ;;  %s2484_s5 = inlined_call_operand.vmem [shape: bf16[32,32], index: 5, kind: input, shape index: {}]   ;;  %s2485_s6 = inlined_call_operand.hbm [shape: f32[1,32], index: 6, kind: input, shape index: {}]   ;;  %s2486_s7 = inlined_call_operand.vmem [shape: f32[8,2,32], index: 7, kind: output, shape index: {}]  }
   0x1   :  { %13 = vsyncpa [#allocation8], 0  ;;  %s2082_s24 = smov [#allocation5]   ;;  %s2083_s26 = smov [#allocation7]  }
   0x2   :  { %s24_s25 = sshll.u32 %s2082_s24, 4  ;;  %s40_s27 = sshll.u32 %s2083_s26, 4  ;;  %s25_s25 = int_to_ptr.vmem [resolvable:$true] %s24_s25  ;;  %s41_s27 = int_to_ptr.vmem [resolvable:$true] %s40_s27 }
   0x3   :  { %s2034_s30 = scalar_lea.hbm %s2481_s2, 16 }
   0x4   :  { %p2035_p0 = scmp.ne.s32.totalorder %s2481_s2, %s2034_s30  ;;  %p2038_p1 = scmp.lt.u32.totalorder %s2034_s30, %s2481_s2 }
   0x6   :  { %p2040_p2 = pnand %p2038_p1, %p2035_p0 }
   0x8   :  { %2043 = shalt.err (!%p2040_p2)
}
   0x9   :  { %s2044_s12 = scalar_lea.vmem %s25_s25, 16  ;;  %s2048_s13 = scalar_lea.vmem %s25_s25, 32 }
   0xa   :  { %p2045_p3 = scmp.ne.s32.totalorder %s25_s25, %s2044_s12  ;;  %p2049_p4 = scmp.lt.s32.totalorder %s25_s25, %s25_s25 }
   0xb   :  { %p2050_p5 = scmp.lt.s32.totalorder %s2048_s13, %s2044_s12 }
   0xd   :  { %p2051_p6 = por %p2050_p5, %p2049_p4 }
   0xf   :  { %p2052_p7 = pnand %p2051_p6, %p2045_p3 }
  0x11   :  { %2055 = shalt.err (!%p2052_p7)
}
  0x12   :  { %27 = dma.hbm_to_vmem [thread:$0]  %s2481_s2, 16, %s25_s25, [#allocation6]  }
  0x13   :  { %s2056_s18 = scalar_lea.hbm %s2485_s6, 16 }
  0x14   :  { %p2057_p8 = scmp.ne.s32.totalorder %s2485_s6, %s2056_s18  ;;  %p2060_p9 = scmp.lt.u32.totalorder %s2056_s18, %s2485_s6 }
  0x16   :  { %p2062_p10 = pnand %p2060_p9, %p2057_p8 }
  0x18   :  { %2065 = shalt.err (!%p2062_p10)
}
  0x19   :  { %s2066_s23 = scalar_lea.vmem %s41_s27, 16  ;;  %s2070_s24 = scalar_lea.vmem %s41_s27, 32 }
  0x1a   :  { %p2067_p11 = scmp.ne.s32.totalorder %s41_s27, %s2066_s23  ;;  %p2071_p12 = scmp.lt.s32.totalorder %s41_s27, %s41_s27 }
  0x1b   :  { %p2072_p13 = scmp.lt.s32.totalorder %s2070_s24, %s2066_s23 }
  0x1d   :  { %p2073_p0 = por %p2072_p13, %p2071_p12 }
  0x1f   :  { %p2074_p1 = pnand %p2073_p0, %p2067_p11 }
  0x21   :  { %2077 = shalt.err (!%p2074_p1)
}
  0x22   :  { %43 = dma.hbm_to_vmem [thread:$0]  %s2485_s6, 16, %s41_s27, [#allocation8]  }
  0x23   :  { %2078 = dma.done.wait [#allocation6], 16  }
  0x24   :  { %2079 = vsyncadd [#allocation6], 4294967280 }
  0x25   :  { %2080 = dma.done.wait [#allocation8], 16  }
  0x26   :  { %2081 = vsyncadd [#allocation8], 4294967280  ;;  %v72_v0 = vlaneseq  ;;  %v2084_v1 = vmov 0.0   ;;  %vm2085_vm0 = vmmov 0   ;;  %v2086_v2 = vmov 1983009808  }
  0x27   :  { %1742 = vmatprep.subr.bf16.mxu0 %v2084_v1  ;;  %1744 = vmatprep.mubr.msk.bf16.mxu0 %vm2085_vm0, %v2084_v1  ;;  %v70_v3 = vunpack.c.l.s4 %v2086_v2  ;;  %vm116_vm1 = vcmask 1041408   ;;  %v104_v7 = vld [vmem:[%s2480_s1] sm:$0x3]  ;;  %v52_v9 = vld [vmem:[%s2479_s0 + $0x2] sm:$0x3]  ;;  %v2202_v24 = vld [vmem:[%s2482_s3 + $0x8] sm:$0xff]  }
  0x28   :  { %v73_v4 = vshrl.u32 %v72_v0, 7  ;;  %1748 = vmatprep.subr.bf16.mxu1 %v2084_v1  ;;  %1752 = vmatprep.mubr.msk.bf16.mxu1 %vm2085_vm0, %v2084_v1  ;;  %v51_v8 = vld [vmem:[%s2479_s0] sm:$0x3]  ;;  %v118_v10 = vsel %vm116_vm1, %v104_v7, 0  ;;  %v53_v11 = vld [vmem:[%s2479_s0 + $0x4] sm:$0x3] }
  0x29   :  { %v71_v5 = vunpack.c.0.s8 %v70_v3  ;;  %v54_v12 = vld [vmem:[%s2479_s0 + $0x6] sm:$0x3]  ;;  %v67_v13 = vcombine.low %v51_v8, %v52_v9  ;;  %1743 = vmatpush3.bf16.msra.mxu0 %v118_v10  ;;  %v55_v15 = vld [vmem:[%s2479_s0 + $0x8] sm:$0x3]  ;;  %v56_v16 = vld [vmem:[%s2479_s0 + $0xa] sm:$0x3] }
  0x2a   :  { %v2180_v14 = vld [vmem:[%s2482_s3] sm:$0xff]   ;;  %v57_v17 = vld [vmem:[%s2479_s0 + $0xc] sm:$0x3]  ;;  %v68_v18 = vcombine.low %v53_v11, %v54_v12  ;;  %v58_v19 = vld [vmem:[%s2479_s0 + $0xe] sm:$0x3]  ;;  %v84_v21 = vcombine.low %v55_v15, %v56_v16  ;;  %1756 = vmatprep.subr.bf16.mxu0 %v2084_v1  ;;  %vm112_vm2 = vcmask 31744  }
  0x2b   :  { %v2160_v6 = vsub.s32 %v71_v5, %v73_v4  ;;  %1749 = vmatpush3.bf16.msra.mxu1 %v2180_v14  ;;  %v85_v23 = vcombine.low %v57_v17, %v58_v19  ;;  %v2210_v28 = vld [vmem:[%s2484_s5] sm:$0xff]   ;;  %v2087_v32 = vmov 0   ;;  %v2222_v33 = vld [vmem:[%s2484_s5 + $0x8] sm:$0xff]   ;;  %v1615_v35 = vld [vmem:[#allocation5] ss:$0 sm:$0xff]  ;;  %vm205_vm3 = vcmask 254976  }
  0x2c   :  { %1750 = vmatprep.subr.bf16.mxu1 %v2084_v1  ;;  %v2216_v30 = vld [vmem:[%s2483_s4] sm:$0xff]   ;;  %v2231_v34 = vld [vmem:[%s2483_s4 + $0x8] sm:$0xff]   ;;  %s2088_s4 = smov 96   ;;  %s2089_s5 = smov 64   ;;  %v2286_v16 = vld [vmem:[#allocation7] ss:$0 sm:$0xff] }
  0x2d   :  { %v75_v20 = vrot.slane %v67_v13, %v2160_v6  ;;  %v82_v22 = vrot.slane %v68_v18, %v2160_v6  ;;  %v92_v25 = vrot.slane %v84_v21, %v2160_v6  ;;  %v99_v27 = vrot.slane %v85_v23, %v2160_v6 }
  0x2e   :  { %vm359_vm4 = vcmask 261120  }
  0x2f   :  { %v83_v26 = vcombine.low %v75_v20, %v82_v22  ;;  %1751 = vmatpush3.bf16.msra.mxu1 %v2202_v24  ;;  %v100_v29 = vcombine.low %v92_v25, %v99_v27 }
  0x30   :  { %1764 = vmatprep.subr.bf16.mxu1 %v2084_v1 }
  0x31   :  { %v103_v31 = vpack.c.bf16 %v100_v29, %v83_v26 }
  0x32   :  { %1753 = vmatmul.mubr.bf16.vlgmr.msra.gmra.mrb[0].mxu1 %v2087_v32 }
  0x33   :  { %1765 = vmatpush3.bf16.msra.mxu1 %v2210_v28  ;;  %1768 = vmatprep.mubr.msk.bf16.mxu1 %vm2085_vm0, %v2084_v1 }
  0x34   :  { %1745 = vmatmul.mubr.msk.bf16.vlgmr.msra.gmra.mrb[0].mxu0 %vm112_vm2, %v103_v31  ;;  %1766 = vmatprep.subr.bf16.mxu1 %v2084_v1 }
  0x35   :  { %1757 = vmatpush3.bf16.msra.mxu0 %v2216_v30  ;;  %1760 = vmatprep.mubr.msk.bf16.mxu0 %vm2085_vm0, %v2084_v1 }
  0x36   :  { %1758 = vmatprep.subr.bf16.mxu0 %v2084_v1 }
  0x37   :  { %1767 = vmatpush3.bf16.msra.mxu1 %v2222_v33 }
  0x38   :  { %1780 = vmatprep.subr.bf16.mxu1 %v2084_v1 }
  0x39   :  { %1759 = vmatpush3.bf16.msra.mxu0 %v2231_v34 }
  0x3a   :  { %1769 = vmatmul.mubr.bf16.vlgmr.msra.gmra.mrb[4].mxu1 %v2087_v32  ;;  %1772 = vmatprep.subr.bf16.mxu0 %v2084_v1 }
  0x3b   :  { %1781 = vmatpush3.bf16.msra.mxu1 %v2216_v30  ;;  %1784 = vmatprep.mubr.msk.bf16.mxu1 %vm2085_vm0, %v2084_v1 }
  0x3c   :  { %1761 = vmatmul.mubr.bf16.vlgmr.msra.gmra.mrb[4].mxu0 %v2087_v32  ;;  %1782 = vmatprep.subr.bf16.mxu1 %v2084_v1 }
  0x3d   :  { %1773 = vmatpush3.bf16.msra.mxu0 %v2180_v14  ;;  %1776 = vmatprep.mubr.msk.bf16.mxu0 %vm2085_vm0, %v2084_v1 }
  0x3e   :  { %1774 = vmatprep.subr.bf16.mxu0 %v2084_v1 }
  0x3f   :  { %1783 = vmatpush3.bf16.msra.mxu1 %v2231_v34 }
  0x40   :  { %1796 = vmatprep.subr.bf16.mxu1 %v2084_v1 }
  0x41   :  { %1775 = vmatpush3.bf16.msra.mxu0 %v2202_v24 }
  0x42   :  { %1788 = vmatprep.subr.bf16.mxu0 %v2084_v1 }
 0x105   :  { %v397_v36 = vpop.f32.mrb[0].mxu1 }
 0x106   :  { %v1754_v37 = vpop.f32.mrb[1].mxu1 }
 0x107   :  { %v154_v38 = vpop.f32.mrb[0].mxu0  ;;  %v400_v39 = vpop.f32.mrb[2].mxu1 }
 0x108   :  { %v155_v40 = vadd.f32 %v1615_v35, %v154_v38  ;;  %v1746_v41 = vpop.f32.mrb[1].mxu0  ;;  %v1755_v42 = vpop.f32.mrb[3].mxu1 }
 0x109   :  { %v157_v43 = vpop.f32.mrb[2].mxu0 }
 0x10a   :  { %v163_v44 = vcombine.high %v155_v40, %v155_v40  ;;  %v170_v45 = vrot.slane %v155_v40, %v2160_v6  ;;  %v158_v46 = vadd.f32 %v1615_v35, %v157_v43  ;;  %v1747_v47 = vpop.f32.mrb[3].mxu0 }
 0x10c   :  { %v177_v48 = vrot.slane %v163_v44, %v2160_v6  ;;  %206 = vst.msk [vmem:[#allocation2] sm:$0x3] %vm205_vm3, %v170_v45  ;;  %v180_v49 = vcombine.high %v158_v46, %v158_v46  ;;  %v187_v50 = vrot.slane %v158_v46, %v2160_v6  ;;  %v220_v51 = vrot.slane %v170_v45, %v2160_v6 }
 0x10d   :  { %v178_v52 = vcombine.high %v170_v45, %v170_v45  ;;  %v507_v53 = vpop.f32.mrb[4].mxu1 }
 0x10e   :  { %208 = vst.msk [vmem:[#allocation2 + $0x4] sm:$0x3] %vm205_vm3, %v177_v48  ;;  %v194_v54 = vrot.slane %v180_v49, %v2160_v6  ;;  %210 = vst.msk [vmem:[#allocation2 + $0x8] sm:$0x3] %vm205_vm3, %v187_v50  ;;  %270 = vrot.lane.b32.xlu0 %v220_v51, %s2088_s4  ;;  %v179_v55 = vcombine.high %v177_v48, %v177_v48  ;;  %v1770_v56 = vpop.f32.mrb[5].mxu1  ;;  %v195_v58 = vcombine.high %v187_v50, %v187_v50 }
 0x10f   :  { %v227_v57 = vrot.slane %v178_v52, %v2160_v6  ;;  %207 = vst.msk [vmem:[#allocation2 + $0x2] sm:$0x3] %vm205_vm3, %v178_v52  ;;  %v449_v59 = vpop.f32.mrb[4].mxu0  ;;  %v510_v60 = vpop.f32.mrb[6].mxu1  ;;  %v234_v5 = vrot.slane %v177_v48, %v2160_v6  ;;  %v248_v9 = vrot.slane %v187_v50, %v2160_v6  ;;  %v508_v17 = vadd.f32 %v2286_v16, %v507_v53 }
 0x110   :  { %212 = vst.msk [vmem:[#allocation2 + $0xc] sm:$0x3] %vm205_vm3, %v194_v54  ;;  %209 = vst.msk [vmem:[#allocation2 + $0x6] sm:$0x3] %vm205_vm3, %v179_v55  ;;  %v196_v61 = vcombine.high %v194_v54, %v194_v54  ;;  %v1762_v62 = vpop.f32.mrb[5].mxu0  ;;  %v1771_v63 = vpop.f32.mrb[7].mxu1  ;;  %v241_v8 = vrot.slane %v179_v55, %v2160_v6  ;;  %v255_v10 = vrot.slane %v195_v58, %v2160_v6 }
 0x111   :  { %272 = vrot.lane.b32.xlu1 %v227_v57, %s2088_s4  ;;  %211 = vst.msk [vmem:[#allocation2 + $0xa] sm:$0x3] %vm205_vm3, %v195_v58  ;;  %v452_v0 = vpop.f32.mrb[6].mxu0  ;;  %v262_v13 = vrot.slane %v194_v54, %v2160_v6 }
 0x112   :  { %302 = vrot.lane.b32.xlu0 %v220_v51, %s2089_s5  ;;  %213 = vst.msk [vmem:[#allocation2 + $0xe] sm:$0x3] %vm205_vm3, %v196_v61  ;;  %v1763_v2 = vpop.f32.mrb[7].mxu0  ;;  %v269_v15 = vrot.slane %v196_v61, %v2160_v6 }
 0x113   :  { %v513_v3 = vld [vmem:[#allocation2] sm:$0x3] }
 0x114   :  { %v514_v4 = vadd.f32 %v513_v3, %v397_v36 }
 0x115   :  { %304 = vrot.lane.b32.xlu1 %v227_v57, %s2089_s5 }
 0x116   :  { %v1624_v7 = vmul.f32 -1.442695, %v514_v4  ;;  %274 = vrot.lane.b32.xlu0 %v234_v5, %s2088_s4  ;;  %v663_v55 = vld [vmem:[#allocation2 + $0x2] sm:$0x3] }
 0x118   :  { %1954 = vpow2.f32 %v1624_v7 }
 0x119   :  { %306 = vrot.lane.b32.xlu1 %v234_v5, %s2089_s5 }
 0x11a   :  { %276 = vrot.lane.b32.xlu0 %v241_v8, %s2088_s4 }
 0x11d   :  { %308 = vrot.lane.b32.xlu1 %v241_v8, %s2089_s5 }
 0x11e   :  { %278 = vrot.lane.b32.xlu0 %v248_v9, %s2088_s4 }
 0x121   :  { %310 = vrot.lane.b32.xlu1 %v248_v9, %s2089_s5 }
 0x122   :  { %v1955_v11 = vpop.eup %1954  ;;  %280 = vrot.lane.b32.xlu0 %v255_v10, %s2088_s4 }
 0x123   :  { %v518_v12 = vadd.f32 1.0, %v1955_v11 }
 0x125   :  { %1956 = vrcp.f32 %v518_v12  ;;  %312 = vrot.lane.b32.xlu1 %v255_v10, %s2089_s5 }
 0x126   :  { %282 = vrot.lane.b32.xlu0 %v262_v13, %s2088_s4 }
 0x129   :  { %314 = vrot.lane.b32.xlu1 %v262_v13, %s2089_s5 }
 0x12a   :  { %284 = vrot.lane.b32.xlu0 %v269_v15, %s2088_s4 }
 0x12d   :  { %316 = vrot.lane.b32.xlu1 %v269_v15, %s2089_s5 }
 0x12f   :  { %v1957_v18 = vpop.eup %1956 }
 0x130   :  { %v530_v19 = vmul.f32 %v1957_v18, %v508_v17 }
 0x180   :  { %v271_v20 = vpop.permute.xlu0 %270 }
 0x181   :  { %294 = vst.msk [vmem:[#allocation3] sm:$0x3] %vm205_vm3, %v271_v20 }
 0x183   :  { %v273_v21 = vpop.permute.xlu1 %272 }
 0x184   :  { %295 = vst.msk [vmem:[#allocation3 + $0x2] sm:$0x3] %vm205_vm3, %v273_v21  ;;  %v303_v22 = vpop.permute.xlu0 %302 }
 0x185   :  { %326 = vst.msk [vmem:[#allocation4] sm:$0x3] %vm205_vm3, %v303_v22 }
 0x187   :  { %v305_v6 = vpop.permute.xlu1 %304 }
 0x188   :  { %v521_v23 = vld [vmem:[#allocation3] sm:$0x3]  ;;  %327 = vst.msk [vmem:[#allocation4 + $0x2] sm:$0x3] %vm205_vm3, %v305_v6  ;;  %v275_v25 = vpop.permute.xlu0 %274 }
 0x189   :  { %v522_v26 = vadd.f32 %v521_v23, %v449_v59  ;;  %296 = vst.msk [vmem:[#allocation3 + $0x4] sm:$0x3] %vm205_vm3, %v275_v25 }
 0x18b   :  { %v1625_v27 = vmul.f32 -1.442695, %v522_v26  ;;  %v307_v29 = vpop.permute.xlu1 %306  ;;  %v672_v63 = vld [vmem:[#allocation3 + $0x2] sm:$0x3] }
 0x18c   :  { %328 = vst.msk [vmem:[#allocation4 + $0x4] sm:$0x3] %vm205_vm3, %v307_v29  ;;  %v277_v31 = vpop.permute.xlu0 %276  ;;  %v529_v38 = vld [vmem:[#allocation4] sm:$0x3] }
 0x18d   :  { %1958 = vpow2.f32 %v1625_v27  ;;  %297 = vst.msk [vmem:[#allocation3 + $0x6] sm:$0x3] %vm205_vm3, %v277_v31  ;;  %v531_v42 = vadd.f32 %v530_v19, %v529_v38  ;;  %v816_v31 = vld [vmem:[#allocation2 + $0x4] sm:$0x3] }
 0x18f   :  { %v309_v32 = vpop.permute.xlu1 %308  ;;  %v681_v19 = vld [vmem:[#allocation4 + $0x2] sm:$0x3] }
 0x190   :  { %329 = vst.msk [vmem:[#allocation4 + $0x6] sm:$0x3] %vm205_vm3, %v309_v32  ;;  %v279_v35 = vpop.permute.xlu0 %278 }
 0x191   :  { %298 = vst.msk [vmem:[#allocation3 + $0x8] sm:$0x3] %vm205_vm3, %v279_v35 }
 0x193   :  { %v311_v36 = vpop.permute.xlu1 %310 }
 0x194   :  { %330 = vst.msk [vmem:[#allocation4 + $0x8] sm:$0x3] %vm205_vm3, %v311_v36  ;;  %v281_v37 = vpop.permute.xlu0 %280 }
 0x195   :  { %299 = vst.msk [vmem:[#allocation3 + $0xa] sm:$0x3] %vm205_vm3, %v281_v37 }
 0x197   :  { %v1959_v39 = vpop.eup %1958  ;;  %v313_v40 = vpop.permute.xlu1 %312 }
 0x198   :  { %v526_v41 = vadd.f32 1.0, %v1959_v39  ;;  %331 = vst.msk [vmem:[#allocation4 + $0xa] sm:$0x3] %vm205_vm3, %v313_v40  ;;  %v283_v43 = vpop.permute.xlu0 %282 }
 0x199   :  { %300 = vst.msk [vmem:[#allocation3 + $0xc] sm:$0x3] %vm205_vm3, %v283_v43 }
 0x19a   :  { %1960 = vrcp.f32 %v526_v41  ;;  %v825_v41 = vld [vmem:[#allocation3 + $0x4] sm:$0x3] }
 0x19b   :  { %v315_v44 = vpop.permute.xlu1 %314  ;;  %1962 = vtanh.f32 %v531_v42 }
 0x19c   :  { %332 = vst.msk [vmem:[#allocation4 + $0xc] sm:$0x3] %vm205_vm3, %v315_v44  ;;  %v285_v45 = vpop.permute.xlu0 %284 }
 0x19d   :  { %301 = vst.msk [vmem:[#allocation3 + $0xe] sm:$0x3] %vm205_vm3, %v285_v45 }
 0x19f   :  { %v317_v46 = vpop.permute.xlu1 %316 }
 0x1a0   :  { %333 = vst.msk [vmem:[#allocation4 + $0xe] sm:$0x3] %vm205_vm3, %v317_v46 }
 0x1a4   :  { %v1961_v47 = vpop.eup %1960 }
 0x1a5   :  { %v533_v48 = vsub.f32 1.0, %v1961_v47  ;;  %v1963_v49 = vpop.eup %1962  ;;  %v535_v51 = vmul.f32 0.0, %v1961_v47 }
 0x1a7   :  { %v534_v50 = vmul.f32 %v1963_v49, %v533_v48 }
 0x1a9   :  { %v536_v52 = vadd.f32 %v535_v51, %v534_v50 }
 0x1ab   :  { %537 = vst.msk [vmem:[%s2486_s7] sm:$0x3] %vm205_vm3, %v536_v52  ;;  %v538_v53 = vpack.c.bf16 %v536_v52, %v536_v52 }
 0x1ad   :  { %1777 = vmatmul.mubr.msk.bf16.vlgmr.msra.gmra.mrb[8].mxu0 %vm359_vm4, %v538_v53  ;;  %1785 = vmatmul.mubr.msk.bf16.vlgmr.msra.gmra.mrb[8].mxu1 %vm359_vm4, %v538_v53 }
 0x1ae   :  { %1789 = vmatpush3.bf16.msra.mxu0 %v2210_v28  ;;  %1792 = vmatprep.mubr.msk.bf16.mxu0 %vm2085_vm0, %v2084_v1 }
 0x1af   :  { %1790 = vmatprep.subr.bf16.mxu0 %v2084_v1  ;;  %1797 = vmatpush3.bf16.msra.mxu1 %v2180_v14 }
 0x1b0   :  { %1798 = vmatprep.subr.bf16.mxu1 %v2084_v1  ;;  %1800 = vmatprep.mubr.msk.bf16.mxu1 %vm2085_vm0, %v2084_v1 }
 0x1b2   :  { %1791 = vmatpush3.bf16.msra.mxu0 %v2222_v33 }
 0x1b3   :  { %1804 = vmatprep.subr.bf16.mxu0 %v2084_v1  ;;  %1799 = vmatpush3.bf16.msra.mxu1 %v2202_v24 }
 0x1b4   :  { %1812 = vmatprep.subr.bf16.mxu1 %v2084_v1 }
 0x1b5   :  { %1793 = vmatmul.mubr.msk.bf16.vlgmr.msra.gmra.mrb[12].mxu0 %vm359_vm4, %v538_v53 }
 0x1b6   :  { %1805 = vmatpush3.bf16.msra.mxu0 %v2216_v30  ;;  %1808 = vmatprep.mubr.msk.bf16.mxu0 %vm2085_vm0, %v2084_v1 }
 0x1b7   :  { %1806 = vmatprep.subr.bf16.mxu0 %v2084_v1 }
 0x1ba   :  { %1807 = vmatpush3.bf16.msra.mxu0 %v2231_v34 }
 0x1bb   :  { %1820 = vmatprep.subr.bf16.mxu0 %v2084_v1 }
 0x280   :  { %v576_v54 = vpop.f32.mrb[8].mxu0  ;;  %v616_v56 = vpop.f32.mrb[8].mxu1 }
 0x281   :  { %v664_v57 = vadd.f32 %v663_v55, %v576_v54  ;;  %v1778_v58 = vpop.f32.mrb[9].mxu0  ;;  %v1786_v59 = vpop.f32.mrb[9].mxu1  ;;  %v673_v3 = vadd.f32 %v672_v63, %v616_v56 }
 0x282   :  { %v579_v60 = vpop.f32.mrb[10].mxu0  ;;  %v619_v61 = vpop.f32.mrb[10].mxu1 }
 0x283   :  { %v1629_v62 = vmul.f32 -1.442695, %v664_v57  ;;  %v1779_v0 = vpop.f32.mrb[11].mxu0  ;;  %v1787_v2 = vpop.f32.mrb[11].mxu1  ;;  %v1630_v4 = vmul.f32 -1.442695, %v673_v3 }
 0x284   :  { %v834_v57 = vld [vmem:[#allocation4 + $0x4] sm:$0x3] }
 0x285   :  { %1964 = vpow2.f32 %v1629_v62 }
 0x286   :  { %1966 = vpow2.f32 %v1630_v4  ;;  %v969_v4 = vld [vmem:[#allocation2 + $0x6] sm:$0x3] }
 0x288   :  { %v656_v5 = vpop.f32.mrb[12].mxu0 }
 0x289   :  { %v1794_v7 = vpop.f32.mrb[13].mxu0  ;;  %v657_v15 = vadd.f32 %v2286_v16, %v656_v5 }
 0x28a   :  { %v659_v8 = vpop.f32.mrb[14].mxu0 }
 0x28b   :  { %v1795_v9 = vpop.f32.mrb[15].mxu0 }
 0x28f   :  { %v1965_v10 = vpop.eup %1964 }
 0x290   :  { %v668_v11 = vadd.f32 1.0, %v1965_v10  ;;  %v1967_v12 = vpop.eup %1966 }
 0x291   :  { %v677_v13 = vadd.f32 1.0, %v1967_v12 }
 0x292   :  { %1968 = vrcp.f32 %v668_v11 }
 0x293   :  { %1970 = vrcp.f32 %v677_v13  ;;  %v978_v13 = vld [vmem:[#allocation3 + $0x6] sm:$0x3] }
 0x29c   :  { %v1969_v17 = vpop.eup %1968 }
 0x29d   :  { %v682_v18 = vmul.f32 %v1969_v17, %v657_v15  ;;  %v1971_v21 = vpop.eup %1970 }
 0x29e   :  { %v685_v22 = vsub.f32 1.0, %v1971_v21  ;;  %v687_v23 = vmul.f32 %v1971_v21, %v536_v52 }
 0x29f   :  { %v683_v20 = vadd.f32 %v682_v18, %v681_v19 }
 0x2a1   :  { %1972 = vtanh.f32 %v683_v20 }
 0x2ab   :  { %v1973_v6 = vpop.eup %1972 }
 0x2ac   :  { %v686_v25 = vmul.f32 %v1973_v6, %v685_v22 }
 0x2ae   :  { %v688_v26 = vadd.f32 %v687_v23, %v686_v25 }
 0x2b0   :  { %1631 = vst.msk [vmem:[%s2486_s7 + $0x2] sm:$0x3] %vm205_vm3, %v688_v26  ;;  %v691_v27 = vpack.c.bf16 %v688_v26, %v688_v26 }
 0x2b2   :  { %1801 = vmatmul.mubr.msk.bf16.vlgmr.msra.gmra.mrb[12].mxu1 %vm359_vm4, %v691_v27  ;;  %1809 = vmatmul.mubr.msk.bf16.vlgmr.msra.gmra.mrb[16].mxu0 %vm359_vm4, %v691_v27 }
 0x2b3   :  { %1813 = vmatpush3.bf16.msra.mxu1 %v2210_v28  ;;  %1816 = vmatprep.mubr.msk.bf16.mxu1 %vm2085_vm0, %v2084_v1 }
 0x2b4   :  { %1814 = vmatprep.subr.bf16.mxu1 %v2084_v1  ;;  %1821 = vmatpush3.bf16.msra.mxu0 %v2180_v14 }
 0x2b5   :  { %1822 = vmatprep.subr.bf16.mxu0 %v2084_v1  ;;  %1824 = vmatprep.mubr.msk.bf16.mxu0 %vm2085_vm0, %v2084_v1 }
 0x2b7   :  { %1815 = vmatpush3.bf16.msra.mxu1 %v2222_v33 }
 0x2b8   :  { %1828 = vmatprep.subr.bf16.mxu1 %v2084_v1  ;;  %1823 = vmatpush3.bf16.msra.mxu0 %v2202_v24 }
 0x2b9   :  { %1836 = vmatprep.subr.bf16.mxu0 %v2084_v1 }
 0x2ba   :  { %1817 = vmatmul.mubr.msk.bf16.vlgmr.msra.gmra.mrb[16].mxu1 %vm359_vm4, %v691_v27 }
 0x2bb   :  { %1829 = vmatpush3.bf16.msra.mxu1 %v2216_v30  ;;  %1832 = vmatprep.mubr.msk.bf16.mxu1 %vm2085_vm0, %v2084_v1 }
 0x2bc   :  { %1830 = vmatprep.subr.bf16.mxu1 %v2084_v1 }
 0x2bf   :  { %1831 = vmatpush3.bf16.msra.mxu1 %v2231_v34 }
 0x2c0   :  { %1844 = vmatprep.subr.bf16.mxu1 %v2084_v1 }
 0x385   :  { %v729_v29 = vpop.f32.mrb[12].mxu1  ;;  %v769_v32 = vpop.f32.mrb[16].mxu0 }
 0x386   :  { %v817_v35 = vadd.f32 %v816_v31, %v729_v29  ;;  %v1802_v36 = vpop.f32.mrb[13].mxu1  ;;  %v1810_v37 = vpop.f32.mrb[17].mxu0  ;;  %v826_v44 = vadd.f32 %v825_v41, %v769_v32 }
 0x387   :  { %v732_v38 = vpop.f32.mrb[14].mxu1  ;;  %v772_v39 = vpop.f32.mrb[18].mxu0 }
 0x388   :  { %v1635_v40 = vmul.f32 -1.442695, %v817_v35  ;;  %v1803_v42 = vpop.f32.mrb[15].mxu1  ;;  %v1811_v43 = vpop.f32.mrb[19].mxu0  ;;  %v1636_v45 = vmul.f32 -1.442695, %v826_v44 }
 0x389   :  { %v987_v35 = vld [vmem:[#allocation4 + $0x6] sm:$0x3] }
 0x38a   :  { %1974 = vpow2.f32 %v1635_v40 }
 0x38b   :  { %1976 = vpow2.f32 %v1636_v45  ;;  %v1122_v45 = vld [vmem:[#allocation2 + $0x8] sm:$0x3] }
 0x38d   :  { %v809_v46 = vpop.f32.mrb[16].mxu1 }
 0x38e   :  { %v1818_v47 = vpop.f32.mrb[17].mxu1  ;;  %v810_v54 = vadd.f32 %v2286_v16, %v809_v46 }
 0x38f   :  { %v812_v48 = vpop.f32.mrb[18].mxu1 }
 0x390   :  { %v1819_v49 = vpop.f32.mrb[19].mxu1 }
 0x394   :  { %v1975_v50 = vpop.eup %1974 }
 0x395   :  { %v821_v51 = vadd.f32 1.0, %v1975_v50  ;;  %v1977_v52 = vpop.eup %1976 }
 0x396   :  { %v830_v53 = vadd.f32 1.0, %v1977_v52 }
 0x397   :  { %1978 = vrcp.f32 %v821_v51 }
 0x398   :  { %1980 = vrcp.f32 %v830_v53  ;;  %v1131_v53 = vld [vmem:[#allocation3 + $0x8] sm:$0x3] }
 0x3a1   :  { %v1979_v55 = vpop.eup %1978 }
 0x3a2   :  { %v835_v56 = vmul.f32 %v1979_v55, %v810_v54  ;;  %v1981_v59 = vpop.eup %1980 }
 0x3a3   :  { %v838_v60 = vsub.f32 1.0, %v1981_v59  ;;  %v840_v62 = vmul.f32 %v1981_v59, %v688_v26 }
 0x3a4   :  { %v836_v58 = vadd.f32 %v835_v56, %v834_v57 }
 0x3a6   :  { %1982 = vtanh.f32 %v836_v58 }
 0x3b0   :  { %v1983_v61 = vpop.eup %1982 }
 0x3b1   :  { %v839_v63 = vmul.f32 %v1983_v61, %v838_v60 }
 0x3b3   :  { %v841_v0 = vadd.f32 %v840_v62, %v839_v63 }
 0x3b5   :  { %1637 = vst.msk [vmem:[%s2486_s7 + $0x4] sm:$0x3] %vm205_vm3, %v841_v0  ;;  %v844_v2 = vpack.c.bf16 %v841_v0, %v841_v0 }
 0x3b7   :  { %1825 = vmatmul.mubr.msk.bf16.vlgmr.msra.gmra.mrb[20].mxu0 %vm359_vm4, %v844_v2  ;;  %1833 = vmatmul.mubr.msk.bf16.vlgmr.msra.gmra.mrb[20].mxu1 %vm359_vm4, %v844_v2 }
 0x3b8   :  { %1837 = vmatpush3.bf16.msra.mxu0 %v2210_v28  ;;  %1840 = vmatprep.mubr.msk.bf16.mxu0 %vm2085_vm0, %v2084_v1 }
 0x3b9   :  { %1838 = vmatprep.subr.bf16.mxu0 %v2084_v1  ;;  %1845 = vmatpush3.bf16.msra.mxu1 %v2180_v14 }
 0x3ba   :  { %1846 = vmatprep.subr.bf16.mxu1 %v2084_v1  ;;  %1848 = vmatprep.mubr.msk.bf16.mxu1 %vm2085_vm0, %v2084_v1 }
 0x3bc   :  { %1839 = vmatpush3.bf16.msra.mxu0 %v2222_v33 }
 0x3bd   :  { %1852 = vmatprep.subr.bf16.mxu0 %v2084_v1  ;;  %1847 = vmatpush3.bf16.msra.mxu1 %v2202_v24 }
 0x3be   :  { %1860 = vmatprep.subr.bf16.mxu1 %v2084_v1 }
 0x3bf   :  { %1841 = vmatmul.mubr.msk.bf16.vlgmr.msra.gmra.mrb[24].mxu0 %vm359_vm4, %v844_v2 }
 0x3c0   :  { %1853 = vmatpush3.bf16.msra.mxu0 %v2216_v30  ;;  %1856 = vmatprep.mubr.msk.bf16.mxu0 %vm2085_vm0, %v2084_v1 }
 0x3c1   :  { %1854 = vmatprep.subr.bf16.mxu0 %v2084_v1 }
 0x3c4   :  { %1855 = vmatpush3.bf16.msra.mxu0 %v2231_v34 }
 0x3c5   :  { %1868 = vmatprep.subr.bf16.mxu0 %v2084_v1 }
 0x48a   :  { %v882_v3 = vpop.f32.mrb[20].mxu0  ;;  %v922_v5 = vpop.f32.mrb[20].mxu1 }
 0x48b   :  { %v970_v7 = vadd.f32 %v969_v4, %v882_v3  ;;  %v1826_v8 = vpop.f32.mrb[21].mxu0  ;;  %v1834_v9 = vpop.f32.mrb[21].mxu1  ;;  %v979_v18 = vadd.f32 %v978_v13, %v922_v5 }
 0x48c   :  { %v885_v10 = vpop.f32.mrb[22].mxu0  ;;  %v925_v11 = vpop.f32.mrb[22].mxu1 }
 0x48d   :  { %v1641_v12 = vmul.f32 -1.442695, %v970_v7  ;;  %v1827_v15 = vpop.f32.mrb[23].mxu0  ;;  %v1835_v17 = vpop.f32.mrb[23].mxu1  ;;  %v1642_v19 = vmul.f32 -1.442695, %v979_v18 }
 0x48e   :  { %v1140_v7 = vld [vmem:[#allocation4 + $0x8] sm:$0x3] }
 0x48f   :  { %1984 = vpow2.f32 %v1641_v12 }
 0x490   :  { %1986 = vpow2.f32 %v1642_v19  ;;  %v1275_v19 = vld [vmem:[#allocation2 + $0xa] sm:$0x3] }
 0x492   :  { %v962_v20 = vpop.f32.mrb[24].mxu0 }
 0x493   :  { %v1842_v21 = vpop.f32.mrb[25].mxu0  ;;  %v963_v29 = vadd.f32 %v2286_v16, %v962_v20 }
 0x494   :  { %v965_v22 = vpop.f32.mrb[26].mxu0 }
 0x495   :  { %v1843_v6 = vpop.f32.mrb[27].mxu0 }
 0x499   :  { %v1985_v23 = vpop.eup %1984 }
 0x49a   :  { %v974_v25 = vadd.f32 1.0, %v1985_v23  ;;  %v1987_v26 = vpop.eup %1986 }
 0x49b   :  { %v983_v27 = vadd.f32 1.0, %v1987_v26 }
 0x49c   :  { %1988 = vrcp.f32 %v974_v25 }
 0x49d   :  { %1990 = vrcp.f32 %v983_v27  ;;  %v1284_v27 = vld [vmem:[#allocation3 + $0xa] sm:$0x3] }
 0x4a6   :  { %v1989_v31 = vpop.eup %1988 }
 0x4a7   :  { %v988_v32 = vmul.f32 %v1989_v31, %v963_v29  ;;  %v1991_v37 = vpop.eup %1990 }
 0x4a8   :  { %v991_v38 = vsub.f32 1.0, %v1991_v37  ;;  %v993_v40 = vmul.f32 %v1991_v37, %v841_v0 }
 0x4a9   :  { %v989_v36 = vadd.f32 %v988_v32, %v987_v35 }
 0x4ab   :  { %1992 = vtanh.f32 %v989_v36 }
 0x4b5   :  { %v1993_v39 = vpop.eup %1992 }
 0x4b6   :  { %v992_v41 = vmul.f32 %v1993_v39, %v991_v38 }
 0x4b8   :  { %v994_v42 = vadd.f32 %v993_v40, %v992_v41 }
 0x4ba   :  { %1643 = vst.msk [vmem:[%s2486_s7 + $0x6] sm:$0x3] %vm205_vm3, %v994_v42  ;;  %v997_v43 = vpack.c.bf16 %v994_v42, %v994_v42 }
 0x4bc   :  { %1849 = vmatmul.mubr.msk.bf16.vlgmr.msra.gmra.mrb[24].mxu1 %vm359_vm4, %v997_v43  ;;  %1857 = vmatmul.mubr.msk.bf16.vlgmr.msra.gmra.mrb[28].mxu0 %vm359_vm4, %v997_v43 }
 0x4bd   :  { %1861 = vmatpush3.bf16.msra.mxu1 %v2210_v28  ;;  %1864 = vmatprep.mubr.msk.bf16.mxu1 %vm2085_vm0, %v2084_v1 }
 0x4be   :  { %1862 = vmatprep.subr.bf16.mxu1 %v2084_v1  ;;  %1869 = vmatpush3.bf16.msra.mxu0 %v2180_v14 }
 0x4bf   :  { %1870 = vmatprep.subr.bf16.mxu0 %v2084_v1  ;;  %1872 = vmatprep.mubr.msk.bf16.mxu0 %vm2085_vm0, %v2084_v1 }
 0x4c1   :  { %1863 = vmatpush3.bf16.msra.mxu1 %v2222_v33 }
 0x4c2   :  { %1876 = vmatprep.subr.bf16.mxu1 %v2084_v1  ;;  %1871 = vmatpush3.bf16.msra.mxu0 %v2202_v24 }
 0x4c3   :  { %1884 = vmatprep.subr.bf16.mxu0 %v2084_v1 }
 0x4c4   :  { %1865 = vmatmul.mubr.msk.bf16.vlgmr.msra.gmra.mrb[28].mxu1 %vm359_vm4, %v997_v43 }
 0x4c5   :  { %1877 = vmatpush3.bf16.msra.mxu1 %v2216_v30  ;;  %1880 = vmatprep.mubr.msk.bf16.mxu1 %vm2085_vm0, %v2084_v1 }
 0x4c6   :  { %1878 = vmatprep.subr.bf16.mxu1 %v2084_v1 }
 0x4c9   :  { %1879 = vmatpush3.bf16.msra.mxu1 %v2231_v34 }
 0x4ca   :  { %1892 = vmatprep.subr.bf16.mxu1 %v2084_v1 }
 0x58f   :  { %v1035_v44 = vpop.f32.mrb[24].mxu1  ;;  %v1075_v46 = vpop.f32.mrb[28].mxu0 }
 0x590   :  { %v1123_v47 = vadd.f32 %v1122_v45, %v1035_v44  ;;  %v1850_v48 = vpop.f32.mrb[25].mxu1  ;;  %v1858_v49 = vpop.f32.mrb[29].mxu0  ;;  %v1132_v56 = vadd.f32 %v1131_v53, %v1075_v46 }
 0x591   :  { %v1038_v50 = vpop.f32.mrb[26].mxu1  ;;  %v1078_v51 = vpop.f32.mrb[30].mxu0 }
 0x592   :  { %v1647_v52 = vmul.f32 -1.442695, %v1123_v47  ;;  %v1851_v54 = vpop.f32.mrb[27].mxu1  ;;  %v1859_v55 = vpop.f32.mrb[31].mxu0  ;;  %v1648_v57 = vmul.f32 -1.442695, %v1132_v56 }
 0x593   :  { %v1293_v47 = vld [vmem:[#allocation4 + $0xa] sm:$0x3]  ;;  %v1428_v56 = vld [vmem:[#allocation2 + $0xc] sm:$0x3] }
 0x594   :  { %1994 = vpow2.f32 %v1647_v52 }
 0x595   :  { %1996 = vpow2.f32 %v1648_v57 }
 0x597   :  { %v1115_v58 = vpop.f32.mrb[28].mxu1 }
 0x598   :  { %v1866_v59 = vpop.f32.mrb[29].mxu1  ;;  %v1116_v3 = vadd.f32 %v2286_v16, %v1115_v58 }
 0x599   :  { %v1118_v60 = vpop.f32.mrb[30].mxu1 }
 0x59a   :  { %v1867_v61 = vpop.f32.mrb[31].mxu1 }
 0x59e   :  { %v1995_v62 = vpop.eup %1994 }
 0x59f   :  { %v1127_v63 = vadd.f32 1.0, %v1995_v62  ;;  %v1997_v0 = vpop.eup %1996 }
 0x5a0   :  { %v1136_v2 = vadd.f32 1.0, %v1997_v0 }
 0x5a1   :  { %1998 = vrcp.f32 %v1127_v63  ;;  %v1437_v63 = vld [vmem:[#allocation3 + $0xc] sm:$0x3] }
 0x5a2   :  { %2000 = vrcp.f32 %v1136_v2 }
 0x5ab   :  { %v1999_v4 = vpop.eup %1998 }
 0x5ac   :  { %v1141_v5 = vmul.f32 %v1999_v4, %v1116_v3  ;;  %v2001_v9 = vpop.eup %2000 }
 0x5ad   :  { %v1144_v10 = vsub.f32 1.0, %v2001_v9  ;;  %v1146_v12 = vmul.f32 %v2001_v9, %v994_v42 }
 0x5ae   :  { %v1142_v8 = vadd.f32 %v1141_v5, %v1140_v7 }
 0x5b0   :  { %2002 = vtanh.f32 %v1142_v8 }
 0x5ba   :  { %v2003_v11 = vpop.eup %2002 }
 0x5bb   :  { %v1145_v13 = vmul.f32 %v2003_v11, %v1144_v10 }
 0x5bd   :  { %v1147_v15 = vadd.f32 %v1146_v12, %v1145_v13 }
 0x5bf   :  { %1649 = vst.msk [vmem:[%s2486_s7 + $0x8] sm:$0x3] %vm205_vm3, %v1147_v15  ;;  %v1150_v17 = vpack.c.bf16 %v1147_v15, %v1147_v15 }
 0x5c1   :  { %1873 = vmatmul.mubr.msk.bf16.vlgmr.msra.gmra.mrb[32].mxu0 %vm359_vm4, %v1150_v17  ;;  %1881 = vmatmul.mubr.msk.bf16.vlgmr.msra.gmra.mrb[32].mxu1 %vm359_vm4, %v1150_v17 }
 0x5c2   :  { %1885 = vmatpush3.bf16.msra.mxu0 %v2210_v28  ;;  %1888 = vmatprep.mubr.msk.bf16.mxu0 %vm2085_vm0, %v2084_v1 }
 0x5c3   :  { %1886 = vmatprep.subr.bf16.mxu0 %v2084_v1  ;;  %1893 = vmatpush3.bf16.msra.mxu1 %v2180_v14 }
 0x5c4   :  { %1894 = vmatprep.subr.bf16.mxu1 %v2084_v1  ;;  %1896 = vmatprep.mubr.msk.bf16.mxu1 %vm2085_vm0, %v2084_v1 }
 0x5c6   :  { %1887 = vmatpush3.bf16.msra.mxu0 %v2222_v33 }
 0x5c7   :  { %1900 = vmatprep.subr.bf16.mxu0 %v2084_v1  ;;  %1895 = vmatpush3.bf16.msra.mxu1 %v2202_v24 }
 0x5c8   :  { %1908 = vmatprep.subr.bf16.mxu1 %v2084_v1 }
 0x5c9   :  { %1889 = vmatmul.mubr.msk.bf16.vlgmr.msra.gmra.mrb[36].mxu0 %vm359_vm4, %v1150_v17  ;;  %v1446_v17 = vld [vmem:[#allocation4 + $0xc] sm:$0x3] }
 0x5ca   :  { %1901 = vmatpush3.bf16.msra.mxu0 %v2216_v30  ;;  %1904 = vmatprep.mubr.msk.bf16.mxu0 %vm2085_vm0, %v2084_v1 }
 0x5cb   :  { %1902 = vmatprep.subr.bf16.mxu0 %v2084_v1 }
 0x5ce   :  { %1903 = vmatpush3.bf16.msra.mxu0 %v2231_v34 }
 0x5cf   :  { %1916 = vmatprep.subr.bf16.mxu0 %v2084_v1 }
 0x694   :  { %v1188_v18 = vpop.f32.mrb[32].mxu0  ;;  %v1228_v20 = vpop.f32.mrb[32].mxu1 }
 0x695   :  { %v1276_v21 = vadd.f32 %v1275_v19, %v1188_v18  ;;  %v1874_v22 = vpop.f32.mrb[33].mxu0  ;;  %v1882_v6 = vpop.f32.mrb[33].mxu1  ;;  %v1285_v32 = vadd.f32 %v1284_v27, %v1228_v20  ;;  %v1581_v27 = vld [vmem:[#allocation2 + $0xe] sm:$0x3] }
 0x696   :  { %v1191_v23 = vpop.f32.mrb[34].mxu0  ;;  %v1231_v25 = vpop.f32.mrb[34].mxu1 }
 0x697   :  { %v1653_v26 = vmul.f32 -1.442695, %v1276_v21  ;;  %v1875_v29 = vpop.f32.mrb[35].mxu0  ;;  %v1883_v31 = vpop.f32.mrb[35].mxu1  ;;  %v1654_v35 = vmul.f32 -1.442695, %v1285_v32 }
 0x699   :  { %2004 = vpow2.f32 %v1653_v26 }
 0x69a   :  { %2006 = vpow2.f32 %v1654_v35 }
 0x69c   :  { %v1268_v36 = vpop.f32.mrb[36].mxu0 }
 0x69d   :  { %v1890_v37 = vpop.f32.mrb[37].mxu0  ;;  %v1269_v44 = vadd.f32 %v2286_v16, %v1268_v36 }
 0x69e   :  { %v1271_v38 = vpop.f32.mrb[38].mxu0 }
 0x69f   :  { %v1891_v39 = vpop.f32.mrb[39].mxu0 }
 0x6a0   :  { %v1590_v39 = vld [vmem:[#allocation3 + $0xe] sm:$0x3] }
 0x6a3   :  { %v2005_v40 = vpop.eup %2004 }
 0x6a4   :  { %v1280_v41 = vadd.f32 1.0, %v2005_v40  ;;  %v2007_v42 = vpop.eup %2006 }
 0x6a5   :  { %v1289_v43 = vadd.f32 1.0, %v2007_v42 }
 0x6a6   :  { %2008 = vrcp.f32 %v1280_v41 }
 0x6a7   :  { %2010 = vrcp.f32 %v1289_v43 }
 0x6b0   :  { %v2009_v45 = vpop.eup %2008 }
 0x6b1   :  { %v1294_v46 = vmul.f32 %v2009_v45, %v1269_v44  ;;  %v2011_v49 = vpop.eup %2010 }
 0x6b2   :  { %v1297_v50 = vsub.f32 1.0, %v2011_v49  ;;  %v1299_v52 = vmul.f32 %v2011_v49, %v1147_v15 }
 0x6b3   :  { %v1295_v48 = vadd.f32 %v1294_v46, %v1293_v47 }
 0x6b5   :  { %2012 = vtanh.f32 %v1295_v48 }
 0x6bf   :  { %v2013_v51 = vpop.eup %2012 }
 0x6c0   :  { %v1298_v53 = vmul.f32 %v2013_v51, %v1297_v50 }
 0x6c2   :  { %v1300_v54 = vadd.f32 %v1299_v52, %v1298_v53  ;;  %v1599_v52 = vld [vmem:[#allocation4 + $0xe] sm:$0x3] }
 0x6c4   :  { %1655 = vst.msk [vmem:[%s2486_s7 + $0xa] sm:$0x3] %vm205_vm3, %v1300_v54  ;;  %v1303_v55 = vpack.c.bf16 %v1300_v54, %v1300_v54 }
 0x6c6   :  { %1897 = vmatmul.mubr.msk.bf16.vlgmr.msra.gmra.mrb[36].mxu1 %vm359_vm4, %v1303_v55  ;;  %1905 = vmatmul.mubr.msk.bf16.vlgmr.msra.gmra.mrb[40].mxu0 %vm359_vm4, %v1303_v55 }
 0x6c7   :  { %1909 = vmatpush3.bf16.msra.mxu1 %v2210_v28  ;;  %1912 = vmatprep.mubr.msk.bf16.mxu1 %vm2085_vm0, %v2084_v1 }
 0x6c8   :  { %1910 = vmatprep.subr.bf16.mxu1 %v2084_v1  ;;  %1917 = vmatpush3.bf16.msra.mxu0 %v2180_v14 }
 0x6c9   :  { %1918 = vmatprep.subr.bf16.mxu0 %v2084_v1  ;;  %1920 = vmatprep.mubr.msk.bf16.mxu0 %vm2085_vm0, %v2084_v1 }
 0x6cb   :  { %1911 = vmatpush3.bf16.msra.mxu1 %v2222_v33 }
 0x6cc   :  { %1924 = vmatprep.subr.bf16.mxu1 %v2084_v1  ;;  %1919 = vmatpush3.bf16.msra.mxu0 %v2202_v24 }
 0x6cd   :  { %1932 = vmatprep.subr.bf16.mxu0 %v2084_v1 }
 0x6ce   :  { %1913 = vmatmul.mubr.msk.bf16.vlgmr.msra.gmra.mrb[40].mxu1 %vm359_vm4, %v1303_v55 }
 0x6cf   :  { %1925 = vmatpush3.bf16.msra.mxu1 %v2216_v30  ;;  %1928 = vmatprep.mubr.msk.bf16.mxu1 %vm2085_vm0, %v2084_v1 }
 0x6d0   :  { %1926 = vmatprep.subr.bf16.mxu1 %v2084_v1 }
 0x6d3   :  { %1927 = vmatpush3.bf16.msra.mxu1 %v2231_v34 }
 0x799   :  { %v1341_v14 = vpop.f32.mrb[36].mxu1  ;;  %v1381_v57 = vpop.f32.mrb[40].mxu0 }
 0x79a   :  { %v1429_v58 = vadd.f32 %v1428_v56, %v1341_v14  ;;  %v1898_v59 = vpop.f32.mrb[37].mxu1  ;;  %v1906_v60 = vpop.f32.mrb[41].mxu0  ;;  %v1438_v30 = vadd.f32 %v1437_v63, %v1381_v57 }
 0x79b   :  { %v1344_v24 = vpop.f32.mrb[38].mxu1  ;;  %v1384_v61 = vpop.f32.mrb[42].mxu0 }
 0x79c   :  { %v1659_v62 = vmul.f32 -1.442695, %v1429_v58  ;;  %v1899_v0 = vpop.f32.mrb[39].mxu1  ;;  %v1907_v2 = vpop.f32.mrb[43].mxu0  ;;  %v1660_v3 = vmul.f32 -1.442695, %v1438_v30 }
 0x79e   :  { %2014 = vpow2.f32 %v1659_v62 }
 0x79f   :  { %2016 = vpow2.f32 %v1660_v3 }
 0x7a1   :  { %v1421_v4 = vpop.f32.mrb[40].mxu1 }
 0x7a2   :  { %v1914_v5 = vpop.f32.mrb[41].mxu1  ;;  %v1422_v12 = vadd.f32 %v2286_v16, %v1421_v4 }
 0x7a3   :  { %v1424_v7 = vpop.f32.mrb[42].mxu1 }
 0x7a4   :  { %v1915_v8 = vpop.f32.mrb[43].mxu1 }
 0x7a8   :  { %v2015_v34 = vpop.eup %2014 }
 0x7a9   :  { %v1433_v9 = vadd.f32 1.0, %v2015_v34  ;;  %v2017_v10 = vpop.eup %2016 }
 0x7aa   :  { %v1442_v11 = vadd.f32 1.0, %v2017_v10 }
 0x7ab   :  { %2018 = vrcp.f32 %v1433_v9 }
 0x7ac   :  { %2020 = vrcp.f32 %v1442_v11 }
 0x7b5   :  { %v2019_v13 = vpop.eup %2018 }
 0x7b6   :  { %v1447_v15 = vmul.f32 %v2019_v13, %v1422_v12  ;;  %v2021_v19 = vpop.eup %2020 }
 0x7b7   :  { %v1450_v20 = vsub.f32 1.0, %v2021_v19  ;;  %v1452_v22 = vmul.f32 %v2021_v19, %v1300_v54 }
 0x7b8   :  { %v1448_v18 = vadd.f32 %v1447_v15, %v1446_v17 }
 0x7ba   :  { %2022 = vtanh.f32 %v1448_v18 }
 0x7c4   :  { %v2023_v21 = vpop.eup %2022 }
 0x7c5   :  { %v1451_v6 = vmul.f32 %v2023_v21, %v1450_v20 }
 0x7c7   :  { %v1453_v23 = vadd.f32 %v1452_v22, %v1451_v6 }
 0x7c9   :  { %1661 = vst.msk [vmem:[%s2486_s7 + $0xc] sm:$0x3] %vm205_vm3, %v1453_v23  ;;  %v1456_v25 = vpack.c.bf16 %v1453_v23, %v1453_v23 }
 0x7cb   :  { %1921 = vmatmul.mubr.msk.bf16.vlgmr.msra.gmra.mrb[44].mxu0 %vm359_vm4, %v1456_v25  ;;  %1929 = vmatmul.mubr.msk.bf16.vlgmr.msra.gmra.mrb[44].mxu1 %vm359_vm4, %v1456_v25 }
 0x7cc   :  { %1933 = vmatpush3.bf16.msra.mxu0 %v2210_v28  ;;  %1936 = vmatprep.mubr.msk.bf16.mxu0 %vm2085_vm0, %v2084_v1 }
 0x7cd   :  { %1934 = vmatprep.subr.bf16.mxu0 %v2084_v1 }
 0x7d0   :  { %1935 = vmatpush3.bf16.msra.mxu0 %v2222_v33 }
 0x7d3   :  { %1937 = vmatmul.mubr.msk.bf16.vlgmr.msra.gmra.mrb[48].mxu0 %vm359_vm4, %v1456_v25 }
 0x89e   :  { %v1494_v26 = vpop.f32.mrb[44].mxu0  ;;  %v1534_v29 = vpop.f32.mrb[44].mxu1 }
 0x89f   :  { %v1582_v31 = vadd.f32 %v1581_v27, %v1494_v26  ;;  %v1922_v32 = vpop.f32.mrb[45].mxu0  ;;  %v1930_v35 = vpop.f32.mrb[45].mxu1  ;;  %v1591_v41 = vadd.f32 %v1590_v39, %v1534_v29 }
 0x8a0   :  { %v1497_v36 = vpop.f32.mrb[46].mxu0  ;;  %v1537_v37 = vpop.f32.mrb[46].mxu1 }
 0x8a1   :  { %v1665_v38 = vmul.f32 -1.442695, %v1582_v31  ;;  %v1923_v28 = vpop.f32.mrb[47].mxu0  ;;  %v1931_v40 = vpop.f32.mrb[47].mxu1  ;;  %v1666_v42 = vmul.f32 -1.442695, %v1591_v41 }
 0x8a3   :  { %2024 = vpow2.f32 %v1665_v38 }
 0x8a4   :  { %2026 = vpow2.f32 %v1666_v42 }
 0x8a6   :  { %v1574_v1 = vpop.f32.mrb[48].mxu0 }
 0x8a7   :  { %v1938_v43 = vpop.f32.mrb[49].mxu0  ;;  %v1575_v49 = vadd.f32 %v2286_v16, %v1574_v1 }
 0x8a8   :  { %v1577_v33 = vpop.f32.mrb[50].mxu0 }
 0x8a9   :  { %v1939_v44 = vpop.f32.mrb[51].mxu0 }
 0x8ad   :  { %v2025_v45 = vpop.eup %2024 }
 0x8ae   :  { %v1586_v46 = vadd.f32 1.0, %v2025_v45  ;;  %v2027_v47 = vpop.eup %2026 }
 0x8af   :  { %v1595_v48 = vadd.f32 1.0, %v2027_v47 }
 0x8b0   :  { %2028 = vrcp.f32 %v1586_v46 }
 0x8b1   :  { %2030 = vrcp.f32 %v1595_v48 }
 0x8ba   :  { %v2029_v50 = vpop.eup %2028 }
 0x8bb   :  { %v1600_v51 = vmul.f32 %v2029_v50, %v1575_v49  ;;  %v2031_v54 = vpop.eup %2030 }
 0x8bc   :  { %v1603_v55 = vsub.f32 1.0, %v2031_v54  ;;  %v1605_v56 = vmul.f32 %v2031_v54, %v1453_v23 }
 0x8bd   :  { %v1601_v53 = vadd.f32 %v1600_v51, %v1599_v52 }
 0x8bf   :  { %2032 = vtanh.f32 %v1601_v53 }
 0x8c9   :  { %v2033_v14 = vpop.eup %2032 }
 0x8ca   :  { %v1604_v57 = vmul.f32 %v2033_v14, %v1603_v55 }
 0x8cc   :  { %v1606_v58 = vadd.f32 %v1605_v56, %v1604_v57 }
 0x8ce   :  { %1667 = vst.msk [vmem:[%s2486_s7 + $0xe] sm:$0x3] %vm205_vm3, %v1606_v58 }
 0x8cf   :  { %1613 = vsyncpa [#allocation6], 1 }
 0x8d0   :  { %1614 = vsyncpa [#allocation8], 1 }

// kernel: gru_forward.3
= control target key start
LH: loop header
LB: loop body
LE: loop exit
PB: predicated region body
PF: predicated region fallthrough
CT: control target
= control target key end

     0   :  { %v62_v0 = vlaneseq  ;;  %v2168_v1 = vmov 0.0   ;;  %vm2169_vm0 = vmmov 0   ;;  %v2170_v3 = vmov 1983009808   ;;  %s2568_s1 = inlined_call_operand.vmem [shape: bf16[32,96], index: 1, kind: input, shape index: {}]   ;;  %s2569_s0 = inlined_call_operand.vmem [shape: f32[8,2,32], index: 0, kind: input, shape index: {}]   ;;  %s2570_s3 = inlined_call_operand.vmem [shape: bf16[32,32], index: 3, kind: input, shape index: {}]   ;;  %s2571_s5 = inlined_call_operand.vmem [shape: bf16[32,32], index: 5, kind: input, shape index: {}]   ;;  %s2572_s4 = inlined_call_operand.vmem [shape: bf16[32,32], index: 4, kind: input, shape index: {}]   ;;  %s2573_s2 = inlined_call_operand.vmem [shape: f32[1,96], index: 2, kind: input, shape index: {}]   ;;  %s2574_s6 = inlined_call_operand.vmem [shape: f32[1,32], index: 6, kind: input, shape index: {}]   ;;  %s2575_s9 = inlined_call_operand.vmem [shape: f32[32,1], index: 9, kind: input, shape index: {}]   ;;  %s2576_s10 = inlined_call_operand.<no memory space> [shape: f32[1,1], index: 10, kind: input, shape index: {}]   ;;  %s2577_s7 = inlined_call_operand.vmem [shape: f32[1,32], index: 7, kind: input, shape index: {}]   ;;  %s2578_s8 = inlined_call_operand.vmem [shape: f32[1,32], index: 8, kind: input, shape index: {}]   ;;  %s2579_s11 = inlined_call_operand.vmem [shape: f32[2,1], index: 11, kind: output, shape index: {}]  }
   0x1   :  { %1854 = vmatprep.subr.bf16.mxu0 %v2168_v1  ;;  %v2078_v2 = vld [vmem:[%s2568_s1] sm:$0xff]   ;;  %1858 = vmatprep.mubr.msk.bf16.mxu0 %vm2169_vm0, %v2168_v1  ;;  %v60_v4 = vunpack.c.l.s4 %v2170_v3  ;;  %v2079_v5 = vld [vmem:[%s2568_s1 + $0x8] sm:$0xff]   ;;  %vm117_vm1 = vcmask 261120   ;;  %v2171_v32 = vmov 0   ;;  %vm206_vm2 = vcmask 254976   ;;  %s2173_s1 = smov 64  }
   0x2   :  { %v63_v6 = vshrl.u32 %v62_v0, 7  ;;  %1862 = vmatprep.subr.bf16.mxu1 %v2168_v1  ;;  %1866 = vmatprep.mubr.msk.bf16.mxu1 %vm2169_vm0, %v2168_v1  ;;  %v41_v7 = vld [vmem:[%s2569_s0] sm:$0x3]  ;;  %v42_v8 = vld [vmem:[%s2569_s0 + $0x2] sm:$0x3]  ;;  %v2287_v26 = vld [vmem:[%s2570_s3 + $0x8] sm:$0xff]  }
   0x3   :  { %1855 = vmatpush3.bf16.msra.mxu0 %v2078_v2  ;;  %v43_v9 = vld [vmem:[%s2569_s0 + $0x4] sm:$0x3]  ;;  %v61_v10 = vunpack.c.0.s8 %v60_v4  ;;  %v44_v11 = vld [vmem:[%s2569_s0 + $0x6] sm:$0x3]  ;;  %v45_v12 = vld [vmem:[%s2569_s0 + $0x8] sm:$0x3]  ;;  %v57_v14 = vcombine.low %v41_v7, %v42_v8 }
   0x4   :  { %1856 = vmatprep.subr.bf16.mxu0 %v2168_v1  ;;  %v46_v13 = vld [vmem:[%s2569_s0 + $0xa] sm:$0x3]  ;;  %v47_v15 = vld [vmem:[%s2569_s0 + $0xc] sm:$0x3]  ;;  %v48_v16 = vld [vmem:[%s2569_s0 + $0xe] sm:$0x3]  ;;  %v58_v17 = vcombine.low %v43_v9, %v44_v11 }
   0x5   :  { %v2272_v18 = vsub.s32 %v61_v10, %v63_v6  ;;  %v74_v19 = vcombine.low %v45_v12, %v46_v13  ;;  %v75_v20 = vcombine.low %v47_v15, %v48_v16  ;;  %v2277_v21 = vld [vmem:[%s2570_s3] sm:$0xff]   ;;  %v2308_v33 = vld [vmem:[%s2572_s4 + $0x8] sm:$0xff]   ;;  %vm1716_vm3 = vcmask 1024  }
   0x6   :  { %1863 = vmatpush3.bf16.msra.mxu1 %v2277_v21  ;;  %v2294_v29 = vld [vmem:[%s2572_s4] sm:$0xff]   ;;  %v2314_v34 = vld [vmem:[%s2571_s5 + $0x8] sm:$0xff]  }
   0x7   :  { %1857 = vmatpush3.bf16.msra.mxu0 %v2079_v5  ;;  %v65_v22 = vrot.slane %v57_v14, %v2272_v18  ;;  %v72_v23 = vrot.slane %v58_v17, %v2272_v18  ;;  %v82_v24 = vrot.slane %v74_v19, %v2272_v18  ;;  %v89_v25 = vrot.slane %v75_v20, %v2272_v18  ;;  %v2300_v31 = vld [vmem:[%s2571_s5] sm:$0xff]  }
   0x8   :  { %1870 = vmatprep.subr.bf16.mxu0 %v2168_v1  ;;  %1864 = vmatprep.subr.bf16.mxu1 %v2168_v1  ;;  %v1722_v35 = vld [vmem:[%s2573_s2] ss:$0 sm:$0xff]  ;;  %s2172_s2 = smov 96  }
   0x9   :  { %v73_v27 = vcombine.low %v65_v22, %v72_v23  ;;  %v90_v28 = vcombine.low %v82_v24, %v89_v25  ;;  %v2378_v14 = vld [vmem:[%s2574_s6] ss:$0 sm:$0xff] }
   0xa   :  { %1865 = vmatpush3.bf16.msra.mxu1 %v2287_v26 }
   0xb   :  { %v93_v30 = vpack.c.bf16 %v90_v28, %v73_v27  ;;  %1878 = vmatprep.subr.bf16.mxu1 %v2168_v1 }
   0xd   :  { %1859 = vmatmul.mubr.msk.bf16.vlgmr.msra.gmra.mrb[0].mxu0 %vm117_vm1, %v93_v30  ;;  %1867 = vmatmul.mubr.bf16.vlgmr.msra.gmra.mrb[0].mxu1 %v2171_v32 }
   0xe   :  { %1871 = vmatpush3.bf16.msra.mxu0 %v2294_v29  ;;  %1879 = vmatpush3.bf16.msra.mxu1 %v2300_v31 }
   0xf   :  { %1882 = vmatprep.mubr.msk.bf16.mxu1 %vm2169_vm0, %v2168_v1  ;;  %1880 = vmatprep.subr.bf16.mxu1 %v2168_v1 }
  0x10   :  { %1872 = vmatprep.subr.bf16.mxu0 %v2168_v1  ;;  %1874 = vmatprep.mubr.msk.bf16.mxu0 %vm2169_vm0, %v2168_v1 }
  0x12   :  { %1873 = vmatpush3.bf16.msra.mxu0 %v2308_v33  ;;  %1881 = vmatpush3.bf16.msra.mxu1 %v2314_v34 }
  0x13   :  { %1886 = vmatprep.subr.bf16.mxu0 %v2168_v1  ;;  %1894 = vmatprep.subr.bf16.mxu1 %v2168_v1 }
  0x15   :  { %1875 = vmatmul.mubr.bf16.vlgmr.msra.gmra.mrb[4].mxu0 %v2171_v32  ;;  %1883 = vmatmul.mubr.bf16.vlgmr.msra.gmra.mrb[4].mxu1 %v2171_v32 }
  0x16   :  { %1887 = vmatpush3.bf16.msra.mxu0 %v2277_v21  ;;  %1895 = vmatpush3.bf16.msra.mxu1 %v2294_v29 }
  0x17   :  { %1888 = vmatprep.subr.bf16.mxu0 %v2168_v1  ;;  %1896 = vmatprep.subr.bf16.mxu1 %v2168_v1 }
  0x18   :  { %1890 = vmatprep.mubr.msk.bf16.mxu0 %vm2169_vm0, %v2168_v1  ;;  %1898 = vmatprep.mubr.msk.bf16.mxu1 %vm2169_vm0, %v2168_v1 }
  0x1a   :  { %1889 = vmatpush3.bf16.msra.mxu0 %v2287_v26  ;;  %1897 = vmatpush3.bf16.msra.mxu1 %v2308_v33 }
  0x1b   :  { %1902 = vmatprep.subr.bf16.mxu0 %v2168_v1  ;;  %1910 = vmatprep.subr.bf16.mxu1 %v2168_v1 }
  0xe0   :  { %v155_v36 = vpop.f32.mrb[0].mxu0  ;;  %v397_v39 = vpop.f32.mrb[0].mxu1 }
  0xe1   :  { %v156_v37 = vadd.f32 %v1722_v35, %v155_v36  ;;  %v1860_v38 = vpop.f32.mrb[1].mxu0  ;;  %v1868_v41 = vpop.f32.mrb[1].mxu1 }
  0xe2   :  { %v158_v40 = vpop.f32.mrb[2].mxu0  ;;  %v400_v46 = vpop.f32.mrb[2].mxu1 }
  0xe3   :  { %v164_v42 = vcombine.high %v156_v37, %v156_v37  ;;  %v171_v43 = vrot.slane %v156_v37, %v2272_v18  ;;  %v159_v44 = vadd.f32 %v1722_v35, %v158_v40  ;;  %v1861_v45 = vpop.f32.mrb[3].mxu0  ;;  %v1869_v47 = vpop.f32.mrb[3].mxu1 }
  0xe5   :  { %v178_v48 = vrot.slane %v164_v42, %v2272_v18  ;;  %207 = vst.msk [vmem:[#allocation2] sm:$0x3] %vm206_vm2, %v171_v43  ;;  %v181_v49 = vcombine.high %v159_v44, %v159_v44  ;;  %v188_v50 = vrot.slane %v159_v44, %v2272_v18  ;;  %v221_v51 = vrot.slane %v171_v43, %v2272_v18 }
  0xe6   :  { %v179_v52 = vcombine.high %v171_v43, %v171_v43 }
  0xe7   :  { %209 = vst.msk [vmem:[#allocation2 + $0x4] sm:$0x3] %vm206_vm2, %v178_v48  ;;  %v195_v53 = vrot.slane %v181_v49, %v2272_v18  ;;  %211 = vst.msk [vmem:[#allocation2 + $0x8] sm:$0x3] %vm206_vm2, %v188_v50  ;;  %271 = vrot.lane.b32.xlu0 %v221_v51, %s2172_s2  ;;  %v180_v54 = vcombine.high %v178_v48, %v178_v48  ;;  %v196_v56 = vcombine.high %v188_v50, %v188_v50 }
  0xe8   :  { %v228_v55 = vrot.slane %v179_v52, %v2272_v18  ;;  %208 = vst.msk [vmem:[#allocation2 + $0x2] sm:$0x3] %vm206_vm2, %v179_v52  ;;  %v449_v57 = vpop.f32.mrb[4].mxu0  ;;  %v507_v59 = vpop.f32.mrb[4].mxu1  ;;  %v235_v5 = vrot.slane %v178_v48, %v2272_v18  ;;  %v249_v8 = vrot.slane %v188_v50, %v2272_v18 }
  0xe9   :  { %213 = vst.msk [vmem:[#allocation2 + $0xc] sm:$0x3] %vm206_vm2, %v195_v53  ;;  %210 = vst.msk [vmem:[#allocation2 + $0x6] sm:$0x3] %vm206_vm2, %v180_v54  ;;  %v197_v58 = vcombine.high %v195_v53, %v195_v53  ;;  %v1876_v60 = vpop.f32.mrb[5].mxu0  ;;  %v1884_v62 = vpop.f32.mrb[5].mxu1  ;;  %v242_v7 = vrot.slane %v180_v54, %v2272_v18  ;;  %v256_v9 = vrot.slane %v196_v56, %v2272_v18 }
  0xea   :  { %273 = vrot.lane.b32.xlu1 %v228_v55, %s2172_s2  ;;  %212 = vst.msk [vmem:[#allocation2 + $0xa] sm:$0x3] %vm206_vm2, %v196_v56  ;;  %v452_v61 = vpop.f32.mrb[6].mxu0  ;;  %v510_v0 = vpop.f32.mrb[6].mxu1  ;;  %v263_v12 = vrot.slane %v195_v53, %v2272_v18  ;;  %v508_v15 = vadd.f32 %v2378_v14, %v507_v59 }
  0xeb   :  { %303 = vrot.lane.b32.xlu0 %v221_v51, %s2173_s1  ;;  %214 = vst.msk [vmem:[#allocation2 + $0xe] sm:$0x3] %vm206_vm2, %v197_v58  ;;  %v1877_v63 = vpop.f32.mrb[7].mxu0  ;;  %v1885_v3 = vpop.f32.mrb[7].mxu1  ;;  %v270_v13 = vrot.slane %v197_v58, %v2272_v18 }
  0xec   :  { %v513_v2 = vld [vmem:[#allocation2] sm:$0x3] }
  0xed   :  { %v514_v4 = vadd.f32 %v513_v2, %v397_v39 }
  0xee   :  { %305 = vrot.lane.b32.xlu1 %v228_v55, %s2173_s1 }
  0xef   :  { %v1733_v6 = vmul.f32 -1.442695, %v514_v4  ;;  %275 = vrot.lane.b32.xlu0 %v235_v5, %s2172_s2  ;;  %v662_v55 = vld [vmem:[#allocation2 + $0x2] sm:$0x3] }
  0xf1   :  { %2086 = vpow2.f32 %v1733_v6 }
  0xf2   :  { %307 = vrot.lane.b32.xlu1 %v235_v5, %s2173_s1 }
  0xf3   :  { %277 = vrot.lane.b32.xlu0 %v242_v7, %s2172_s2 }
  0xf6   :  { %309 = vrot.lane.b32.xlu1 %v242_v7, %s2173_s1 }
  0xf7   :  { %279 = vrot.lane.b32.xlu0 %v249_v8, %s2172_s2 }
  0xfa   :  { %311 = vrot.lane.b32.xlu1 %v249_v8, %s2173_s1 }
  0xfb   :  { %v2087_v10 = vpop.eup %2086  ;;  %281 = vrot.lane.b32.xlu0 %v256_v9, %s2172_s2 }
  0xfc   :  { %v518_v11 = vadd.f32 1.0, %v2087_v10 }
  0xfe   :  { %2088 = vrcp.f32 %v518_v11  ;;  %313 = vrot.lane.b32.xlu1 %v256_v9, %s2173_s1 }
  0xff   :  { %283 = vrot.lane.b32.xlu0 %v263_v12, %s2172_s2 }
 0x102   :  { %315 = vrot.lane.b32.xlu1 %v263_v12, %s2173_s1 }
 0x103   :  { %285 = vrot.lane.b32.xlu0 %v270_v13, %s2172_s2 }
 0x106   :  { %317 = vrot.lane.b32.xlu1 %v270_v13, %s2173_s1 }
 0x108   :  { %v2089_v16 = vpop.eup %2088 }
 0x109   :  { %v530_v17 = vmul.f32 %v2089_v16, %v508_v15 }
 0x159   :  { %v272_v19 = vpop.permute.xlu0 %271 }
 0x15a   :  { %295 = vst.msk [vmem:[#allocation3] sm:$0x3] %vm206_vm2, %v272_v19 }
 0x15c   :  { %v274_v20 = vpop.permute.xlu1 %273 }
 0x15d   :  { %296 = vst.msk [vmem:[#allocation3 + $0x2] sm:$0x3] %vm206_vm2, %v274_v20  ;;  %v304_v18 = vpop.permute.xlu0 %303 }
 0x15e   :  { %327 = vst.msk [vmem:[#allocation4] sm:$0x3] %vm206_vm2, %v304_v18 }
 0x160   :  { %v306_v22 = vpop.permute.xlu1 %305 }
 0x161   :  { %v521_v23 = vld [vmem:[#allocation3] sm:$0x3]  ;;  %328 = vst.msk [vmem:[#allocation4 + $0x2] sm:$0x3] %vm206_vm2, %v306_v22  ;;  %v276_v24 = vpop.permute.xlu0 %275 }
 0x162   :  { %v522_v25 = vadd.f32 %v521_v23, %v449_v57  ;;  %297 = vst.msk [vmem:[#allocation3 + $0x4] sm:$0x3] %vm206_vm2, %v276_v24 }
 0x164   :  { %v1734_v27 = vmul.f32 -1.442695, %v522_v25  ;;  %v308_v28 = vpop.permute.xlu1 %307  ;;  %v671_v63 = vld [vmem:[#allocation3 + $0x2] sm:$0x3] }
 0x165   :  { %329 = vst.msk [vmem:[#allocation4 + $0x4] sm:$0x3] %vm206_vm2, %v308_v28  ;;  %v278_v30 = vpop.permute.xlu0 %277  ;;  %v529_v38 = vld [vmem:[#allocation4] sm:$0x3] }
 0x166   :  { %2090 = vpow2.f32 %v1734_v27  ;;  %298 = vst.msk [vmem:[#allocation3 + $0x6] sm:$0x3] %vm206_vm2, %v278_v30  ;;  %v531_v43 = vadd.f32 %v530_v17, %v529_v38  ;;  %v813_v30 = vld [vmem:[#allocation2 + $0x4] sm:$0x3] }
 0x168   :  { %v310_v32 = vpop.permute.xlu1 %309  ;;  %v680_v17 = vld [vmem:[#allocation4 + $0x2] sm:$0x3] }
 0x169   :  { %330 = vst.msk [vmem:[#allocation4 + $0x6] sm:$0x3] %vm206_vm2, %v310_v32  ;;  %v280_v35 = vpop.permute.xlu0 %279 }
 0x16a   :  { %299 = vst.msk [vmem:[#allocation3 + $0x8] sm:$0x3] %vm206_vm2, %v280_v35 }
 0x16c   :  { %v312_v36 = vpop.permute.xlu1 %311 }
 0x16d   :  { %331 = vst.msk [vmem:[#allocation4 + $0x8] sm:$0x3] %vm206_vm2, %v312_v36  ;;  %v282_v37 = vpop.permute.xlu0 %281 }
 0x16e   :  { %300 = vst.msk [vmem:[#allocation3 + $0xa] sm:$0x3] %vm206_vm2, %v282_v37 }
 0x170   :  { %v2091_v39 = vpop.eup %2090  ;;  %v314_v40 = vpop.permute.xlu1 %313 }
 0x171   :  { %v526_v41 = vadd.f32 1.0, %v2091_v39  ;;  %332 = vst.msk [vmem:[#allocation4 + $0xa] sm:$0x3] %vm206_vm2, %v314_v40  ;;  %v284_v42 = vpop.permute.xlu0 %283 }
 0x172   :  { %301 = vst.msk [vmem:[#allocation3 + $0xc] sm:$0x3] %vm206_vm2, %v284_v42 }
 0x173   :  { %2092 = vrcp.f32 %v526_v41  ;;  %v822_v41 = vld [vmem:[#allocation3 + $0x4] sm:$0x3] }
 0x174   :  { %v316_v44 = vpop.permute.xlu1 %315  ;;  %2094 = vtanh.f32 %v531_v43 }
 0x175   :  { %333 = vst.msk [vmem:[#allocation4 + $0xc] sm:$0x3] %vm206_vm2, %v316_v44  ;;  %v286_v45 = vpop.permute.xlu0 %285 }
 0x176   :  { %302 = vst.msk [vmem:[#allocation3 + $0xe] sm:$0x3] %vm206_vm2, %v286_v45 }
 0x178   :  { %v318_v46 = vpop.permute.xlu1 %317 }
 0x179   :  { %334 = vst.msk [vmem:[#allocation4 + $0xe] sm:$0x3] %vm206_vm2, %v318_v46 }
 0x17d   :  { %v2093_v47 = vpop.eup %2092 }
 0x17e   :  { %v533_v48 = vsub.f32 1.0, %v2093_v47  ;;  %v2095_v49 = vpop.eup %2094  ;;  %v535_v50 = vmul.f32 0.0, %v2093_v47 }
 0x180   :  { %v534_v51 = vmul.f32 %v2095_v49, %v533_v48 }
 0x182   :  { %v536_v52 = vadd.f32 %v535_v50, %v534_v51 }
 0x184   :  { %v537_v53 = vpack.c.bf16 %v536_v52, %v536_v52 }
 0x186   :  { %1891 = vmatmul.mubr.msk.bf16.vlgmr.msra.gmra.mrb[8].mxu0 %vm117_vm1, %v537_v53  ;;  %1899 = vmatmul.mubr.msk.bf16.vlgmr.msra.gmra.mrb[8].mxu1 %vm117_vm1, %v537_v53 }
 0x187   :  { %1903 = vmatpush3.bf16.msra.mxu0 %v2300_v31  ;;  %1906 = vmatprep.mubr.msk.bf16.mxu0 %vm2169_vm0, %v2168_v1 }
 0x188   :  { %1904 = vmatprep.subr.bf16.mxu0 %v2168_v1  ;;  %1911 = vmatpush3.bf16.msra.mxu1 %v2277_v21 }
 0x189   :  { %1912 = vmatprep.subr.bf16.mxu1 %v2168_v1  ;;  %1914 = vmatprep.mubr.msk.bf16.mxu1 %vm2169_vm0, %v2168_v1 }
 0x18b   :  { %1905 = vmatpush3.bf16.msra.mxu0 %v2314_v34 }
 0x18c   :  { %1918 = vmatprep.subr.bf16.mxu0 %v2168_v1  ;;  %1913 = vmatpush3.bf16.msra.mxu1 %v2287_v26 }
 0x18d   :  { %1926 = vmatprep.subr.bf16.mxu1 %v2168_v1 }
 0x18e   :  { %1907 = vmatmul.mubr.msk.bf16.vlgmr.msra.gmra.mrb[12].mxu0 %vm117_vm1, %v537_v53 }
 0x18f   :  { %1919 = vmatpush3.bf16.msra.mxu0 %v2294_v29  ;;  %1922 = vmatprep.mubr.msk.bf16.mxu0 %vm2169_vm0, %v2168_v1 }
 0x190   :  { %1920 = vmatprep.subr.bf16.mxu0 %v2168_v1 }
 0x193   :  { %1921 = vmatpush3.bf16.msra.mxu0 %v2308_v33 }
 0x194   :  { %1934 = vmatprep.subr.bf16.mxu0 %v2168_v1 }
 0x259   :  { %v575_v54 = vpop.f32.mrb[8].mxu0  ;;  %v615_v56 = vpop.f32.mrb[8].mxu1 }
 0x25a   :  { %v663_v57 = vadd.f32 %v662_v55, %v575_v54  ;;  %v1892_v58 = vpop.f32.mrb[9].mxu0  ;;  %v1900_v59 = vpop.f32.mrb[9].mxu1  ;;  %v672_v3 = vadd.f32 %v671_v63, %v615_v56 }
 0x25b   :  { %v578_v60 = vpop.f32.mrb[10].mxu0  ;;  %v618_v61 = vpop.f32.mrb[10].mxu1 }
 0x25c   :  { %v1738_v62 = vmul.f32 -1.442695, %v663_v57  ;;  %v1893_v0 = vpop.f32.mrb[11].mxu0  ;;  %v1901_v2 = vpop.f32.mrb[11].mxu1  ;;  %v1739_v4 = vmul.f32 -1.442695, %v672_v3 }
 0x25d   :  { %v831_v57 = vld [vmem:[#allocation4 + $0x4] sm:$0x3] }
 0x25e   :  { %2096 = vpow2.f32 %v1738_v62 }
 0x25f   :  { %2098 = vpow2.f32 %v1739_v4  ;;  %v964_v4 = vld [vmem:[#allocation2 + $0x6] sm:$0x3] }
 0x261   :  { %v655_v5 = vpop.f32.mrb[12].mxu0 }
 0x262   :  { %v1908_v6 = vpop.f32.mrb[13].mxu0  ;;  %v656_v13 = vadd.f32 %v2378_v14, %v655_v5 }
 0x263   :  { %v658_v7 = vpop.f32.mrb[14].mxu0 }
 0x264   :  { %v1909_v8 = vpop.f32.mrb[15].mxu0 }
 0x268   :  { %v2097_v9 = vpop.eup %2096 }
 0x269   :  { %v667_v10 = vadd.f32 1.0, %v2097_v9  ;;  %v2099_v11 = vpop.eup %2098 }
 0x26a   :  { %v676_v12 = vadd.f32 1.0, %v2099_v11 }
 0x26b   :  { %2100 = vrcp.f32 %v667_v10 }
 0x26c   :  { %2102 = vrcp.f32 %v676_v12  ;;  %v973_v12 = vld [vmem:[#allocation3 + $0x6] sm:$0x3] }
 0x275   :  { %v2101_v15 = vpop.eup %2100 }
 0x276   :  { %v681_v16 = vmul.f32 %v2101_v15, %v656_v13  ;;  %v2103_v20 = vpop.eup %2102 }
 0x277   :  { %v684_v18 = vsub.f32 1.0, %v2103_v20  ;;  %v686_v23 = vmul.f32 %v2103_v20, %v536_v52 }
 0x278   :  { %v682_v19 = vadd.f32 %v681_v16, %v680_v17 }
 0x27a   :  { %2104 = vtanh.f32 %v682_v19 }
 0x284   :  { %v2105_v22 = vpop.eup %2104 }
 0x285   :  { %v685_v24 = vmul.f32 %v2105_v22, %v684_v18 }
 0x287   :  { %v687_v25 = vadd.f32 %v686_v23, %v685_v24 }
 0x289   :  { %v688_v27 = vpack.c.bf16 %v687_v25, %v687_v25 }
 0x28b   :  { %1915 = vmatmul.mubr.msk.bf16.vlgmr.msra.gmra.mrb[12].mxu1 %vm117_vm1, %v688_v27  ;;  %1923 = vmatmul.mubr.msk.bf16.vlgmr.msra.gmra.mrb[16].mxu0 %vm117_vm1, %v688_v27 }
 0x28c   :  { %1927 = vmatpush3.bf16.msra.mxu1 %v2300_v31  ;;  %1930 = vmatprep.mubr.msk.bf16.mxu1 %vm2169_vm0, %v2168_v1 }
 0x28d   :  { %1928 = vmatprep.subr.bf16.mxu1 %v2168_v1  ;;  %1935 = vmatpush3.bf16.msra.mxu0 %v2277_v21 }
 0x28e   :  { %1936 = vmatprep.subr.bf16.mxu0 %v2168_v1  ;;  %1938 = vmatprep.mubr.msk.bf16.mxu0 %vm2169_vm0, %v2168_v1 }
 0x290   :  { %1929 = vmatpush3.bf16.msra.mxu1 %v2314_v34 }
 0x291   :  { %1942 = vmatprep.subr.bf16.mxu1 %v2168_v1  ;;  %1937 = vmatpush3.bf16.msra.mxu0 %v2287_v26 }
 0x292   :  { %1950 = vmatprep.subr.bf16.mxu0 %v2168_v1 }
 0x293   :  { %1931 = vmatmul.mubr.msk.bf16.vlgmr.msra.gmra.mrb[16].mxu1 %vm117_vm1, %v688_v27 }
 0x294   :  { %1943 = vmatpush3.bf16.msra.mxu1 %v2294_v29  ;;  %1946 = vmatprep.mubr.msk.bf16.mxu1 %vm2169_vm0, %v2168_v1 }
 0x295   :  { %1944 = vmatprep.subr.bf16.mxu1 %v2168_v1 }
 0x298   :  { %1945 = vmatpush3.bf16.msra.mxu1 %v2308_v33 }
 0x299   :  { %1958 = vmatprep.subr.bf16.mxu1 %v2168_v1 }
 0x35e   :  { %v726_v28 = vpop.f32.mrb[12].mxu1  ;;  %v766_v32 = vpop.f32.mrb[16].mxu0 }
 0x35f   :  { %v814_v35 = vadd.f32 %v813_v30, %v726_v28  ;;  %v1916_v36 = vpop.f32.mrb[13].mxu1  ;;  %v1924_v37 = vpop.f32.mrb[17].mxu0  ;;  %v823_v44 = vadd.f32 %v822_v41, %v766_v32 }
 0x360   :  { %v729_v38 = vpop.f32.mrb[14].mxu1  ;;  %v769_v39 = vpop.f32.mrb[18].mxu0 }
 0x361   :  { %v1743_v40 = vmul.f32 -1.442695, %v814_v35  ;;  %v1917_v42 = vpop.f32.mrb[15].mxu1  ;;  %v1925_v43 = vpop.f32.mrb[19].mxu0  ;;  %v1744_v45 = vmul.f32 -1.442695, %v823_v44 }
 0x362   :  { %v982_v35 = vld [vmem:[#allocation4 + $0x6] sm:$0x3] }
 0x363   :  { %2106 = vpow2.f32 %v1743_v40 }
 0x364   :  { %2108 = vpow2.f32 %v1744_v45  ;;  %v1115_v45 = vld [vmem:[#allocation2 + $0x8] sm:$0x3] }
 0x366   :  { %v806_v46 = vpop.f32.mrb[16].mxu1 }
 0x367   :  { %v1932_v47 = vpop.f32.mrb[17].mxu1  ;;  %v807_v54 = vadd.f32 %v2378_v14, %v806_v46 }
 0x368   :  { %v809_v48 = vpop.f32.mrb[18].mxu1 }
 0x369   :  { %v1933_v49 = vpop.f32.mrb[19].mxu1 }
 0x36d   :  { %v2107_v50 = vpop.eup %2106 }
 0x36e   :  { %v818_v51 = vadd.f32 1.0, %v2107_v50  ;;  %v2109_v52 = vpop.eup %2108 }
 0x36f   :  { %v827_v53 = vadd.f32 1.0, %v2109_v52 }
 0x370   :  { %2110 = vrcp.f32 %v818_v51 }
 0x371   :  { %2112 = vrcp.f32 %v827_v53  ;;  %v1124_v53 = vld [vmem:[#allocation3 + $0x8] sm:$0x3] }
 0x37a   :  { %v2111_v55 = vpop.eup %2110 }
 0x37b   :  { %v832_v56 = vmul.f32 %v2111_v55, %v807_v54  ;;  %v2113_v59 = vpop.eup %2112 }
 0x37c   :  { %v835_v60 = vsub.f32 1.0, %v2113_v59  ;;  %v837_v62 = vmul.f32 %v2113_v59, %v687_v25 }
 0x37d   :  { %v833_v58 = vadd.f32 %v832_v56, %v831_v57 }
 0x37f   :  { %2114 = vtanh.f32 %v833_v58 }
 0x389   :  { %v2115_v61 = vpop.eup %2114 }
 0x38a   :  { %v836_v63 = vmul.f32 %v2115_v61, %v835_v60 }
 0x38c   :  { %v838_v0 = vadd.f32 %v837_v62, %v836_v63 }
 0x38e   :  { %v839_v2 = vpack.c.bf16 %v838_v0, %v838_v0 }
 0x390   :  { %1939 = vmatmul.mubr.msk.bf16.vlgmr.msra.gmra.mrb[20].mxu0 %vm117_vm1, %v839_v2  ;;  %1947 = vmatmul.mubr.msk.bf16.vlgmr.msra.gmra.mrb[20].mxu1 %vm117_vm1, %v839_v2 }
 0x391   :  { %1951 = vmatpush3.bf16.msra.mxu0 %v2300_v31  ;;  %1954 = vmatprep.mubr.msk.bf16.mxu0 %vm2169_vm0, %v2168_v1 }
 0x392   :  { %1952 = vmatprep.subr.bf16.mxu0 %v2168_v1  ;;  %1959 = vmatpush3.bf16.msra.mxu1 %v2277_v21 }
 0x393   :  { %1960 = vmatprep.subr.bf16.mxu1 %v2168_v1  ;;  %1962 = vmatprep.mubr.msk.bf16.mxu1 %vm2169_vm0, %v2168_v1 }
 0x395   :  { %1953 = vmatpush3.bf16.msra.mxu0 %v2314_v34 }
 0x396   :  { %1966 = vmatprep.subr.bf16.mxu0 %v2168_v1  ;;  %1961 = vmatpush3.bf16.msra.mxu1 %v2287_v26 }
 0x397   :  { %1974 = vmatprep.subr.bf16.mxu1 %v2168_v1 }
 0x398   :  { %1955 = vmatmul.mubr.msk.bf16.vlgmr.msra.gmra.mrb[24].mxu0 %vm117_vm1, %v839_v2 }
 0x399   :  { %1967 = vmatpush3.bf16.msra.mxu0 %v2294_v29  ;;  %1970 = vmatprep.mubr.msk.bf16.mxu0 %vm2169_vm0, %v2168_v1 }
 0x39a   :  { %1968 = vmatprep.subr.bf16.mxu0 %v2168_v1 }
 0x39d   :  { %1969 = vmatpush3.bf16.msra.mxu0 %v2308_v33 }
 0x39e   :  { %1982 = vmatprep.subr.bf16.mxu0 %v2168_v1 }
 0x463   :  { %v877_v3 = vpop.f32.mrb[20].mxu0  ;;  %v917_v5 = vpop.f32.mrb[20].mxu1 }
 0x464   :  { %v965_v6 = vadd.f32 %v964_v4, %v877_v3  ;;  %v1940_v7 = vpop.f32.mrb[21].mxu0  ;;  %v1948_v8 = vpop.f32.mrb[21].mxu1  ;;  %v974_v16 = vadd.f32 %v973_v12, %v917_v5 }
 0x465   :  { %v880_v9 = vpop.f32.mrb[22].mxu0  ;;  %v920_v10 = vpop.f32.mrb[22].mxu1 }
 0x466   :  { %v1748_v11 = vmul.f32 -1.442695, %v965_v6  ;;  %v1941_v13 = vpop.f32.mrb[23].mxu0  ;;  %v1949_v15 = vpop.f32.mrb[23].mxu1  ;;  %v1749_v17 = vmul.f32 -1.442695, %v974_v16 }
 0x467   :  { %v1133_v6 = vld [vmem:[#allocation4 + $0x8] sm:$0x3] }
 0x468   :  { %2116 = vpow2.f32 %v1748_v11 }
 0x469   :  { %2118 = vpow2.f32 %v1749_v17  ;;  %v1266_v17 = vld [vmem:[#allocation2 + $0xa] sm:$0x3] }
 0x46b   :  { %v957_v19 = vpop.f32.mrb[24].mxu0 }
 0x46c   :  { %v1956_v20 = vpop.f32.mrb[25].mxu0  ;;  %v958_v28 = vadd.f32 %v2378_v14, %v957_v19 }
 0x46d   :  { %v960_v18 = vpop.f32.mrb[26].mxu0 }
 0x46e   :  { %v1957_v22 = vpop.f32.mrb[27].mxu0 }
 0x472   :  { %v2117_v23 = vpop.eup %2116 }
 0x473   :  { %v969_v24 = vadd.f32 1.0, %v2117_v23  ;;  %v2119_v25 = vpop.eup %2118 }
 0x474   :  { %v978_v27 = vadd.f32 1.0, %v2119_v25 }
 0x475   :  { %2120 = vrcp.f32 %v969_v24 }
 0x476   :  { %2122 = vrcp.f32 %v978_v27  ;;  %v1275_v27 = vld [vmem:[#allocation3 + $0xa] sm:$0x3] }
 0x47f   :  { %v2121_v30 = vpop.eup %2120 }
 0x480   :  { %v983_v32 = vmul.f32 %v2121_v30, %v958_v28  ;;  %v2123_v37 = vpop.eup %2122 }
 0x481   :  { %v986_v38 = vsub.f32 1.0, %v2123_v37  ;;  %v988_v40 = vmul.f32 %v2123_v37, %v838_v0 }
 0x482   :  { %v984_v36 = vadd.f32 %v983_v32, %v982_v35 }
 0x484   :  { %2124 = vtanh.f32 %v984_v36 }
 0x48e   :  { %v2125_v39 = vpop.eup %2124 }
 0x48f   :  { %v987_v41 = vmul.f32 %v2125_v39, %v986_v38 }
 0x491   :  { %v989_v42 = vadd.f32 %v988_v40, %v987_v41 }
 0x493   :  { %v990_v43 = vpack.c.bf16 %v989_v42, %v989_v42 }
 0x495   :  { %1963 = vmatmul.mubr.msk.bf16.vlgmr.msra.gmra.mrb[24].mxu1 %vm117_vm1, %v990_v43  ;;  %1971 = vmatmul.mubr.msk.bf16.vlgmr.msra.gmra.mrb[28].mxu0 %vm117_vm1, %v990_v43 }
 0x496   :  { %1975 = vmatpush3.bf16.msra.mxu1 %v2300_v31  ;;  %1978 = vmatprep.mubr.msk.bf16.mxu1 %vm2169_vm0, %v2168_v1 }
 0x497   :  { %1976 = vmatprep.subr.bf16.mxu1 %v2168_v1  ;;  %1983 = vmatpush3.bf16.msra.mxu0 %v2277_v21 }
 0x498   :  { %1984 = vmatprep.subr.bf16.mxu0 %v2168_v1  ;;  %1986 = vmatprep.mubr.msk.bf16.mxu0 %vm2169_vm0, %v2168_v1 }
 0x49a   :  { %1977 = vmatpush3.bf16.msra.mxu1 %v2314_v34 }
 0x49b   :  { %1990 = vmatprep.subr.bf16.mxu1 %v2168_v1  ;;  %1985 = vmatpush3.bf16.msra.mxu0 %v2287_v26 }
 0x49c   :  { %1998 = vmatprep.subr.bf16.mxu0 %v2168_v1 }
 0x49d   :  { %1979 = vmatmul.mubr.msk.bf16.vlgmr.msra.gmra.mrb[28].mxu1 %vm117_vm1, %v990_v43 }
 0x49e   :  { %1991 = vmatpush3.bf16.msra.mxu1 %v2294_v29  ;;  %1994 = vmatprep.mubr.msk.bf16.mxu1 %vm2169_vm0, %v2168_v1 }
 0x49f   :  { %1992 = vmatprep.subr.bf16.mxu1 %v2168_v1 }
 0x4a2   :  { %1993 = vmatpush3.bf16.msra.mxu1 %v2308_v33 }
 0x4a3   :  { %2006 = vmatprep.subr.bf16.mxu1 %v2168_v1 }
 0x568   :  { %v1028_v44 = vpop.f32.mrb[24].mxu1  ;;  %v1068_v46 = vpop.f32.mrb[28].mxu0 }
 0x569   :  { %v1116_v47 = vadd.f32 %v1115_v45, %v1028_v44  ;;  %v1964_v48 = vpop.f32.mrb[25].mxu1  ;;  %v1972_v49 = vpop.f32.mrb[29].mxu0  ;;  %v1125_v56 = vadd.f32 %v1124_v53, %v1068_v46 }
 0x56a   :  { %v1031_v50 = vpop.f32.mrb[26].mxu1  ;;  %v1071_v51 = vpop.f32.mrb[30].mxu0 }
 0x56b   :  { %v1753_v52 = vmul.f32 -1.442695, %v1116_v47  ;;  %v1965_v54 = vpop.f32.mrb[27].mxu1  ;;  %v1973_v55 = vpop.f32.mrb[31].mxu0  ;;  %v1754_v57 = vmul.f32 -1.442695, %v1125_v56 }
 0x56c   :  { %v1284_v47 = vld [vmem:[#allocation4 + $0xa] sm:$0x3]  ;;  %v1417_v56 = vld [vmem:[#allocation2 + $0xc] sm:$0x3] }
 0x56d   :  { %2126 = vpow2.f32 %v1753_v52 }
 0x56e   :  { %2128 = vpow2.f32 %v1754_v57 }
 0x570   :  { %v1108_v58 = vpop.f32.mrb[28].mxu1 }
 0x571   :  { %v1980_v59 = vpop.f32.mrb[29].mxu1  ;;  %v1109_v3 = vadd.f32 %v2378_v14, %v1108_v58 }
 0x572   :  { %v1111_v60 = vpop.f32.mrb[30].mxu1 }
 0x573   :  { %v1981_v61 = vpop.f32.mrb[31].mxu1 }
 0x577   :  { %v2127_v62 = vpop.eup %2126 }
 0x578   :  { %v1120_v63 = vadd.f32 1.0, %v2127_v62  ;;  %v2129_v0 = vpop.eup %2128 }
 0x579   :  { %v1129_v2 = vadd.f32 1.0, %v2129_v0 }
 0x57a   :  { %2130 = vrcp.f32 %v1120_v63  ;;  %v1426_v63 = vld [vmem:[#allocation3 + $0xc] sm:$0x3] }
 0x57b   :  { %2132 = vrcp.f32 %v1129_v2 }
 0x584   :  { %v2131_v4 = vpop.eup %2130 }
 0x585   :  { %v1134_v5 = vmul.f32 %v2131_v4, %v1109_v3  ;;  %v2133_v8 = vpop.eup %2132 }
 0x586   :  { %v1137_v9 = vsub.f32 1.0, %v2133_v8  ;;  %v1139_v11 = vmul.f32 %v2133_v8, %v989_v42 }
 0x587   :  { %v1135_v7 = vadd.f32 %v1134_v5, %v1133_v6 }
 0x589   :  { %2134 = vtanh.f32 %v1135_v7 }
 0x593   :  { %v2135_v10 = vpop.eup %2134 }
 0x594   :  { %v1138_v12 = vmul.f32 %v2135_v10, %v1137_v9 }
 0x596   :  { %v1140_v13 = vadd.f32 %v1139_v11, %v1138_v12 }
 0x598   :  { %v1141_v15 = vpack.c.bf16 %v1140_v13, %v1140_v13 }
 0x59a   :  { %1987 = vmatmul.mubr.msk.bf16.vlgmr.msra.gmra.mrb[32].mxu0 %vm117_vm1, %v1141_v15  ;;  %1995 = vmatmul.mubr.msk.bf16.vlgmr.msra.gmra.mrb[32].mxu1 %vm117_vm1, %v1141_v15 }
 0x59b   :  { %1999 = vmatpush3.bf16.msra.mxu0 %v2300_v31  ;;  %2002 = vmatprep.mubr.msk.bf16.mxu0 %vm2169_vm0, %v2168_v1 }
 0x59c   :  { %2000 = vmatprep.subr.bf16.mxu0 %v2168_v1  ;;  %2007 = vmatpush3.bf16.msra.mxu1 %v2277_v21 }
 0x59d   :  { %2008 = vmatprep.subr.bf16.mxu1 %v2168_v1  ;;  %2010 = vmatprep.mubr.msk.bf16.mxu1 %vm2169_vm0, %v2168_v1 }
 0x59f   :  { %2001 = vmatpush3.bf16.msra.mxu0 %v2314_v34 }
 0x5a0   :  { %2014 = vmatprep.subr.bf16.mxu0 %v2168_v1  ;;  %2009 = vmatpush3.bf16.msra.mxu1 %v2287_v26 }
 0x5a1   :  { %2022 = vmatprep.subr.bf16.mxu1 %v2168_v1 }
 0x5a2   :  { %2003 = vmatmul.mubr.msk.bf16.vlgmr.msra.gmra.mrb[36].mxu0 %vm117_vm1, %v1141_v15  ;;  %v1435_v15 = vld [vmem:[#allocation4 + $0xc] sm:$0x3] }
 0x5a3   :  { %2015 = vmatpush3.bf16.msra.mxu0 %v2294_v29  ;;  %2018 = vmatprep.mubr.msk.bf16.mxu0 %vm2169_vm0, %v2168_v1 }
 0x5a4   :  { %2016 = vmatprep.subr.bf16.mxu0 %v2168_v1 }
 0x5a7   :  { %2017 = vmatpush3.bf16.msra.mxu0 %v2308_v33 }
 0x5a8   :  { %2030 = vmatprep.subr.bf16.mxu0 %v2168_v1 }
 0x66d   :  { %v1179_v16 = vpop.f32.mrb[32].mxu0  ;;  %v1219_v19 = vpop.f32.mrb[32].mxu1 }
 0x66e   :  { %v1267_v20 = vadd.f32 %v1266_v17, %v1179_v16  ;;  %v1988_v18 = vpop.f32.mrb[33].mxu0  ;;  %v1996_v22 = vpop.f32.mrb[33].mxu1  ;;  %v1276_v32 = vadd.f32 %v1275_v27, %v1219_v19  ;;  %v1632_v27 = vld [vmem:[%s2575_s9] sm:$0xff] }
 0x66f   :  { %v1182_v23 = vpop.f32.mrb[34].mxu0  ;;  %v1222_v24 = vpop.f32.mrb[34].mxu1 }
 0x670   :  { %v1758_v25 = vmul.f32 -1.442695, %v1267_v20  ;;  %v1989_v28 = vpop.f32.mrb[35].mxu0  ;;  %v1997_v30 = vpop.f32.mrb[35].mxu1  ;;  %v1759_v35 = vmul.f32 -1.442695, %v1276_v32  ;;  %v16_v32 = vstv %s2576_s10 }
 0x671   :  { %v1634_v28 = vld [vmem:[%s2575_s9 + $0x10] sm:$0xff]  ;;  %17 = vst [vmem:[#allocation5] sm:$0x1] %v16_v32 }
 0x672   :  { %2136 = vpow2.f32 %v1758_v25  ;;  %v2174_v25 = vmov 0.0|0.0  }
 0x673   :  { %2138 = vpow2.f32 %v1759_v35 }
 0x675   :  { %v1259_v36 = vpop.f32.mrb[36].mxu0 }
 0x676   :  { %v2004_v37 = vpop.f32.mrb[37].mxu0  ;;  %v1260_v44 = vadd.f32 %v2378_v14, %v1259_v36  ;;  %v1568_v36 = vld [vmem:[#allocation2 + $0xe] sm:$0x3] }
 0x677   :  { %v1262_v38 = vpop.f32.mrb[38].mxu0 }
 0x678   :  { %v2005_v39 = vpop.f32.mrb[39].mxu0 }
 0x67c   :  { %v2137_v40 = vpop.eup %2136 }
 0x67d   :  { %v1271_v41 = vadd.f32 1.0, %v2137_v40  ;;  %v2139_v42 = vpop.eup %2138 }
 0x67e   :  { %v1280_v43 = vadd.f32 1.0, %v2139_v42 }
 0x67f   :  { %2140 = vrcp.f32 %v1271_v41 }
 0x680   :  { %2142 = vrcp.f32 %v1280_v43 }
 0x689   :  { %v2141_v45 = vpop.eup %2140 }
 0x68a   :  { %v1285_v46 = vmul.f32 %v2141_v45, %v1260_v44  ;;  %v2143_v49 = vpop.eup %2142  ;;  %v1577_v44 = vld [vmem:[#allocation3 + $0xe] sm:$0x3] }
 0x68b   :  { %v1288_v50 = vsub.f32 1.0, %v2143_v49  ;;  %v1290_v52 = vmul.f32 %v2143_v49, %v1140_v13 }
 0x68c   :  { %v1286_v48 = vadd.f32 %v1285_v46, %v1284_v47 }
 0x68e   :  { %2144 = vtanh.f32 %v1286_v48 }
 0x698   :  { %v2145_v51 = vpop.eup %2144 }
 0x699   :  { %v1289_v53 = vmul.f32 %v2145_v51, %v1288_v50 }
 0x69b   :  { %v1291_v54 = vadd.f32 %v1290_v52, %v1289_v53 }
 0x69d   :  { %v1292_v55 = vpack.c.bf16 %v1291_v54, %v1291_v54 }
 0x69f   :  { %2011 = vmatmul.mubr.msk.bf16.vlgmr.msra.gmra.mrb[36].mxu1 %vm117_vm1, %v1292_v55  ;;  %2019 = vmatmul.mubr.msk.bf16.vlgmr.msra.gmra.mrb[40].mxu0 %vm117_vm1, %v1292_v55 }
 0x6a0   :  { %2023 = vmatpush3.bf16.msra.mxu1 %v2300_v31  ;;  %2026 = vmatprep.mubr.msk.bf16.mxu1 %vm2169_vm0, %v2168_v1 }
 0x6a1   :  { %2024 = vmatprep.subr.bf16.mxu1 %v2168_v1  ;;  %2031 = vmatpush3.bf16.msra.mxu0 %v2277_v21 }
 0x6a2   :  { %2032 = vmatprep.subr.bf16.mxu0 %v2168_v1  ;;  %2034 = vmatprep.mubr.msk.bf16.mxu0 %vm2169_vm0, %v2168_v1 }
 0x6a4   :  { %2025 = vmatpush3.bf16.msra.mxu1 %v2314_v34 }
 0x6a5   :  { %2038 = vmatprep.subr.bf16.mxu1 %v2168_v1  ;;  %2033 = vmatpush3.bf16.msra.mxu0 %v2287_v26 }
 0x6a6   :  { %2046 = vmatprep.subr.bf16.mxu0 %v2168_v1 }
 0x6a7   :  { %2027 = vmatmul.mubr.msk.bf16.vlgmr.msra.gmra.mrb[40].mxu1 %vm117_vm1, %v1292_v55 }
 0x6a8   :  { %2039 = vmatpush3.bf16.msra.mxu1 %v2294_v29  ;;  %2042 = vmatprep.mubr.msk.bf16.mxu1 %vm2169_vm0, %v2168_v1 }
 0x6a9   :  { %2040 = vmatprep.subr.bf16.mxu1 %v2168_v1 }
 0x6ac   :  { %2041 = vmatpush3.bf16.msra.mxu1 %v2308_v33 }
 0x6ad   :  { %2065 = vmatprep.subr.bf16.mxu1 %v2174_v25 }
 0x772   :  { %v1330_v21 = vpop.f32.mrb[36].mxu1  ;;  %v1370_v57 = vpop.f32.mrb[40].mxu0 }
 0x773   :  { %v1418_v58 = vadd.f32 %v1417_v56, %v1330_v21  ;;  %v2012_v59 = vpop.f32.mrb[37].mxu1  ;;  %v2020_v60 = vpop.f32.mrb[41].mxu0  ;;  %v1427_v29 = vadd.f32 %v1426_v63, %v1370_v57 }
 0x774   :  { %v1333_v26 = vpop.f32.mrb[38].mxu1  ;;  %v1373_v61 = vpop.f32.mrb[42].mxu0  ;;  %v1586_v59 = vld [vmem:[#allocation4 + $0xe] sm:$0x3] }
 0x775   :  { %v1763_v62 = vmul.f32 -1.442695, %v1418_v58  ;;  %v2013_v0 = vpop.f32.mrb[39].mxu1  ;;  %v2021_v2 = vpop.f32.mrb[43].mxu0  ;;  %v1764_v3 = vmul.f32 -1.442695, %v1427_v29 }
 0x777   :  { %2146 = vpow2.f32 %v1763_v62 }
 0x778   :  { %2148 = vpow2.f32 %v1764_v3 }
 0x77a   :  { %v1410_v4 = vpop.f32.mrb[40].mxu1 }
 0x77b   :  { %v2028_v5 = vpop.f32.mrb[41].mxu1  ;;  %v1411_v11 = vadd.f32 %v2378_v14, %v1410_v4 }
 0x77c   :  { %v1413_v6 = vpop.f32.mrb[42].mxu1 }
 0x77d   :  { %v2029_v7 = vpop.f32.mrb[43].mxu1 }
 0x781   :  { %v2147_v33 = vpop.eup %2146 }
 0x782   :  { %v1422_v8 = vadd.f32 1.0, %v2147_v33  ;;  %v2149_v9 = vpop.eup %2148 }
 0x783   :  { %v1431_v10 = vadd.f32 1.0, %v2149_v9 }
 0x784   :  { %2150 = vrcp.f32 %v1422_v8 }
 0x785   :  { %2152 = vrcp.f32 %v1431_v10 }
 0x78e   :  { %v2151_v12 = vpop.eup %2150 }
 0x78f   :  { %v1436_v13 = vmul.f32 %v2151_v12, %v1411_v11  ;;  %v2153_v17 = vpop.eup %2152 }
 0x790   :  { %v1439_v19 = vsub.f32 1.0, %v2153_v17  ;;  %v1441_v18 = vmul.f32 %v2153_v17, %v1291_v54 }
 0x791   :  { %v1437_v16 = vadd.f32 %v1436_v13, %v1435_v15 }
 0x793   :  { %2154 = vtanh.f32 %v1437_v16 }
 0x79d   :  { %v2155_v20 = vpop.eup %2154 }
 0x79e   :  { %v1440_v22 = vmul.f32 %v2155_v20, %v1439_v19 }
 0x7a0   :  { %v1442_v23 = vadd.f32 %v1441_v18, %v1440_v22  ;;  %v1770_v22 = vld [vmem:[%s2577_s7] ss:$0 sm:$0xff] }
 0x7a2   :  { %v1443_v24 = vpack.c.bf16 %v1442_v23, %v1442_v23 }
 0x7a4   :  { %2035 = vmatmul.mubr.msk.bf16.vlgmr.msra.gmra.mrb[44].mxu0 %vm117_vm1, %v1443_v24  ;;  %2043 = vmatmul.mubr.msk.bf16.vlgmr.msra.gmra.mrb[44].mxu1 %vm117_vm1, %v1443_v24 }
 0x7a5   :  { %2047 = vmatpush3.bf16.msra.mxu0 %v2300_v31  ;;  %2050 = vmatprep.mubr.msk.bf16.mxu0 %vm2169_vm0, %v2168_v1  ;;  %v1633_v31 = vld [vmem:[%s2575_s9 + $0x8] sm:$0xff] }
 0x7a6   :  { %2048 = vmatprep.subr.bf16.mxu0 %v2168_v1  ;;  %2062 = vmatprep.mubr.msk.f32.mxu1 %vm2169_vm0, %v2168_v1  ;;  %v2066_v30 = vpack.c.bf16 %v1633_v31, %v1632_v27  ;;  %v1635_v1 = vld [vmem:[%s2575_s9 + $0x18] sm:$0xff]  ;;  %v1772_v31 = vld [vmem:[#allocation5] ss:$0 sm:$0xff] }
 0x7a8   :  { %2067 = vmatpush3.bf16.msra.mxu1 %v2066_v30 }
 0x7a9   :  { %2049 = vmatpush3.bf16.msra.mxu0 %v2314_v34  ;;  %v2069_v34 = vpack.c.bf16 %v1635_v1, %v1634_v28  ;;  %2068 = vmatprep.subr.bf16.mxu1 %v2174_v25 }
 0x7ac   :  { %2051 = vmatmul.mubr.msk.bf16.vlgmr.msra.gmra.mrb[48].mxu0 %vm117_vm1, %v1443_v24  ;;  %2070 = vmatpush3.bf16.msra.mxu1 %v2069_v34  ;;  %v1771_v24 = vld [vmem:[%s2578_s8] ss:$0 sm:$0xff] }
 0x877   :  { %v1481_v35 = vpop.f32.mrb[44].mxu0  ;;  %v1521_v37 = vpop.f32.mrb[44].mxu1 }
 0x878   :  { %v1569_v38 = vadd.f32 %v1568_v36, %v1481_v35  ;;  %v2036_v39 = vpop.f32.mrb[45].mxu0  ;;  %v2044_v40 = vpop.f32.mrb[45].mxu1  ;;  %v1578_v47 = vadd.f32 %v1577_v44, %v1521_v37 }
 0x879   :  { %v1484_v41 = vpop.f32.mrb[46].mxu0  ;;  %v1524_v42 = vpop.f32.mrb[46].mxu1 }
 0x87a   :  { %v1768_v43 = vmul.f32 -1.442695, %v1569_v38  ;;  %v2037_v45 = vpop.f32.mrb[47].mxu0  ;;  %v2045_v46 = vpop.f32.mrb[47].mxu1  ;;  %v1769_v48 = vmul.f32 -1.442695, %v1578_v47 }
 0x87c   :  { %2156 = vpow2.f32 %v1768_v43 }
 0x87d   :  { %2158 = vpow2.f32 %v1769_v48 }
 0x87f   :  { %v1561_v49 = vpop.f32.mrb[48].mxu0 }
 0x880   :  { %v2052_v50 = vpop.f32.mrb[49].mxu0  ;;  %v1562_v56 = vadd.f32 %v2378_v14, %v1561_v49 }
 0x881   :  { %v1564_v51 = vpop.f32.mrb[50].mxu0 }
 0x882   :  { %v2053_v52 = vpop.f32.mrb[51].mxu0 }
 0x886   :  { %v2157_v53 = vpop.eup %2156 }
 0x887   :  { %v1573_v54 = vadd.f32 1.0, %v2157_v53  ;;  %v2159_v55 = vpop.eup %2158 }
 0x888   :  { %v1582_v21 = vadd.f32 1.0, %v2159_v55 }
 0x889   :  { %2160 = vrcp.f32 %v1573_v54 }
 0x88a   :  { %2162 = vrcp.f32 %v1582_v21 }
 0x893   :  { %v2161_v57 = vpop.eup %2160 }
 0x894   :  { %v1587_v58 = vmul.f32 %v2161_v57, %v1562_v56  ;;  %v2163_v26 = vpop.eup %2162 }
 0x895   :  { %v1590_v61 = vsub.f32 1.0, %v2163_v26  ;;  %v1592_v63 = vmul.f32 %v2163_v26, %v1442_v23 }
 0x896   :  { %v1588_v60 = vadd.f32 %v1587_v58, %v1586_v59 }
 0x898   :  { %2164 = vtanh.f32 %v1588_v60 }
 0x8a2   :  { %v2165_v62 = vpop.eup %2164 }
 0x8a3   :  { %v1591_v0 = vmul.f32 %v2165_v62, %v1590_v61 }
 0x8a5   :  { %v1593_v2 = vadd.f32 %v1592_v63, %v1591_v0 }
 0x8a7   :  { %v1594_v29 = vsel %vm206_vm2, %v1593_v2, 0.0 }
 0x8a8   :  { %v1595_v3 = vrot.slane %v1594_v29, 4 }
 0x8aa   :  { %v1596_v4 = vadd.f32 %v1595_v3, %v1594_v29 }
 0x8ac   :  { %v1597_v5 = vrot.slane %v1596_v4, 2 }
 0x8ae   :  { %v1598_v6 = vadd.f32 %v1597_v5, %v1596_v4 }
 0x8b0   :  { %v1599_v7 = vrot.slane %v1598_v6, 1 }
 0x8b2   :  { %v1600_v14 = vadd.f32 %v1599_v7, %v1598_v6 }
 0x8b4   :  { %v1602_v33 = vmul.f32 0.5, %v1600_v14 }
 0x8b6   :  { %v1603_v8 = vsub.f32 %v1593_v2, %v1602_v33 }
 0x8b8   :  { %v1604_v9 = vmul.f32 %v1603_v8, %v1603_v8 }
 0x8ba   :  { %v1605_v10 = vsel %vm206_vm2, %v1604_v9, 0.0 }
 0x8bb   :  { %v1606_v11 = vrot.slane %v1605_v10, 4 }
 0x8bd   :  { %v1607_v12 = vadd.f32 %v1606_v11, %v1605_v10 }
 0x8bf   :  { %v1608_v13 = vrot.slane %v1607_v12, 2 }
 0x8c1   :  { %v1609_v15 = vadd.f32 %v1608_v13, %v1607_v12 }
 0x8c3   :  { %v1610_v16 = vrot.slane %v1609_v15, 1 }
 0x8c5   :  { %v1611_v17 = vadd.f32 %v1610_v16, %v1609_v15 }
 0x8c7   :  { %v1612_v19 = vmul.f32 0.5, %v1611_v17 }
 0x8c9   :  { %v1613_v20 = vadd.f32 1e-05, %v1612_v19 }
 0x8cb   :  { %2166 = vrsqrt.f32 %v1613_v20 }
 0x8d5   :  { %v2167_v18 = vpop.eup %2166 }
 0x8d6   :  { %v1615_v23 = vmul.f32 %v2167_v18, %v1603_v8 }
 0x8d8   :  { %v1623_v25 = vmul.f32 %v1770_v22, %v1615_v23 }
 0x8da   :  { %v1631_v27 = vadd.f32 %v1771_v24, %v1623_v25 }
 0x8dc   :  { %2063 = vmatmul.mubr.msk.f32.vlgmr.msra.gmra.mrb[48].mxu1 %vm117_vm1, %v1631_v27 }
 0x9af   :  { %v1712_v28 = vpop.f32.mrb[48].mxu1 }
 0x9b0   :  { %v1713_v30 = vadd.f32 %v1772_v31, %v1712_v28  ;;  %v2064_v1 = vpop.f32.mrb[49].mxu1 }
 0x9b2   :  { %1717 = vst.msk [vmem:[%s2579_s11] sm:$0x3] %vm1716_vm3, %v1713_v30 }

</bundles_post_ra>
